<compile_context>
chip_gen: v7x
topology: tpu7x:2x2x1
jax: 0.10.0
libtpu: 0.0.40
codegen_flags: <defaults>
</compile_context>

<pallas_src>
import jax
import jax.numpy as jnp
from jax import lax
from jax.experimental import pallas as pl
from jax.experimental.pallas import tpu as pltpu


def _make_vicreg_kernel(n_total: int, d: int, row_tile: int,
                        sim_w: float, var_w: float, cov_w: float,
                        precision):
    n = float(n_total)          # true (unpadded) batch size
    d_f = float(d)
    inv_n = 1.0 / n
    inv_nm1 = 1.0 / (n - 1.0)
    eps = 1e-4
    # Contract over the batch axis of both operands -> Z^T Z without an
    # explicit transpose of the tile.
    contract_batch = (((0,), (0,)), ((), ()))
    sub_groups = row_tile // 8

    def kernel(z1_ref, z2_ref, out_ref, gram1, gram2, stats):
        i = pl.program_id(0)

        @pl.when(i == 0)
        def _init():
            gram1[...] = jnp.zeros_like(gram1)
            gram2[...] = jnp.zeros_like(gram2)
            stats[...] = jnp.zeros_like(stats)

        # ---- streaming phase: accumulate sufficient statistics ----------
        z1 = z1_ref[...]                      # (row_tile, D) native dtype
        z2 = z2_ref[...]
        gram1[...] += lax.dot_general(z1, z1, contract_batch,
                                      precision=precision,
                                      preferred_element_type=jnp.float32)
        gram2[...] += lax.dot_general(z2, z2, contract_batch,
                                      precision=precision,
                                      preferred_element_type=jnp.float32)

        z1f = z1.astype(jnp.float32).reshape(sub_groups, 8, d)
        z2f = z2.astype(jnp.float32).reshape(sub_groups, 8, d)
        diff = z1f - z2f
        # (8, D) sublane-partial sums: pure VPU adds per step; the 8->1
        # cross-sublane reduce is deferred to finalize.
        stats[0:8, :] += jnp.sum(z1f, axis=0)
        stats[8:16, :] += jnp.sum(z2f, axis=0)
        stats[16:24, :] += jnp.sum(diff * diff, axis=0)

        # ---- finalize once on the last grid step -------------------------
        @pl.when(i == pl.num_programs(0) - 1)
        def _finalize():
            mean1 = jnp.sum(stats[0:8, :], axis=0, keepdims=True) * inv_n
            mean2 = jnp.sum(stats[8:16, :], axis=0, keepdims=True) * inv_n
            sim_loss = jnp.sum(stats[16:24, :]) * (inv_n / d_f)

            rows = lax.broadcasted_iota(jnp.int32, (d, d), 0)
            cols = lax.broadcasted_iota(jnp.int32, (d, d), 1)
            eye = rows == cols

            def moments(gram_ref, mean):
                g = gram_ref[...]
                # Per-feature sum of squares == diag(Z^T Z): one-time D^2 op
                # replaces the per-step sumsq accumulation.
                sumsq = jnp.sum(jnp.where(eye, g, 0.0), axis=0, keepdims=True)
                var = (sumsq - n * mean * mean) * inv_nm1     # unbiased diag(cov)
                # ||cov||_F^2 via the Gram trick:
                #   cov = (G - n m m^T)/(n-1)
                #   ||cov||_F^2 = (||G||^2 - 2n m^T G m + n^2 ||m||^4)/(n-1)^2
                gg = jnp.sum(g * g)
                mg = jnp.dot(mean, g, precision=precision,
                             preferred_element_type=jnp.float32)   # (1, D)
                quad = jnp.sum(mg * mean)                          # m^T G m
                m2 = jnp.sum(mean * mean)                          # ||m||^2
                frob = (gg - 2.0 * n * quad + n * n * m2 * m2) * (inv_nm1 * inv_nm1)
                return var, frob

            var1, frob1 = moments(gram1, mean1)
            var2, frob2 = moments(gram2, mean2)

            std1 = jnp.sqrt(var1 + eps)
            std2 = jnp.sqrt(var2 + eps)
            var_loss = (jnp.sum(jnp.maximum(1.0 - std1, 0.0))
                        + jnp.sum(jnp.maximum(1.0 - std2, 0.0))) / d_f

            # Off-diagonal Frobenius mass = ||cov||_F^2 - sum(diag(cov)^2).
            cov_loss = ((frob1 - jnp.sum(var1 * var1))
                        + (frob2 - jnp.sum(var2 * var2))) / d_f

            out_ref[0, 0] = (sim_w * sim_loss
                             + var_w * var_loss
                             + cov_w * cov_loss)

    return kernel


def _pick_row_tile(n: int, d: int) -> int:
    # Floor of 128 keeps the Gram contraction (K) dim MXU-friendly on every
    # generation and satisfies sublane packing for f32/bf16/int8.  256/512
    # preferred (256-wide MXU on v6e/v7x); 1024 for the small-D mem-bound
    # regime.  Remainders are handled by zero-padding, never by shrinking.
    if d <= 512 and n >= 1024:
        return 1024
    if n >= 512:
        return 512
    if n >= 256:
        return 256
    return 128


def _vmem_limit_bytes(row_tile: int, d: int, itemsize: int, bufs: int) -> int:
    need = (2 * bufs * row_tile * d * itemsize   # pipelined input tiles
            + 2 * d * d * 4                      # resident f32 Gram pair
            + 24 * d * 4                         # fused column statistics
            + (2 << 20))                         # headroom
    try:
        cap = int(pltpu.get_tpu_info().vmem_capacity_bytes)
    except Exception:
        cap = 64 << 20                           # conservative (v7x-sized)
    # Leave ~16 MiB for compiler scratch; do NOT clamp v5e/v6e to 64 MiB.
    return int(min(max(need, 32 << 20), max(cap - (16 << 20), 32 << 20)))


def _in_spec(row_tile: int, d: int, deep_buffer: bool) -> pl.BlockSpec:
    if deep_buffer:
        try:
            return pl.BlockSpec((row_tile, d), lambda i: (i, 0),
                                pipeline_mode=pl.Buffered(3))
        except TypeError:       # older BlockSpec without pipeline_mode kwarg
            pass
    return pl.BlockSpec((row_tile, d), lambda i: (i, 0))


def vicreg_loss(z1, z2,
                sim_loss_weight: float = 25.0,
                var_loss_weight: float = 25.0,
                cov_loss_weight: float = 1.0,
                row_tile: int | None = None):
    assert z1.shape == z2.shape and z1.ndim == 2
    n, d = z1.shape
    assert n >= 2, "unbiased variance requires N >= 2"
    if row_tile is None:
        row_tile = _pick_row_tile(n, d)
    assert row_tile % 128 == 0 and row_tile > 0, \
        "row_tile must be a positive multiple of 128"

    num_tiles = pl.cdiv(n, row_tile)
    n_pad = num_tiles * row_tile
    if n_pad != n:
        # Zero-padded rows contribute exactly zero to every accumulated
        # statistic (sums, Grams, squared diffs); normalizations use true N.
        z1 = jnp.pad(z1, ((0, n_pad - n), (0, 0)))
        z2 = jnp.pad(z2, ((0, n_pad - n), (0, 0)))

    # Deliberate matmul precision: HIGHEST for f32 inputs protects the
    # one-pass variance / Gram-trick cancellation; native bf16 otherwise.
    if z1.dtype == jnp.float32:
        precision = lax.Precision.HIGHEST
    else:
        precision = lax.Precision.DEFAULT

    kernel = _make_vicreg_kernel(n, d, row_tile,
                                 float(sim_loss_weight),
                                 float(var_loss_weight),
                                 float(cov_loss_weight),
                                 precision)

    itemsize = jnp.dtype(z1.dtype).itemsize
    deep_buffer = (d <= 512 and num_tiles >= 3)   # small-D mem-bound regime
    bufs = 3 if deep_buffer else 2
    vmem_limit = _vmem_limit_bytes(row_tile, d, itemsize, bufs)

    cost = pl.CostEstimate(
        flops=4 * n_pad * d * d + 6 * d * d,
        transcendentals=2 * d,
        bytes_accessed=2 * n_pad * d * itemsize + 4,
    )

    grid_spec = pltpu.PrefetchScalarGridSpec(
        num_scalar_prefetch=0,
        grid=(num_tiles,),
        in_specs=[
            _in_spec(row_tile, d, deep_buffer),
            _in_spec(row_tile, d, deep_buffer),
        ],
        out_specs=pl.BlockSpec((1, 1), lambda i: (0, 0),
                               memory_space=pltpu.MemorySpace.SMEM),
        scratch_shapes=[
            pltpu.VMEM((d, d), jnp.float32),    # gram1 accumulator
            pltpu.VMEM((d, d), jnp.float32),    # gram2 accumulator
            pltpu.VMEM((24, d), jnp.float32),   # fused [sum1 | sum2 | simsq]
        ],
    )

    out = pl.pallas_call(
        kernel,
        out_shape=jax.ShapeDtypeStruct((1, 1), jnp.float32),
        grid_spec=grid_spec,
        compiler_params=pltpu.CompilerParams(
            dimension_semantics=("arbitrary",),   # batch axis is a reduction
            vmem_limit_bytes=vmem_limit,
        ),
        cost_estimate=cost,
    )(z1, z2)
    return out[0, 0]


def vicreg_loss_ref(z1, z2, sim_w=25.0, var_w=25.0, cov_w=1.0):
    """Pure-JAX reference mirroring the PyTorch module."""
    z1 = z1.astype(jnp.float32)
    z2 = z2.astype(jnp.float32)
    n, d = z1.shape
    sim = jnp.mean((z1 - z2) ** 2)
    std1 = jnp.sqrt(jnp.var(z1, axis=0, ddof=1) + 1e-4)
    std2 = jnp.sqrt(jnp.var(z2, axis=0, ddof=1) + 1e-4)
    var = (jnp.mean(jnp.maximum(1 - std1, 0.0))
           + jnp.mean(jnp.maximum(1 - std2, 0.0)))
    zc1 = z1 - z1.mean(axis=0)
    zc2 = z2 - z2.mean(axis=0)
    cov1 = zc1.T @ zc1 / (n - 1)
    cov2 = zc2.T @ zc2 / (n - 1)
    off = ~jnp.eye(d, dtype=bool)
    cov = (jnp.sum(jnp.where(off, cov1 ** 2, 0.0)) / d
           + jnp.sum(jnp.where(off, cov2 ** 2, 0.0)) / d)
    return sim_w * sim + var_w * var + cov_w * cov


if __name__ == "__main__":
    key = jax.random.PRNGKey(0)
    k1, k2, k3, k4, k5, k6 = jax.random.split(key, 6)

    # Case 1: tiny batch (32 rows) -> zero-padded to a single 128-row tile.
    z1a = jax.random.normal(k1, (32, 128), dtype=jnp.float32)
    z2a = z1a + 0.1 * jax.random.normal(k2, (32, 128), dtype=jnp.float32)
    out_a = vicreg_loss(z1a, z2a)
    jax.block_until_ready(out_a)
    ref_a = vicreg_loss_ref(z1a, z2a)
    assert jnp.allclose(out_a, ref_a, rtol=1e-3, atol=1e-3), (out_a, ref_a)

    # Case 2: ragged batch with non-zero mean -> 200 rows padded to 2 x 128.
    z1b = 0.25 + jax.random.normal(k3, (200, 256), dtype=jnp.float32)
    z2b = z1b + 0.1 * jax.random.normal(k4, (200, 256), dtype=jnp.float32)
    out_b = vicreg_loss(z1b, z2b)
    jax.block_until_ready(out_b)
    ref_b = vicreg_loss_ref(z1b, z2b)
    assert jnp.allclose(out_b, ref_b, rtol=1e-3, atol=1e-3), (out_b, ref_b)

    # Case 3: multi-tile small-D path exercising pl.Buffered(3) pipelining.
    z1c = jax.random.normal(k5, (640, 128), dtype=jnp.float32)
    z2c = z1c + 0.05 * jax.random.normal(k6, (640, 128), dtype=jnp.float32)
    out_c = vicreg_loss(z1c, z2c, row_tile=128)
    jax.block_until_ready(out_c)
    ref_c = vicreg_loss_ref(z1c, z2c)
    assert jnp.allclose(out_c, ref_c, rtol=1e-3, atol=1e-3), (out_c, ref_c)

    print("KERNEL_OK")
</pallas_src>

<mosaic_0001>
module attributes {stable_mosaic.version = 11 : i64} {
  func.func @kernel(%arg0: i32, %arg1: memref<128x128xf32, #tpu.memory_space<vmem>>, %arg2: memref<128x128xf32, #tpu.memory_space<vmem>>, %arg3: memref<1x1xf32, #tpu.memory_space<smem>>, %arg4: memref<128x128xf32, #tpu.memory_space<vmem>>, %arg5: memref<128x128xf32, #tpu.memory_space<vmem>>, %arg6: memref<24x128xf32, #tpu.memory_space<vmem>>) attributes {dimension_semantics = [#tpu.dimension_semantics<arbitrary>], iteration_bounds = array<i64: 1>, scalar_prefetch = 0 : i64, scratch_operands = 3 : i64, tpu.core_type = #tpu.core_type<tc>, window_params = [{transform_indices = @transform_0, window_bounds = array<i64: 128, 128>}, {transform_indices = @transform_1, window_bounds = array<i64: 128, 128>}, {transform_indices = @transform_2, window_bounds = array<i64: 1, 1>}]} {
    %c0_i32 = arith.constant 0 : i32
    %0 = arith.cmpi eq, %arg0, %c0_i32 : i32
    %1 = arith.extui %0 : i1 to i32
    %c0_i32_0 = arith.constant 0 : i32
    %2 = arith.cmpi ne, %1, %c0_i32_0 : i32
    scf.if %2 {
      %cst_28 = arith.constant 0.000000e+00 : f32
      %32 = vector.broadcast %cst_28 : f32 to vector<128x128xf32>
      %c0_29 = arith.constant 0 : index
      %c0_30 = arith.constant 0 : index
      %33 = vector.load %arg4[%c0_29, %c0_30] : memref<128x128xf32, #tpu.memory_space<vmem>>, vector<128x128xf32>
      tpu.vector_store %arg4[%c0_29, %c0_30], %32 {strides = array<i32>} : memref<128x128xf32, #tpu.memory_space<vmem>>, vector<128x128xf32>,
      %cst_31 = arith.constant 0.000000e+00 : f32
      %34 = vector.broadcast %cst_31 : f32 to vector<128x128xf32>
      %c0_32 = arith.constant 0 : index
      %c0_33 = arith.constant 0 : index
      %35 = vector.load %arg5[%c0_32, %c0_33] : memref<128x128xf32, #tpu.memory_space<vmem>>, vector<128x128xf32>
      tpu.vector_store %arg5[%c0_32, %c0_33], %34 {strides = array<i32>} : memref<128x128xf32, #tpu.memory_space<vmem>>, vector<128x128xf32>,
      %cst_34 = arith.constant 0.000000e+00 : f32
      %36 = vector.broadcast %cst_34 : f32 to vector<24x128xf32>
      %c0_35 = arith.constant 0 : index
      %c0_36 = arith.constant 0 : index
      %37 = vector.load %arg6[%c0_35, %c0_36] : memref<24x128xf32, #tpu.memory_space<vmem>>, vector<24x128xf32>
      tpu.vector_store %arg6[%c0_35, %c0_36], %36 {strides = array<i32>} : memref<24x128xf32, #tpu.memory_space<vmem>>, vector<24x128xf32>,
    } else {
    }
    %c0 = arith.constant 0 : index
    %c0_1 = arith.constant 0 : index
    %3 = vector.load %arg1[%c0, %c0_1] : memref<128x128xf32, #tpu.memory_space<vmem>>, vector<128x128xf32>
    %c0_2 = arith.constant 0 : index
    %c0_3 = arith.constant 0 : index
    %4 = vector.load %arg2[%c0_2, %c0_3] : memref<128x128xf32, #tpu.memory_space<vmem>>, vector<128x128xf32>
    %c0_4 = arith.constant 0 : index
    %c0_5 = arith.constant 0 : index
    %5 = vector.load %arg4[%c0_4, %c0_5] : memref<128x128xf32, #tpu.memory_space<vmem>>, vector<128x128xf32>
    %cst = arith.constant dense<0.000000e+00> : vector<128x128xf32>
    %6 = tpu.matmul %3, %3, %cst {dimension_numbers = #tpu.dot_dimension_numbers<[0], [0], [1], [1], [0, 1, 1, 1], [], []>, precision = #tpu.contract_precision<fp32>} : vector<128x128xf32>, vector<128x128xf32>, vector<128x128xf32> -> vector<128x128xf32>
    %7 = arith.addf %5, %6 : vector<128x128xf32>
    %c0_6 = arith.constant 0 : index
    %c0_7 = arith.constant 0 : index
    %8 = vector.load %arg4[%c0_6, %c0_7] : memref<128x128xf32, #tpu.memory_space<vmem>>, vector<128x128xf32>
    tpu.vector_store %arg4[%c0_6, %c0_7], %7 {strides = array<i32>} : memref<128x128xf32, #tpu.memory_space<vmem>>, vector<128x128xf32>,
    %c0_8 = arith.constant 0 : index
    %c0_9 = arith.constant 0 : index
    %9 = vector.load %arg5[%c0_8, %c0_9] : memref<128x128xf32, #tpu.memory_space<vmem>>, vector<128x128xf32>
    %cst_10 = arith.constant dense<0.000000e+00> : vector<128x128xf32>
    %10 = tpu.matmul %4, %4, %cst_10 {dimension_numbers = #tpu.dot_dimension_numbers<[0], [0], [1], [1], [0, 1, 1, 1], [], []>, precision = #tpu.contract_precision<fp32>} : vector<128x128xf32>, vector<128x128xf32>, vector<128x128xf32> -> vector<128x128xf32>
    %11 = arith.addf %9, %10 : vector<128x128xf32>
    %c0_11 = arith.constant 0 : index
    %c0_12 = arith.constant 0 : index
    %12 = vector.load %arg5[%c0_11, %c0_12] : memref<128x128xf32, #tpu.memory_space<vmem>>, vector<128x128xf32>
    tpu.vector_store %arg5[%c0_11, %c0_12], %11 {strides = array<i32>} : memref<128x128xf32, #tpu.memory_space<vmem>>, vector<128x128xf32>,
    %13 = vector.shape_cast %3 : vector<128x128xf32> to vector<16x8x128xf32>
    %14 = vector.shape_cast %4 : vector<128x128xf32> to vector<16x8x128xf32>
    %15 = arith.subf %13, %14 : vector<16x8x128xf32>
    %c0_13 = arith.constant 0 : index
    %c0_14 = arith.constant 0 : index
    %16 = vector.load %arg6[%c0_13, %c0_14] : memref<24x128xf32, #tpu.memory_space<vmem>>, vector<8x128xf32>
    %cst_15 = arith.constant dense<0.000000e+00> : vector<8x128xf32>
    %17 = vector.multi_reduction <add>, %13, %cst_15 [0] : vector<16x8x128xf32> to vector<8x128xf32>
    %18 = arith.addf %16, %17 : vector<8x128xf32>
    %c0_16 = arith.constant 0 : index
    %c0_17 = arith.constant 0 : index
    %19 = vector.load %arg6[%c0_16, %c0_17] : memref<24x128xf32, #tpu.memory_space<vmem>>, vector<8x128xf32>
    tpu.vector_store %arg6[%c0_16, %c0_17], %18 {strides = array<i32>} : memref<24x128xf32, #tpu.memory_space<vmem>>, vector<8x128xf32>,
    %c8 = arith.constant 8 : index
    %c0_18 = arith.constant 0 : index
    %20 = vector.load %arg6[%c8, %c0_18] : memref<24x128xf32, #tpu.memory_space<vmem>>, vector<8x128xf32>
    %cst_19 = arith.constant dense<0.000000e+00> : vector<8x128xf32>
    %21 = vector.multi_reduction <add>, %14, %cst_19 [0] : vector<16x8x128xf32> to vector<8x128xf32>
    %22 = arith.addf %20, %21 : vector<8x128xf32>
    %c8_20 = arith.constant 8 : index
    %c0_21 = arith.constant 0 : index
    %23 = vector.load %arg6[%c8_20, %c0_21] : memref<24x128xf32, #tpu.memory_space<vmem>>, vector<8x128xf32>
    tpu.vector_store %arg6[%c8_20, %c0_21], %22 {strides = array<i32>} : memref<24x128xf32, #tpu.memory_space<vmem>>, vector<8x128xf32>,
    %c16 = arith.constant 16 : index
    %c0_22 = arith.constant 0 : index
    %24 = vector.load %arg6[%c16, %c0_22] : memref<24x128xf32, #tpu.memory_space<vmem>>, vector<8x128xf32>
    %25 = arith.mulf %15, %15 : vector<16x8x128xf32>
    %cst_23 = arith.constant dense<0.000000e+00> : vector<8x128xf32>
    %26 = vector.multi_reduction <add>, %25, %cst_23 [0] : vector<16x8x128xf32> to vector<8x128xf32>
    %27 = arith.addf %24, %26 : vector<8x128xf32>
    %c16_24 = arith.constant 16 : index
    %c0_25 = arith.constant 0 : index
    %28 = vector.load %arg6[%c16_24, %c0_25] : memref<24x128xf32, #tpu.memory_space<vmem>>, vector<8x128xf32>
    tpu.vector_store %arg6[%c16_24, %c0_25], %27 {strides = array<i32>} : memref<24x128xf32, #tpu.memory_space<vmem>>, vector<8x128xf32>,
    %c0_i32_26 = arith.constant 0 : i32
    %29 = arith.cmpi eq, %arg0, %c0_i32_26 : i32
    %30 = arith.extui %29 : i1 to i32
    %c0_i32_27 = arith.constant 0 : i32
    %31 = arith.cmpi ne, %30, %c0_i32_27 : i32
    scf.if %31 {
      %c0_28 = arith.constant 0 : index
      %c0_29 = arith.constant 0 : index
      %32 = vector.load %arg6[%c0_28, %c0_29] : memref<24x128xf32, #tpu.memory_space<vmem>>, vector<8x128xf32>
      %cst_30 = arith.constant dense<0.000000e+00> : vector<128xf32>
      %33 = vector.multi_reduction <add>, %32, %cst_30 [0] : vector<8x128xf32> to vector<128xf32>
      %34 = vector.shape_cast %33 : vector<128xf32> to vector<1x128xf32>
      %cst_31 = arith.constant 3.125000e-02 : f32
      %35 = vector.broadcast %cst_31 : f32 to vector<1x128xf32>
      %36 = arith.mulf %34, %35 : vector<1x128xf32>
      %c8_32 = arith.constant 8 : index
      %c0_33 = arith.constant 0 : index
      %37 = vector.load %arg6[%c8_32, %c0_33] : memref<24x128xf32, #tpu.memory_space<vmem>>, vector<8x128xf32>
      %cst_34 = arith.constant dense<0.000000e+00> : vector<128xf32>
      %38 = vector.multi_reduction <add>, %37, %cst_34 [0] : vector<8x128xf32> to vector<128xf32>
      %39 = vector.shape_cast %38 : vector<128xf32> to vector<1x128xf32>
      %cst_35 = arith.constant 3.125000e-02 : f32
      %40 = vector.broadcast %cst_35 : f32 to vector<1x128xf32>
      %41 = arith.mulf %39, %40 : vector<1x128xf32>
      %c16_36 = arith.constant 16 : index
      %c0_37 = arith.constant 0 : index
      %42 = vector.load %arg6[%c16_36, %c0_37] : memref<24x128xf32, #tpu.memory_space<vmem>>, vector<8x128xf32>
      %43 = vector.shape_cast %42 : vector<8x128xf32> to vector<1x8x128xf32>
      %cst_38 = arith.constant dense<0.000000e+00> : vector<1xf32>
      %44 = vector.multi_reduction <add>, %43, %cst_38 [1, 2] : vector<1x8x128xf32> to vector<1xf32>
      %45 = vector.shape_cast %44 : vector<1xf32> to vector<1x1x1xf32>
      %46 = vector.extract %45[0, 0, 0] : f32 from vector<1x1x1xf32>
      %cst_39 = arith.constant 2.44140625E-4 : f32
      %47 = arith.mulf %46, %cst_39 : f32
      %48 = tpu.iota {dimensions = array<i32: 0>} : vector<128x128xi32>
      %49 = tpu.iota {dimensions = array<i32: 1>} : vector<128x128xi32>
      %50 = arith.cmpi eq, %48, %49 : vector<128x128xi32>
      %c0_40 = arith.constant 0 : index
      %c0_41 = arith.constant 0 : index
      %51 = vector.load %arg4[%c0_40, %c0_41] : memref<128x128xf32, #tpu.memory_space<vmem>>, vector<128x128xf32>
      %cst_42 = arith.constant 0.000000e+00 : f32
      %52 = vector.broadcast %cst_42 : f32 to vector<128x128xf32>
      %53 = arith.select %50, %51, %52 : vector<128x128xi1>, vector<128x128xf32>
      %cst_43 = arith.constant dense<0.000000e+00> : vector<128xf32>
      %54 = vector.multi_reduction <add>, %53, %cst_43 [0] : vector<128x128xf32> to vector<128xf32>
      %55 = vector.shape_cast %54 : vector<128xf32> to vector<1x128xf32>
      %cst_44 = arith.constant 3.200000e+01 : f32
      %56 = vector.broadcast %cst_44 : f32 to vector<1x128xf32>
      %57 = arith.mulf %56, %36 : vector<1x128xf32>
      %58 = arith.mulf %57, %36 : vector<1x128xf32>
      %59 = arith.subf %55, %58 : vector<1x128xf32>
      %cst_45 = arith.constant 0.0322580636 : f32
      %60 = vector.broadcast %cst_45 : f32 to vector<1x128xf32>
      %61 = arith.mulf %59, %60 : vector<1x128xf32>
      %62 = arith.mulf %51, %51 : vector<128x128xf32>
      %63 = vector.shape_cast %62 : vector<128x128xf32> to vector<1x128x128xf32>
      %cst_46 = arith.constant dense<0.000000e+00> : vector<1xf32>
      %64 = vector.multi_reduction <add>, %63, %cst_46 [1, 2] : vector<1x128x128xf32> to vector<1xf32>
      %65 = vector.shape_cast %64 : vector<1xf32> to vector<1x1x1xf32>
      %66 = vector.extract %65[0, 0, 0] : f32 from vector<1x1x1xf32>
      %cst_47 = arith.constant dense<0.000000e+00> : vector<1x128xf32>
      %67 = tpu.matmul %36, %51, %cst_47 {dimension_numbers = #tpu.dot_dimension_numbers<[1], [0], [0], [1], [0, 0, 1, 1], [], []>, precision = #tpu.contract_precision<fp32>} : vector<1x128xf32>, vector<128x128xf32>, vector<1x128xf32> -> vector<1x128xf32>
      %68 = arith.mulf %67, %36 : vector<1x128xf32>
      %69 = vector.shape_cast %68 : vector<1x128xf32> to vector<1x1x128xf32>
      %cst_48 = arith.constant dense<0.000000e+00> : vector<1xf32>
      %70 = vector.multi_reduction <add>, %69, %cst_48 [1, 2] : vector<1x1x128xf32> to vector<1xf32>
      %71 = vector.shape_cast %70 : vector<1xf32> to vector<1x1x1xf32>
      %72 = vector.extract %71[0, 0, 0] : f32 from vector<1x1x1xf32>
      %73 = arith.mulf %36, %36 : vector<1x128xf32>
      %74 = vector.shape_cast %73 : vector<1x128xf32> to vector<1x1x128xf32>
      %cst_49 = arith.constant dense<0.000000e+00> : vector<1xf32>
      %75 = vector.multi_reduction <add>, %74, %cst_49 [1, 2] : vector<1x1x128xf32> to vector<1xf32>
      %76 = vector.shape_cast %75 : vector<1xf32> to vector<1x1x1xf32>
      %77 = vector.extract %76[0, 0, 0] : f32 from vector<1x1x1xf32>
      %cst_50 = arith.constant 6.400000e+01 : f32
      %78 = arith.mulf %cst_50, %72 : f32
      %79 = arith.subf %66, %78 : f32
      %cst_51 = arith.constant 1.024000e+03 : f32
      %80 = arith.mulf %cst_51, %77 : f32
      %81 = arith.mulf %80, %77 : f32
      %82 = arith.addf %79, %81 : f32
      %cst_52 = arith.constant 0.00104058278 : f32
      %83 = arith.mulf %82, %cst_52 : f32
      %c0_53 = arith.constant 0 : index
      %c0_54 = arith.constant 0 : index
      %84 = vector.load %arg5[%c0_53, %c0_54] : memref<128x128xf32, #tpu.memory_space<vmem>>, vector<128x128xf32>
      %cst_55 = arith.constant 0.000000e+00 : f32
      %85 = vector.broadcast %cst_55 : f32 to vector<128x128xf32>
      %86 = arith.select %50, %84, %85 : vector<128x128xi1>, vector<128x128xf32>
      %cst_56 = arith.constant dense<0.000000e+00> : vector<128xf32>
      %87 = vector.multi_reduction <add>, %86, %cst_56 [0] : vector<128x128xf32> to vector<128xf32>
      %88 = vector.shape_cast %87 : vector<128xf32> to vector<1x128xf32>
      %cst_57 = arith.constant 3.200000e+01 : f32
      %89 = vector.broadcast %cst_57 : f32 to vector<1x128xf32>
      %90 = arith.mulf %89, %41 : vector<1x128xf32>
      %91 = arith.mulf %90, %41 : vector<1x128xf32>
      %92 = arith.subf %88, %91 : vector<1x128xf32>
      %cst_58 = arith.constant 0.0322580636 : f32
      %93 = vector.broadcast %cst_58 : f32 to vector<1x128xf32>
      %94 = arith.mulf %92, %93 : vector<1x128xf32>
      %95 = arith.mulf %84, %84 : vector<128x128xf32>
      %96 = vector.shape_cast %95 : vector<128x128xf32> to vector<1x128x128xf32>
      %cst_59 = arith.constant dense<0.000000e+00> : vector<1xf32>
      %97 = vector.multi_reduction <add>, %96, %cst_59 [1, 2] : vector<1x128x128xf32> to vector<1xf32>
      %98 = vector.shape_cast %97 : vector<1xf32> to vector<1x1x1xf32>
      %99 = vector.extract %98[0, 0, 0] : f32 from vector<1x1x1xf32>
      %cst_60 = arith.constant dense<0.000000e+00> : vector<1x128xf32>
      %100 = tpu.matmul %41, %84, %cst_60 {dimension_numbers = #tpu.dot_dimension_numbers<[1], [0], [0], [1], [0, 0, 1, 1], [], []>, precision = #tpu.contract_precision<fp32>} : vector<1x128xf32>, vector<128x128xf32>, vector<1x128xf32> -> vector<1x128xf32>
      %101 = arith.mulf %100, %41 : vector<1x128xf32>
      %102 = vector.shape_cast %101 : vector<1x128xf32> to vector<1x1x128xf32>
      %cst_61 = arith.constant dense<0.000000e+00> : vector<1xf32>
      %103 = vector.multi_reduction <add>, %102, %cst_61 [1, 2] : vector<1x1x128xf32> to vector<1xf32>
      %104 = vector.shape_cast %103 : vector<1xf32> to vector<1x1x1xf32>
      %105 = vector.extract %104[0, 0, 0] : f32 from vector<1x1x1xf32>
      %106 = arith.mulf %41, %41 : vector<1x128xf32>
      %107 = vector.shape_cast %106 : vector<1x128xf32> to vector<1x1x128xf32>
      %cst_62 = arith.constant dense<0.000000e+00> : vector<1xf32>
      %108 = vector.multi_reduction <add>, %107, %cst_62 [1, 2] : vector<1x1x128xf32> to vector<1xf32>
      %109 = vector.shape_cast %108 : vector<1xf32> to vector<1x1x1xf32>
      %110 = vector.extract %109[0, 0, 0] : f32 from vector<1x1x1xf32>
      %cst_63 = arith.constant 6.400000e+01 : f32
      %111 = arith.mulf %cst_63, %105 : f32
      %112 = arith.subf %99, %111 : f32
      %cst_64 = arith.constant 1.024000e+03 : f32
      %113 = arith.mulf %cst_64, %110 : f32
      %114 = arith.mulf %113, %110 : f32
      %115 = arith.addf %112, %114 : f32
      %cst_65 = arith.constant 0.00104058278 : f32
      %116 = arith.mulf %115, %cst_65 : f32
      %cst_66 = arith.constant 9.99999974E-5 : f32
      %117 = vector.broadcast %cst_66 : f32 to vector<1x128xf32>
      %118 = arith.addf %61, %117 : vector<1x128xf32>
      %119 = math.sqrt %118 : vector<1x128xf32>
      %cst_67 = arith.constant 9.99999974E-5 : f32
      %120 = vector.broadcast %cst_67 : f32 to vector<1x128xf32>
      %121 = arith.addf %94, %120 : vector<1x128xf32>
      %122 = math.sqrt %121 : vector<1x128xf32>
      %cst_68 = arith.constant 1.000000e+00 : f32
      %123 = vector.broadcast %cst_68 : f32 to vector<1x128xf32>
      %124 = arith.subf %123, %119 : vector<1x128xf32>
      %cst_69 = arith.constant 0.000000e+00 : f32
      %125 = vector.broadcast %cst_69 : f32 to vector<1x128xf32>
      %126 = arith.maximumf %124, %125 : vector<1x128xf32>
      %127 = vector.shape_cast %126 : vector<1x128xf32> to vector<1x1x128xf32>
      %cst_70 = arith.constant dense<0.000000e+00> : vector<1xf32>
      %128 = vector.multi_reduction <add>, %127, %cst_70 [1, 2] : vector<1x1x128xf32> to vector<1xf32>
      %129 = vector.shape_cast %128 : vector<1xf32> to vector<1x1x1xf32>
      %130 = vector.extract %129[0, 0, 0] : f32 from vector<1x1x1xf32>
      %cst_71 = arith.constant 1.000000e+00 : f32
      %131 = vector.broadcast %cst_71 : f32 to vector<1x128xf32>
      %132 = arith.subf %131, %122 : vector<1x128xf32>
      %cst_72 = arith.constant 0.000000e+00 : f32
      %133 = vector.broadcast %cst_72 : f32 to vector<1x128xf32>
      %134 = arith.maximumf %132, %133 : vector<1x128xf32>
      %135 = vector.shape_cast %134 : vector<1x128xf32> to vector<1x1x128xf32>
      %cst_73 = arith.constant dense<0.000000e+00> : vector<1xf32>
      %136 = vector.multi_reduction <add>, %135, %cst_73 [1, 2] : vector<1x1x128xf32> to vector<1xf32>
      %137 = vector.shape_cast %136 : vector<1xf32> to vector<1x1x1xf32>
      %138 = vector.extract %137[0, 0, 0] : f32 from vector<1x1x1xf32>
      %139 = arith.addf %130, %138 : f32
      %cst_74 = arith.constant 1.280000e+02 : f32
      %140 = arith.divf %139, %cst_74 : f32
      %141 = arith.mulf %61, %61 : vector<1x128xf32>
      %142 = vector.shape_cast %141 : vector<1x128xf32> to vector<1x1x128xf32>
      %cst_75 = arith.constant dense<0.000000e+00> : vector<1xf32>
      %143 = vector.multi_reduction <add>, %142, %cst_75 [1, 2] : vector<1x1x128xf32> to vector<1xf32>
      %144 = vector.shape_cast %143 : vector<1xf32> to vector<1x1x1xf32>
      %145 = vector.extract %144[0, 0, 0] : f32 from vector<1x1x1xf32>
      %146 = arith.subf %83, %145 : f32
      %147 = arith.mulf %94, %94 : vector<1x128xf32>
      %148 = vector.shape_cast %147 : vector<1x128xf32> to vector<1x1x128xf32>
      %cst_76 = arith.constant dense<0.000000e+00> : vector<1xf32>
      %149 = vector.multi_reduction <add>, %148, %cst_76 [1, 2] : vector<1x1x128xf32> to vector<1xf32>
      %150 = vector.shape_cast %149 : vector<1xf32> to vector<1x1x1xf32>
      %151 = vector.extract %150[0, 0, 0] : f32 from vector<1x1x1xf32>
      %152 = arith.subf %116, %151 : f32
      %153 = arith.addf %146, %152 : f32
      %cst_77 = arith.constant 1.280000e+02 : f32
      %154 = arith.divf %153, %cst_77 : f32
      %cst_78 = arith.constant 2.500000e+01 : f32
      %155 = arith.mulf %cst_78, %47 : f32
      %cst_79 = arith.constant 2.500000e+01 : f32
      %156 = arith.mulf %cst_79, %140 : f32
      %157 = arith.addf %155, %156 : f32
      %cst_80 = arith.constant 1.000000e+00 : f32
      %158 = arith.mulf %cst_80, %154 : f32
      %159 = arith.addf %157, %158 : f32
      %c0_81 = arith.constant 0 : index
      %c0_82 = arith.constant 0 : index
      %160 = memref.load %arg3[%c0_81, %c0_82] : memref<1x1xf32, #tpu.memory_space<smem>>
      memref.store %159, %arg3[%c0_81, %c0_82] : memref<1x1xf32, #tpu.memory_space<smem>>
    } else {
    }
    return
  }
  func.func @transform_0(%arg0: i32) -> (i32, i32) {
    %c0_i32 = arith.constant 0 : i32
    %c0_i32_0 = arith.constant 0 : i32
    return %arg0, %c0_i32 : i32, i32
  }
  func.func @transform_1(%arg0: i32) -> (i32, i32) {
    %c0_i32 = arith.constant 0 : i32
    %c0_i32_0 = arith.constant 0 : i32
    return %arg0, %c0_i32 : i32, i32
  }
  func.func @transform_2(%arg0: i32) -> (i32, i32) {
    %c0_i32 = arith.constant 0 : i32
    %c0_i32_0 = arith.constant 0 : i32
    %c0_i32_1 = arith.constant 0 : i32
    return %c0_i32, %c0_i32_0 : i32, i32
  }
}

</mosaic_0001>

<bundles_post_ra>
// kernel: tpu_custom_call.1
= control target key start
LH: loop header
LB: loop body
LE: loop exit
PB: predicated region body
PF: predicated region fallthrough
CT: control target
= control target key end

     0   :  { %7 = vsyncpa [#allocation6], 0  ;;  %s9733_s0 = inlined_call_operand.hbm [shape: f32[128,128], index: 0, kind: input, shape index: {}]   ;;  %s9734_s1 = inlined_call_operand.hbm [shape: f32[128,128], index: 1, kind: input, shape index: {}]   ;;  %s9735_s2 = inlined_call_operand.hbm [shape: f32[1,1], index: 2, kind: output, shape index: {}]  }
   0x1   :  { %8 = vsyncpa [#allocation9], 0 }
   0x2   :  { %9 = vsyncpa [#allocation7], 0  ;;  %s7256_s9 = smov [#allocation5]   ;;  %s7196_s13 = scalar_lea.hbm %s9733_s0, 2048 }
   0x3   :  { %s15_s10 = sshll.u32 %s7256_s9, 4  ;;  %p7197_p0 = scmp.ne.s32.totalorder %s9733_s0, %s7196_s13  ;;  %s16_s10 = int_to_ptr.vmem [resolvable:$true] %s15_s10 }
   0x4   :  { %p7200_p1 = scmp.lt.u32.totalorder %s7196_s13, %s9733_s0 }
   0x6   :  { %p7202_p2 = pnand %p7200_p1, %p7197_p0 }
   0x8   :  { %7205 = shalt.err (!%p7202_p2)
}
   0x9   :  { %s7206_s18 = scalar_lea.vmem %s16_s10, 2048  ;;  %p7211_p4 = scmp.lt.s32.totalorder %s16_s10, %s16_s10 }
   0xa   :  { %p7207_p3 = scmp.ne.s32.totalorder %s16_s10, %s7206_s18  ;;  %p7212_p5 = scmp.lt.s32.totalorder %s7206_s18, %s7206_s18 }
   0xc   :  { %p7213_p6 = por %p7212_p5, %p7211_p4 }
   0xe   :  { %p7214_p7 = pnand %p7213_p6, %p7207_p3 }
  0x10   :  { %7217 = shalt.err (!%p7214_p7)
}
  0x11   :  { %s7257_s19 = smov 128   ;;  %s7258_s20 = smov 8  }
  0x12   :  { %21 = dma.hbm_to_vmem [thread:$0]  %s9733_s0, 2048, %s16_s10, [#allocation6], %s7257_s19, %s7257_s19, %s7258_s20  }
  0x13   :  { %s7259_s23 = smov [#allocation8]   ;;  %s7218_s27 = scalar_lea.hbm %s9734_s1, 2048 }
  0x14   :  { %s27_s24 = sshll.u32 %s7259_s23, 4  ;;  %p7219_p8 = scmp.ne.s32.totalorder %s9734_s1, %s7218_s27  ;;  %s28_s24 = int_to_ptr.vmem [resolvable:$true] %s27_s24 }
  0x15   :  { %p7222_p9 = scmp.lt.u32.totalorder %s7218_s27, %s9734_s1 }
  0x17   :  { %p7224_p10 = pnand %p7222_p9, %p7219_p8 }
  0x19   :  { %7227 = shalt.err (!%p7224_p10)
}
  0x1a   :  { %s7228_s4 = scalar_lea.vmem %s28_s24, 2048  ;;  %p7233_p12 = scmp.lt.s32.totalorder %s28_s24, %s28_s24 }
  0x1b   :  { %p7229_p11 = scmp.ne.s32.totalorder %s28_s24, %s7228_s4  ;;  %p7234_p13 = scmp.lt.s32.totalorder %s7228_s4, %s7228_s4 }
  0x1d   :  { %p7235_p0 = por %p7234_p13, %p7233_p12 }
  0x1f   :  { %p7236_p1 = pnand %p7235_p0, %p7229_p11 }
  0x21   :  { %7239 = shalt.err (!%p7236_p1)
}
  0x22   :  { %33 = dma.hbm_to_vmem [thread:$0]  %s9734_s1, 2048, %s28_s24, [#allocation9], %s7257_s19, %s7257_s19, %s7258_s20  }
  0x23   :  { %7250 = dma.done.wait [#allocation6], 2048  }
  0x24   :  { %7251 = vsyncadd [#allocation6], 4294965248 }
  0x25   :  { %7252 = dma.done.wait [#allocation9], 2048  }
  0x26   :  { %7253 = vsyncadd [#allocation9], 4294965248  ;;  %v7303_v0 = vld [vmem:[#allocation8] sm:$0xff]  ;;  %v7307_v2 = vld [vmem:[#allocation8 + $0x8] sm:$0xff]  ;;  %vm3733_vm0 = vcmask 1040384   ;;  %vm7261_vm1 = vmmov 0  }
  0x27   :  { %v7305_v1 = vld [vmem:[#allocation5] sm:$0xff]  ;;  %1493 = vxpose.xlu1.b32.start [1/16] %v7303_v0, 128  ;;  %v1526_v3 = vand.u32 4294901760, %v7303_v0  ;;  %v1529_v6 = vand.u32 4294901760, %v7307_v2  ;;  %v7316_v7 = vld [vmem:[#allocation5 + $0x8] sm:$0xff]  ;;  %v2878_v8 = vadd.f32 %v7307_v2, %v7303_v0  ;;  %v7325_v12 = vld [vmem:[#allocation8 + $0x10] sm:$0xff] }
  0x28   :  { %127 = vxpose.xlu0.b32.start [1/16] %v7305_v1, 128  ;;  %v160_v4 = vand.u32 4294901760, %v7305_v1  ;;  %v2843_v5 = vsub.f32 %v7305_v1, %v7303_v0  ;;  %v163_v9 = vand.u32 4294901760, %v7316_v7  ;;  %v2844_v10 = vsub.f32 %v7316_v7, %v7307_v2  ;;  %v7327_v13 = vld [vmem:[#allocation5 + $0x10] sm:$0xff]  ;;  %v7346_v22 = vld [vmem:[#allocation8 + $0x18] sm:$0xff]  ;;  %v7357_v28 = vld [vmem:[#allocation8 + $0x20] sm:$0xff] }
  0x29   :  { %v2860_v11 = vadd.f32 %v7316_v7, %v7305_v1  ;;  %v7333_v15 = vpack.c.bf16 %v1529_v6, %v1526_v3  ;;  %v9753_v16 = vand.u32 4294901760, %v7325_v12  ;;  %v166_v17 = vand.u32 4294901760, %v7327_v13  ;;  %v7348_v23 = vld [vmem:[#allocation5 + $0x18] sm:$0xff]  ;;  %v7376_v37 = vld [vmem:[#allocation5 + $0x20] sm:$0xff]  ;;  %v7383_v42 = vld [vmem:[#allocation8 + $0x28] sm:$0xff] }
  0x2a   :  { %v2896_v14 = vmul.f32 %v2843_v5, %v2843_v5  ;;  %v2897_v18 = vmul.f32 %v2844_v10, %v2844_v10  ;;  %v7341_v19 = vpack.c.bf16 %v163_v9, %v160_v4  ;;  %v2879_v20 = vadd.f32 %v2878_v8, %v7325_v12  ;;  %v7385_v43 = vld [vmem:[#allocation5 + $0x28] sm:$0xff]  ;;  %v7395_v48 = vld [vmem:[#allocation8 + $0x30] sm:$0xff]  ;;  %v7421_v62 = vld [vmem:[#allocation8 + $0x38] sm:$0xff] }
  0x2b   :  { %10041 = vst [vmem:[#allocation14_spill] sm:$0xff] %v7333_v15  ;;  %v2845_v21 = vsub.f32 %v7327_v13, %v7325_v12  ;;  %1494 = vxpose.xlu1.b32.cont [2/16] %v7307_v2, 128  ;;  %v2861_v24 = vadd.f32 %v2860_v11, %v7327_v13  ;;  %v9752_v25 = vand.u32 4294901760, %v7346_v22  ;;  %v9754_v26 = vand.u32 4294901760, %v7348_v23  ;;  %6493 = vmatprep.subr.bf16.mxu1 %v7333_v15  ;;  %v7414_v57 = vld [vmem:[#allocation5 + $0x30] sm:$0xff]  ;;  %v7423_v63 = vld [vmem:[#allocation5 + $0x38] sm:$0xff] }
  0x2c   :  { %10042 = vst [vmem:[#allocation15_spill] sm:$0xff] %v7341_v19  ;;  %128 = vxpose.xlu0.b32.cont [2/16] %v7316_v7, 128  ;;  %v2846_v27 = vsub.f32 %v7348_v23, %v7346_v22  ;;  %v2912_v29 = vadd.f32 %v2897_v18, %v2896_v14  ;;  %v2880_v31 = vadd.f32 %v2879_v20, %v7346_v22  ;;  %v9745_v32 = vand.u32 4294901760, %v7357_v28  ;;  %v7433_v14 = vld [vmem:[#allocation8 + $0x40] sm:$0xff] }
  0x2d   :  { %v2898_v30 = vmul.f32 %v2845_v21, %v2845_v21  ;;  %6301 = vmatprep.subr.bf16.mxu0 %v7341_v19  ;;  %v7367_v33 = vpack.c.bf16 %v9752_v25, %v9753_v16  ;;  %v7373_v34 = vpack.c.bf16 %v9754_v26, %v166_v17  ;;  %v2862_v36 = vadd.f32 %v2861_v24, %v7348_v23 }
  0x2e   :  { %v2899_v35 = vmul.f32 %v2846_v27, %v2846_v27  ;;  %6303 = vmatpush3.bf16.msra.mxu0 %v7341_v19  ;;  %v2881_v39 = vadd.f32 %v2880_v31, %v7357_v28  ;;  %v9747_v40 = vand.u32 4294901760, %v7376_v37  ;;  %v2847_v41 = vsub.f32 %v7376_v37, %v7357_v28  ;;  %6495 = vmatpush3.bf16.msra.mxu1 %v7333_v15 }
  0x2f   :  { %10043 = vst [vmem:[#allocation16_spill] sm:$0xff] %v7367_v33  ;;  %10044 = vst [vmem:[#allocation17_spill] sm:$0xff] %v7373_v34  ;;  %v2913_v38 = vadd.f32 %v2912_v29, %v2898_v30  ;;  %1495 = vxpose.xlu1.b32.cont [3/16] %v7325_v12, 128  ;;  %v2863_v44 = vadd.f32 %v2862_v36, %v7376_v37  ;;  %v9744_v45 = vand.u32 4294901760, %v7383_v42  ;;  %v9746_v46 = vand.u32 4294901760, %v7385_v43 }
  0x30   :  { %129 = vxpose.xlu0.b32.cont [3/16] %v7327_v13, 128  ;;  %v2848_v47 = vsub.f32 %v7385_v43, %v7383_v42  ;;  %v2900_v50 = vmul.f32 %v2847_v41, %v2847_v41  ;;  %v2882_v51 = vadd.f32 %v2881_v39, %v7383_v42  ;;  %v9741_v52 = vand.u32 4294901760, %v7395_v48  ;;  %6305 = vmatprep.subr.bf16.mxu0 %v7373_v34 }
  0x31   :  { %v2914_v49 = vadd.f32 %v2913_v38, %v2899_v35  ;;  %6497 = vmatprep.subr.bf16.mxu1 %v7367_v33  ;;  %v7405_v53 = vpack.c.bf16 %v9744_v45, %v9745_v32  ;;  %v7411_v54 = vpack.c.bf16 %v9746_v46, %v9747_v40  ;;  %v2864_v56 = vadd.f32 %v2863_v44, %v7385_v43  ;;  %v7452_v35 = vld [vmem:[#allocation5 + $0x40] sm:$0xff]  ;;  %v7459_v44 = vld [vmem:[#allocation8 + $0x48] sm:$0xff]  ;;  %v7543_v32 = vld [vmem:[#allocation5 + $0x70] sm:$0xff] }
  0x32   :  { %v2901_v55 = vmul.f32 %v2848_v47, %v2848_v47  ;;  %6307 = vmatpush3.bf16.msra.mxu0 %v7373_v34  ;;  %v2883_v59 = vadd.f32 %v2882_v51, %v7395_v48  ;;  %v9743_v60 = vand.u32 4294901760, %v7414_v57  ;;  %v2849_v61 = vsub.f32 %v7414_v57, %v7395_v48  ;;  %6499 = vmatpush3.bf16.msra.mxu1 %v7367_v33  ;;  %v7461_v47 = vld [vmem:[#allocation5 + $0x48] sm:$0xff]  ;;  %v7547_v40 = vld [vmem:[#allocation5 + $0x78] sm:$0xff] }
  0x33   :  { %10045 = vst [vmem:[#allocation18_spill] sm:$0xff] %v7405_v53  ;;  %10046 = vst [vmem:[#allocation19_spill] sm:$0xff] %v7411_v54  ;;  %v2915_v58 = vadd.f32 %v2914_v49, %v2900_v50  ;;  %1496 = vxpose.xlu1.b32.cont [4/16] %v7346_v22, 128  ;;  %v2865_v5 = vadd.f32 %v2864_v56, %v7414_v57  ;;  %v9740_v8 = vand.u32 4294901760, %v7421_v62  ;;  %v9742_v10 = vand.u32 4294901760, %v7423_v63 }
  0x34   :  { %130 = vxpose.xlu0.b32.cont [4/16] %v7348_v23, 128  ;;  %v2850_v11 = vsub.f32 %v7423_v63, %v7421_v62  ;;  %v2902_v20 = vmul.f32 %v2849_v61, %v2849_v61  ;;  %v2884_v21 = vadd.f32 %v2883_v59, %v7421_v62  ;;  %v9737_v24 = vand.u32 4294901760, %v7433_v14  ;;  %6309 = vmatprep.subr.bf16.mxu0 %v7411_v54  ;;  %v7474_v61 = vld [vmem:[#allocation8 + $0x50] sm:$0xff] }
  0x35   :  { %v2916_v18 = vadd.f32 %v2915_v58, %v2901_v55  ;;  %6501 = vmatprep.subr.bf16.mxu1 %v7405_v53  ;;  %v7443_v27 = vpack.c.bf16 %v9740_v8, %v9741_v52  ;;  %v7449_v29 = vpack.c.bf16 %v9742_v10, %v9743_v60  ;;  %v2866_v31 = vadd.f32 %v2865_v5, %v7423_v63  ;;  %v7526_v10 = vld [vmem:[#allocation5 + $0x68] sm:$0xff] }
  0x36   :  { %v2903_v30 = vmul.f32 %v2850_v11, %v2850_v11  ;;  %6311 = vmatpush3.bf16.msra.mxu0 %v7411_v54  ;;  %v2885_v38 = vadd.f32 %v2884_v21, %v7433_v14  ;;  %v9739_v39 = vand.u32 4294901760, %v7452_v35  ;;  %v2851_v41 = vsub.f32 %v7452_v35, %v7433_v14  ;;  %6503 = vmatpush3.bf16.msra.mxu1 %v7405_v53  ;;  %v7492_v21 = vld [vmem:[#allocation5 + $0x50] sm:$0xff] }
  0x37   :  { %10047 = vst [vmem:[#allocation20_spill] sm:$0xff] %v7443_v27  ;;  %10048 = vst [vmem:[#allocation21_spill] sm:$0xff] %v7449_v29  ;;  %v2917_v36 = vadd.f32 %v2916_v18, %v2902_v20  ;;  %1497 = vxpose.xlu1.b32.cont [5/16] %v7357_v28, 128  ;;  %v2867_v49 = vadd.f32 %v2866_v31, %v7452_v35  ;;  %v9736_v50 = vand.u32 4294901760, %v7459_v44  ;;  %v9738_v51 = vand.u32 4294901760, %v7461_v47 }
  0x38   :  { %131 = vxpose.xlu0.b32.cont [5/16] %v7376_v37, 128  ;;  %v7471_v55 = vsub.f32 %v7461_v47, %v7459_v44  ;;  %v2904_v58 = vmul.f32 %v2851_v41, %v2851_v41  ;;  %v2886_v59 = vadd.f32 %v2885_v38, %v7459_v44  ;;  %6313 = vmatprep.subr.bf16.mxu0 %v7449_v29  ;;  %v9749_v20 = vand.u32 4294901760, %v7474_v61  ;;  %v7505_v41 = vld [vmem:[#allocation8 + $0x58] sm:$0xff] }
  0x39   :  { %v2918_v56 = vadd.f32 %v2917_v36, %v2903_v30  ;;  %6505 = vmatprep.subr.bf16.mxu1 %v7443_v27  ;;  %v7482_v5 = vpack.c.bf16 %v9736_v50, %v9737_v24  ;;  %v7488_v11 = vpack.c.bf16 %v9738_v51, %v9739_v39  ;;  %v2868_v18 = vadd.f32 %v2867_v49, %v7461_v47  ;;  %v7507_v49 = vld [vmem:[#allocation5 + $0x58] sm:$0xff]  ;;  %v7517_v50 = vld [vmem:[#allocation8 + $0x60] sm:$0xff]  ;;  %v7521_v51 = vld [vmem:[#allocation8 + $0x68] sm:$0xff] }
  0x3a   :  { %10049 = vst [vmem:[#allocation22_spill] sm:$0xff] %v7471_v55  ;;  %6315 = vmatpush3.bf16.msra.mxu0 %v7449_v29  ;;  %v7498_v31 = vadd.f32 %v2886_v59, %v7474_v61  ;;  %v9751_v36 = vand.u32 4294901760, %v7492_v21  ;;  %v7503_v38 = vsub.f32 %v7492_v21, %v7474_v61  ;;  %6507 = vmatpush3.bf16.msra.mxu1 %v7443_v27  ;;  %v9750_v59 = vand.u32 4294901760, %v7507_v49  ;;  %v7519_v24 = vld [vmem:[#allocation5 + $0x60] sm:$0xff] }
  0x3b   :  { %10050 = vst [vmem:[#allocation23_spill] sm:$0xff] %v7482_v5  ;;  %10051 = vst [vmem:[#allocation24_spill] sm:$0xff] %v7488_v11  ;;  %v7495_v30 = vadd.f32 %v2918_v56, %v2904_v58  ;;  %1498 = vxpose.xlu1.b32.cont [6/16] %v7383_v42, 128  ;;  %v7513_v56 = vadd.f32 %v2868_v18, %v7492_v21  ;;  %v9748_v58 = vand.u32 4294901760, %v7505_v41  ;;  %v9761_v39 = vand.u32 4294901760, %v7517_v50 }
  0x3c   :  { %10053 = vst [vmem:[#allocation26_spill] sm:$0xff] %v7498_v31  ;;  %10054 = vst [vmem:[#allocation27_spill] sm:$0xff] %v7503_v38  ;;  %132 = vxpose.xlu0.b32.cont [6/16] %v7385_v43, 128  ;;  %v9762_v8 = vand.u32 4294901760, %v7519_v24  ;;  %v9756_v52 = vand.u32 4294901760, %v7521_v51  ;;  %6317 = vmatprep.subr.bf16.mxu0 %v7488_v11  ;;  %v7540_v60 = vpack.c.bf16 %v9750_v59, %v9751_v36  ;;  %v9755_v45 = vand.u32 4294901760, %v7526_v10  ;;  %v7560_v59 = vld [vmem:[#allocation8 + $0x78] sm:$0xff] }
  0x3d   :  { %10052 = vst [vmem:[#allocation25_spill] sm:$0xff] %v7495_v30  ;;  %10055 = vst [vmem:[#allocation28_spill] sm:$0xff] %v7513_v56  ;;  %6509 = vmatprep.subr.bf16.mxu1 %v7482_v5  ;;  %v7534_v18 = vpack.c.bf16 %v9748_v58, %v9749_v20  ;;  %v9760_v46 = vand.u32 4294901760, %v7543_v32  ;;  %v7558_v20 = vld [vmem:[#allocation8 + $0x70] sm:$0xff]  ;;  %v9759_v36 = vand.u32 4294901760, %v7547_v40  ;;  %v9757_v26 = vand.u32 4294901760, %v7560_v59 }
  0x3e   :  { %10057 = vst [vmem:[#allocation30_spill] sm:$0xff] %v7540_v60  ;;  %6319 = vmatpush3.bf16.msra.mxu0 %v7488_v11  ;;  %6511 = vmatpush3.bf16.msra.mxu1 %v7482_v5  ;;  %v7556_v58 = vpack.c.bf16 %v9755_v45, %v9762_v8  ;;  %v7567_v25 = vpack.c.bf16 %v9756_v52, %v9761_v39  ;;  %v9758_v16 = vand.u32 4294901760, %v7558_v20  ;;  %v10067_v8 = vand.u32 4294901760, %v7348_v23 }
  0x3f   :  { %10056 = vst [vmem:[#allocation29_spill] sm:$0xff] %v7534_v18  ;;  %1499 = vxpose.xlu1.b32.cont [7/16] %v7395_v48, 128  ;;  %6321 = vmatprep.subr.bf16.mxu0 %v7540_v60  ;;  %v7578_v45 = vpack.c.bf16 %v9759_v36, %v9760_v46  ;;  %v7611_v36 = vsub.f32 %v7303_v0, %v1526_v3  ;;  %v10084_v31 = vand.u32 4294901760, %v7423_v63 }
  0x40   :  { %133 = vxpose.xlu0.b32.cont [7/16] %v7414_v57, 128  ;;  %10058 = vst [vmem:[#allocation31_spill] sm:$0xff] %v7556_v58  ;;  %10059 = vst [vmem:[#allocation32_spill] sm:$0xff] %v7567_v25  ;;  %6513 = vmatprep.subr.bf16.mxu1 %v7534_v18  ;;  %v7588_v52 = vpack.c.bf16 %v9757_v26, %v9758_v16  ;;  %v7601_v26 = vsub.f32 %v7305_v1, %v160_v4 }
  0x41   :  { %10060 = vst [vmem:[#allocation33_spill] sm:$0xff] %v7578_v45  ;;  %v7606_v16 = vsub.f32 %v7316_v7, %v163_v9  ;;  %10064 = vst [vmem:[#allocation37_spill] sm:$0xff] %v7611_v36  ;;  %v7617_v46 = vsub.f32 %v7307_v2, %v1529_v6  ;;  %v9765_v7 = vand.u32 4294901760, %v7611_v36  ;;  %v7640_v39 = vsub.f32 %v7327_v13, %v166_v17 }
  0x42   :  { %6323 = vmatpush3.bf16.msra.mxu0 %v7540_v60  ;;  %6515 = vmatpush3.bf16.msra.mxu1 %v7534_v18  ;;  %10061 = vst [vmem:[#allocation34_spill] sm:$0xff] %v7588_v52  ;;  %10062 = vst [vmem:[#allocation35_spill] sm:$0xff] %v7601_v26  ;;  %v9763_v1 = vand.u32 4294901760, %v7601_v26  ;;  %v10069_v13 = vand.u32 4294901760, %v7325_v12 }
  0x43   :  { %6325 = vmatprep.subr.bf16.mxu0 %v7556_v58  ;;  %1500 = vxpose.xlu1.b32.cont [8/16] %v7421_v62, 128  ;;  %10063 = vst [vmem:[#allocation36_spill] sm:$0xff] %v7606_v16  ;;  %10065 = vst [vmem:[#allocation38_spill] sm:$0xff] %v7617_v46  ;;  %v9764_v4 = vand.u32 4294901760, %v7606_v16  ;;  %v9766_v0 = vand.u32 4294901760, %v7617_v46  ;;  %v1770_v6 = vsub.f32 %v7611_v36, %v9765_v7 }
  0x44   :  { %134 = vxpose.xlu0.b32.cont [8/16] %v7423_v63, 128  ;;  %6517 = vmatprep.subr.bf16.mxu1 %v7567_v25  ;;  %v404_v3 = vsub.f32 %v7601_v26, %v9763_v1  ;;  %10066 = vst [vmem:[#allocation39_spill] sm:$0xff] %v7640_v39  ;;  %v7645_v1 = vsub.f32 %v7348_v23, %v10067_v8  ;;  %v10071_v23 = vand.u32 4294901760, %v7346_v22 }
  0x45   :  { %v411_v2 = vsub.f32 %v7606_v16, %v9764_v4  ;;  %v1777_v9 = vsub.f32 %v7617_v46, %v9766_v0  ;;  %v1771_v30 = vand.u32 4294901760, %v1770_v6  ;;  %v9768_v0 = vand.u32 4294901760, %v7640_v39 }
  0x46   :  { %6327 = vmatpush3.bf16.msra.mxu0 %v7556_v58  ;;  %6519 = vmatpush3.bf16.msra.mxu1 %v7567_v25  ;;  %10068 = vst [vmem:[#allocation40_spill] sm:$0xff] %v7645_v1  ;;  %v405_v4 = vand.u32 4294901760, %v404_v3  ;;  %v9767_v55 = vand.u32 4294901760, %v7645_v1  ;;  %v7656_v17 = vsub.f32 %v7325_v12, %v10069_v13  ;;  %v7661_v8 = vsub.f32 %v7346_v22, %v10071_v23 }
  0x47   :  { %6329 = vmatprep.subr.bf16.mxu0 %v7578_v45  ;;  %1501 = vxpose.xlu1.b32.cont [9/16] %v7433_v14, 128  ;;  %v412_v7 = vand.u32 4294901760, %v411_v2  ;;  %v1778_v38 = vand.u32 4294901760, %v1777_v9  ;;  %v418_v2 = vsub.f32 %v7640_v39, %v9768_v0  ;;  %v10073_v22 = vand.u32 4294901760, %v7376_v37 }
  0x48   :  { %135 = vxpose.xlu0.b32.cont [9/16] %v7452_v35, 128  ;;  %6521 = vmatprep.subr.bf16.mxu1 %v7588_v52  ;;  %10070 = vst [vmem:[#allocation41_spill] sm:$0xff] %v7656_v17  ;;  %10072 = vst [vmem:[#allocation42_spill] sm:$0xff] %v7661_v8  ;;  %v9769_v12 = vand.u32 4294901760, %v7656_v17  ;;  %v10075_v9 = vand.u32 4294901760, %v7385_v43  ;;  %v10077_v23 = vand.u32 4294901760, %v7357_v28  ;;  %v10081_v0 = vand.u32 4294901760, %v7414_v57 }
  0x49   :  { %v7651_v56 = vpack.c.bf16 %v412_v7, %v405_v4  ;;  %v7663_v3 = vpack.c.bf16 %v1778_v38, %v1771_v30  ;;  %v425_v4 = vsub.f32 %v7645_v1, %v9767_v55  ;;  %v9770_v7 = vand.u32 4294901760, %v7661_v8 }
  0x4a   :  { %6331 = vmatpush3.bf16.msra.mxu0 %v7578_v45  ;;  %6523 = vmatpush3.bf16.msra.mxu1 %v7588_v52  ;;  %v7678_v30 = vsub.f32 %v7376_v37, %v10073_v22  ;;  %v419_v38 = vand.u32 4294901760, %v418_v2  ;;  %v7685_v13 = vsub.f32 %v7385_v43, %v10075_v9  ;;  %v7690_v55 = vsub.f32 %v7357_v28, %v10077_v23 }
  0x4b   :  { %1502 = vxpose.xlu1.b32.cont [10/16] %v7459_v44, 128  ;;  %6333 = vmatprep.subr.bf16.mxu0 %v7651_v56  ;;  %v426_v6 = vand.u32 4294901760, %v425_v4  ;;  %v1784_v37 = vsub.f32 %v7656_v17, %v9769_v12  ;;  %v1791_v22 = vsub.f32 %v7661_v8, %v9770_v7  ;;  %v10079_v4 = vand.u32 4294901760, %v7383_v42 }
  0x4c   :  { %136 = vxpose.xlu0.b32.cont [10/16] %v7461_v47, 128  ;;  %10074 = vst [vmem:[#allocation43_spill] sm:$0xff] %v7678_v30  ;;  %6525 = vmatprep.subr.bf16.mxu1 %v7663_v3  ;;  %10076 = vst [vmem:[#allocation44_spill] sm:$0xff] %v7685_v13  ;;  %v9773_v28 = vand.u32 4294901760, %v7685_v13  ;;  %v9776_v23 = vand.u32 4294901760, %v7690_v55  ;;  %v7711_v12 = vsub.f32 %v7414_v57, %v10081_v0 }
  0x4d   :  { %10078 = vst [vmem:[#allocation45_spill] sm:$0xff] %v7690_v55  ;;  %v7702_v43 = vsub.f32 %v7383_v42, %v10079_v4  ;;  %v7704_v9 = vpack.c.bf16 %v426_v6, %v419_v38  ;;  %v1785_v7 = vand.u32 4294901760, %v1784_v37  ;;  %v1792_v2 = vand.u32 4294901760, %v1791_v22 }
  0x4e   :  { %10082 = vst [vmem:[#allocation47_spill] sm:$0xff] %v7711_v12  ;;  %v10083_v42 = vand.u32 4294901760, %v7678_v30  ;;  %v439_v4 = vsub.f32 %v7685_v13, %v9773_v28  ;;  %v1798_v57 = vsub.f32 %v7690_v55, %v9776_v23  ;;  %v9781_v0 = vand.u32 4294901760, %v7711_v12 }
  0x4f   :  { %1503 = vxpose.xlu1.b32.cont [11/16] %v7474_v61, 128  ;;  %10080 = vst [vmem:[#allocation46_spill] sm:$0xff] %v7702_v43  ;;  %v9782_v6 = vand.u32 4294901760, %v7702_v43  ;;  %v7729_v37 = vsub.f32 %v7423_v63, %v10084_v31  ;;  %v7731_v22 = vpack.c.bf16 %v1792_v2, %v1785_v7  ;;  %v10086_v28 = vand.u32 4294901760, %v7395_v48 }
  0x50   :  { %137 = vxpose.xlu0.b32.cont [11/16] %v7492_v21, 128  ;;  %v432_v38 = vsub.f32 %v7678_v30, %v10083_v42  ;;  %v440_v23 = vand.u32 4294901760, %v439_v4  ;;  %v1799_v25 = vand.u32 4294901760, %v1798_v57  ;;  %v446_v58 = vsub.f32 %v7711_v12, %v9781_v0 }
  0x51   :  { %10085 = vst [vmem:[#allocation48_spill] sm:$0xff] %v7729_v37  ;;  %v1805_v52 = vsub.f32 %v7702_v43, %v9782_v6  ;;  %v7739_v45 = vsub.f32 %v7395_v48, %v10086_v28  ;;  %v9783_v63 = vand.u32 4294901760, %v7729_v37  ;;  %v10088_v2 = vand.u32 4294901760, %v7421_v62 }
  0x52   :  { %v433_v42 = vand.u32 4294901760, %v432_v38  ;;  %v10090_v28 = vand.u32 4294901760, %v7452_v35  ;;  %v447_v57 = vand.u32 4294901760, %v446_v58 }
  0x53   :  { %1504 = vxpose.xlu1.b32.cont [12/16] %v7505_v41, 128  ;;  %10087 = vst [vmem:[#allocation49_spill] sm:$0xff] %v7739_v45  ;;  %v1806_v31 = vand.u32 4294901760, %v1805_v52  ;;  %v7751_v48 = vsub.f32 %v7421_v62, %v10088_v2  ;;  %v453_v0 = vsub.f32 %v7729_v37, %v9783_v63  ;;  %v10092_v52 = vand.u32 4294901760, %v7461_v47 }
  0x54   :  { %138 = vxpose.xlu0.b32.cont [12/16] %v7507_v49, 128  ;;  %v7756_v38 = vsub.f32 %v7452_v35, %v10090_v28  ;;  %v7758_v4 = vpack.c.bf16 %v440_v23, %v433_v42  ;;  %v10094_v62 = vand.u32 4294901760, %v7739_v45  ;;  %v10095_v28 = vand.u32 4294901760, %v7433_v14 }
  0x55   :  { %10089 = vst [vmem:[#allocation50_spill] sm:$0xff] %v7751_v48  ;;  %v7766_v6 = vsub.f32 %v7461_v47, %v10092_v52  ;;  %v7768_v7 = vpack.c.bf16 %v1806_v31, %v1799_v25  ;;  %v9784_v35 = vand.u32 4294901760, %v7751_v48  ;;  %v454_v58 = vand.u32 4294901760, %v453_v0 }
  0x56   :  { %10091 = vst [vmem:[#allocation51_spill] sm:$0xff] %v7756_v38  ;;  %v1812_v2 = vsub.f32 %v7739_v45, %v10094_v62  ;;  %v9789_v23 = vand.u32 4294901760, %v7756_v38  ;;  %v7779_v63 = vsub.f32 %v7433_v14, %v10095_v28  ;;  %v10097_v47 = vand.u32 4294901760, %v7459_v44 }
  0x57   :  { %1505 = vxpose.xlu1.b32.cont [13/16] %v7517_v50, 128  ;;  %10093 = vst [vmem:[#allocation52_spill] sm:$0xff] %v7766_v6  ;;  %v9794_v42 = vand.u32 4294901760, %v7766_v6  ;;  %v1819_v0 = vsub.f32 %v7751_v48, %v9784_v35  ;;  %v10099_v14 = vand.u32 4294901760, %v7492_v21 }
  0x58   :  { %139 = vxpose.xlu0.b32.cont [13/16] %v7519_v24, 128  ;;  %10096 = vst [vmem:[#allocation53_spill] sm:$0xff] %v7779_v63  ;;  %v7784_v25 = vsub.f32 %v7459_v44, %v10097_v47  ;;  %v1813_v31 = vand.u32 4294901760, %v1812_v2  ;;  %v460_v52 = vsub.f32 %v7756_v38, %v9789_v23  ;;  %v7799_v44 = vpack.c.bf16 %v454_v58, %v447_v57 }
  0x59   :  { %v7797_v62 = vsub.f32 %v7492_v21, %v10099_v14  ;;  %v467_v28 = vsub.f32 %v7766_v6, %v9794_v42  ;;  %v9793_v2 = vand.u32 4294901760, %v7779_v63  ;;  %v1820_v35 = vand.u32 4294901760, %v1819_v0 }
  0x5a   :  { %10098 = vst [vmem:[#allocation54_spill] sm:$0xff] %v7784_v25  ;;  %v9792_v47 = vand.u32 4294901760, %v7784_v25  ;;  %v461_v18 = vand.u32 4294901760, %v460_v52  ;;  %v10101_v23 = vand.u32 4294901760, %v7507_v49  ;;  %v10103_v14 = vand.u32 4294901760, %v7474_v61 }
  0x5b   :  { %1506 = vxpose.xlu1.b32.cont [14/16] %v7521_v51, 128  ;;  %10100 = vst [vmem:[#allocation55_spill] sm:$0xff] %v7797_v62  ;;  %v9797_v60 = vand.u32 4294901760, %v7797_v62  ;;  %v468_v21 = vand.u32 4294901760, %v467_v28  ;;  %v1826_v57 = vsub.f32 %v7779_v63, %v9793_v2  ;;  %v10105_v28 = vand.u32 4294901760, %v7505_v41 }
  0x5c   :  { %140 = vxpose.xlu0.b32.cont [14/16] %v7526_v10, 128  ;;  %v7810_v5 = vsub.f32 %v7507_v49, %v10101_v23  ;;  %v1833_v58 = vsub.f32 %v7784_v25, %v9792_v47  ;;  %v7821_v0 = vsub.f32 %v7474_v61, %v10103_v14  ;;  %v7825_v49 = vpack.c.bf16 %v1820_v35, %v1813_v31 }
  0x5d   :  { %v474_v23 = vsub.f32 %v7797_v62, %v9797_v60  ;;  %v7834_v47 = vsub.f32 %v7505_v41, %v10105_v28  ;;  %v7836_v2 = vpack.c.bf16 %v468_v21, %v461_v18  ;;  %v1827_v61 = vand.u32 4294901760, %v1826_v57 }
  0x5e   :  { %10102 = vst [vmem:[#allocation56_spill] sm:$0xff] %v7810_v5  ;;  %10104 = vst [vmem:[#allocation57_spill] sm:$0xff] %v7821_v0  ;;  %v9802_v52 = vand.u32 4294901760, %v7810_v5  ;;  %v1834_v14 = vand.u32 4294901760, %v1833_v58  ;;  %v9800_v42 = vand.u32 4294901760, %v7821_v0  ;;  %v10107_v60 = vand.u32 4294901760, %v7519_v24 }
  0x5f   :  { %1507 = vxpose.xlu1.b32.cont [15/16] %v7558_v20, 128  ;;  %10106 = vst [vmem:[#allocation58_spill] sm:$0xff] %v7834_v47  ;;  %v475_v11 = vand.u32 4294901760, %v474_v23  ;;  %v9801_v31 = vand.u32 4294901760, %v7834_v47  ;;  %v10109_v21 = vand.u32 4294901760, %v7526_v10  ;;  %v10111_v58 = vand.u32 4294901760, %v7517_v50 }
  0x60   :  { %141 = vxpose.xlu0.b32.cont [15/16] %v7543_v32, 128  ;;  %v481_v35 = vsub.f32 %v7810_v5, %v9802_v52  ;;  %v7846_v27 = vsub.f32 %v7519_v24, %v10107_v60  ;;  %v7848_v41 = vpack.c.bf16 %v1834_v14, %v1827_v61  ;;  %v1840_v18 = vsub.f32 %v7821_v0, %v9800_v42 }
  0x61   :  { %v7856_v57 = vsub.f32 %v7526_v10, %v10109_v21  ;;  %v7861_v23 = vsub.f32 %v7517_v50, %v10111_v58  ;;  %v1847_v60 = vsub.f32 %v7834_v47, %v9801_v31  ;;  %v10113_v61 = vand.u32 4294901760, %v7521_v51 }
  0x62   :  { %10108 = vst [vmem:[#allocation59_spill] sm:$0xff] %v7846_v27  ;;  %v482_v28 = vand.u32 4294901760, %v481_v35  ;;  %v9803_v24 = vand.u32 4294901760, %v7846_v27  ;;  %v1841_v42 = vand.u32 4294901760, %v1840_v18  ;;  %v10115_v50 = vand.u32 4294901760, %v7543_v32 }
  0x63   :  { %1508 = vxpose.xlu1.b32.end [16/16] %v7560_v59, 128  ;;  %10110 = vst [vmem:[#allocation60_spill] sm:$0xff] %v7856_v57  ;;  %10112 = vst [vmem:[#allocation61_spill] sm:$0xff] %v7861_v23  ;;  %v7870_v14 = vsub.f32 %v7521_v51, %v10113_v61  ;;  %v9804_v10 = vand.u32 4294901760, %v7856_v57  ;;  %v9807_v21 = vand.u32 4294901760, %v7861_v23  ;;  %v1848_v31 = vand.u32 4294901760, %v1847_v60 }
  0x64   :  { %142 = vxpose.xlu0.b32.end [16/16] %v7547_v40, 128  ;;  %v7877_v35 = vsub.f32 %v7543_v32, %v10115_v50  ;;  %v7879_v58 = vpack.c.bf16 %v482_v28, %v475_v11  ;;  %v488_v52 = vsub.f32 %v7846_v27, %v9803_v24  ;;  %v10117_v11 = vand.u32 4294901760, %v7547_v40 }
  0x65   :  { %10114 = vst [vmem:[#allocation62_spill] sm:$0xff] %v7870_v14  ;;  %v9812_v51 = vand.u32 4294901760, %v7870_v14  ;;  %v495_v18 = vsub.f32 %v7856_v57, %v9804_v10  ;;  %v1854_v61 = vsub.f32 %v7861_v23, %v9807_v21  ;;  %v7897_v60 = vpack.c.bf16 %v1848_v31, %v1841_v42 }
  0x66   :  { %10116 = vst [vmem:[#allocation63_spill] sm:$0xff] %v7877_v35  ;;  %v9813_v32 = vand.u32 4294901760, %v7877_v35  ;;  %v7895_v28 = vsub.f32 %v7547_v40, %v10117_v11  ;;  %v489_v50 = vand.u32 4294901760, %v488_v52  ;;  %v10119_v10 = vand.u32 4294901760, %v7558_v20 }
  0x67   :  { %v1861_v24 = vsub.f32 %v7870_v14, %v9812_v51  ;;  %v496_v21 = vand.u32 4294901760, %v495_v18  ;;  %v1855_v53 = vand.u32 4294901760, %v1854_v61  ;;  %v10121_v31 = vand.u32 4294901760, %v7560_v59 }
  0x68   :  { %10118 = vst [vmem:[#allocation64_spill] sm:$0xff] %v7895_v28  ;;  %v7905_v29 = vsub.f32 %v7558_v20, %v10119_v10  ;;  %v502_v54 = vsub.f32 %v7877_v35, %v9813_v32  ;;  %v9816_v40 = vand.u32 4294901760, %v7895_v28  ;;  %v7930_v32 = vpack.c.bf16 %v7606_v16, %v7601_v26 }
  0x69   :  { %v1862_v42 = vand.u32 4294901760, %v1861_v24  ;;  %v7915_v11 = vsub.f32 %v7560_v59, %v10121_v31  ;;  %v7917_v51 = vpack.c.bf16 %v496_v21, %v489_v50  ;;  %v7943_v31 = vpack.c.bf16 %v7645_v1, %v7640_v39 }
  0x6a   :  { %10120 = vst [vmem:[#allocation65_spill] sm:$0xff] %v7905_v29  ;;  %v9814_v52 = vand.u32 4294901760, %v7905_v29  ;;  %v503_v20 = vand.u32 4294901760, %v502_v54  ;;  %v509_v10 = vsub.f32 %v7895_v28, %v9816_v40  ;;  %v7981_v40 = vpack.c.bf16 %v7834_v47, %v7821_v0 }
  0x6b   :  { %10122 = vst [vmem:[#allocation66_spill] sm:$0xff] %v7915_v11  ;;  %v7922_v18 = vpack.c.bf16 %v1862_v42, %v1855_v53  ;;  %v9815_v61 = vand.u32 4294901760, %v7915_v11  ;;  %v7937_v53 = vpack.c.bf16 %v7617_v46, %v7611_v36 }
  0x6c   :  { %v1868_v24 = vsub.f32 %v7905_v29, %v9814_v52  ;;  %v510_v59 = vand.u32 4294901760, %v509_v10  ;;  %v7949_v10 = vpack.c.bf16 %v7661_v8, %v7656_v17 }
  0x6d   :  { %v1875_v54 = vsub.f32 %v7915_v11, %v9815_v61  ;;  %v7957_v61 = vpack.c.bf16 %v7702_v43, %v7690_v55 }
  0x6e   :  { %v1869_v21 = vand.u32 4294901760, %v1868_v24  ;;  %v7939_v50 = vpack.c.bf16 %v510_v59, %v503_v20  ;;  %v7953_v24 = vpack.c.bf16 %v7685_v13, %v7678_v30  ;;  %v7961_v20 = vpack.c.bf16 %v7729_v37, %v7711_v12 }
  0x6f   :  { %v1876_v42 = vand.u32 4294901760, %v1875_v54  ;;  %v7965_v59 = vpack.c.bf16 %v7751_v48, %v7739_v45  ;;  %v7973_v54 = vpack.c.bf16 %v7784_v25, %v7779_v63  ;;  %v7985_v48 = vpack.c.bf16 %v7856_v57, %v7846_v27 }
  0x70   :  { %v7993_v25 = vpack.c.bf16 %v7895_v28, %v7877_v35 }
  0x71   :  { %v7945_v52 = vpack.c.bf16 %v1876_v42, %v1869_v21  ;;  %v7969_v21 = vpack.c.bf16 %v7766_v6, %v7756_v38  ;;  %v7977_v42 = vpack.c.bf16 %v7810_v5, %v7797_v62  ;;  %v7989_v6 = vpack.c.bf16 %v7870_v14, %v7861_v23 }
  0x72   :  { %v7997_v5 = vpack.c.bf16 %v7915_v11, %v7905_v29 }
  0xa7   :  { %v1509_v62 = vpop.trf.xlu1 }
  0xa8   :  { %v143_v63 = vpop.trf.xlu0  ;;  %v7999_v47 = vand.u32 4294901760, %v1509_v62 }
  0xa9   :  { %v8001_v0 = vand.u32 4294901760, %v143_v63 }
  0xaa   :  { %v8004_v57 = vsub.f32 %v1509_v62, %v7999_v47 }
  0xab   :  { %v8007_v14 = vsub.f32 %v143_v63, %v8001_v0  ;;  %v1510_v23 = vpop.trf.xlu1 }
  0xac   :  { %10123 = vst [vmem:[#allocation67_spill] sm:$0xff] %v8004_v57  ;;  %v144_v27 = vpop.trf.xlu0  ;;  %v8009_v28 = vand.u32 4294901760, %v1510_v23  ;;  %v9843_v29 = vand.u32 4294901760, %v8004_v57 }
  0xad   :  { %10124 = vst [vmem:[#allocation68_spill] sm:$0xff] %v8007_v14  ;;  %v8011_v35 = vand.u32 4294901760, %v144_v27  ;;  %v9842_v11 = vand.u32 4294901760, %v8007_v14 }
  0xae   :  { %v8016_v38 = vsub.f32 %v1510_v23, %v8009_v28  ;;  %v1609_v62 = vsub.f32 %v8004_v57, %v9843_v29 }
  0xaf   :  { %v8019_v45 = vsub.f32 %v144_v27, %v8011_v35  ;;  %v243_v63 = vsub.f32 %v8007_v14, %v9842_v11  ;;  %v1511_v37 = vpop.trf.xlu1 }
  0xb0   :  { %10125 = vst [vmem:[#allocation69_spill] sm:$0xff] %v8016_v38  ;;  %v145_v12 = vpop.trf.xlu0  ;;  %v9851_v43 = vand.u32 4294901760, %v8016_v38  ;;  %v8029_v13 = vand.u32 4294901760, %v1511_v37  ;;  %v1610_v30 = vand.u32 4294901760, %v1609_v62 }
  0xb1   :  { %10126 = vst [vmem:[#allocation70_spill] sm:$0xff] %v8019_v45  ;;  %v9849_v55 = vand.u32 4294901760, %v8019_v45  ;;  %v8031_v23 = vand.u32 4294901760, %v145_v12  ;;  %v244_v27 = vand.u32 4294901760, %v243_v63 }
  0xb2   :  { %v8034_v8 = vsub.f32 %v1511_v37, %v8029_v13  ;;  %v1619_v17 = vsub.f32 %v8016_v38, %v9851_v43  ;;  %5576 = vmatprep.mubr.f32.mxu1 %v1610_v30 }
  0xb3   :  { %v8037_v11 = vsub.f32 %v145_v12, %v8031_v23  ;;  %v253_v29 = vsub.f32 %v8019_v45, %v9849_v55  ;;  %5240 = vmatprep.mubr.f32.mxu0 %v244_v27  ;;  %v1512_v1 = vpop.trf.xlu1 }
  0xb4   :  { %10127 = vst [vmem:[#allocation71_spill] sm:$0xff] %v8034_v8  ;;  %v146_v39 = vpop.trf.xlu0  ;;  %v9856_v63 = vand.u32 4294901760, %v8034_v8  ;;  %v8047_v62 = vand.u32 4294901760, %v1512_v1  ;;  %v1620_v36 = vand.u32 4294901760, %v1619_v17 }
  0xb5   :  { %10128 = vst [vmem:[#allocation72_spill] sm:$0xff] %v8037_v11  ;;  %v9853_v37 = vand.u32 4294901760, %v8037_v11  ;;  %v8049_v12 = vand.u32 4294901760, %v146_v39  ;;  %v254_v46 = vand.u32 4294901760, %v253_v29 }
  0xb6   :  { %v8052_v55 = vsub.f32 %v1512_v1, %v8047_v62  ;;  %v1629_v27 = vsub.f32 %v8034_v8, %v9856_v63  ;;  %5577 = vmatmul.mubr.f32.vlgmr.msra.gmra.mrb[0].mxu1 %v1620_v36 }
  0xb7   :  { %v8055_v16 = vsub.f32 %v146_v39, %v8049_v12  ;;  %v263_v30 = vsub.f32 %v8037_v11, %v9853_v37  ;;  %5241 = vmatmul.mubr.f32.vlgmr.msra.gmra.mrb[0].mxu0 %v254_v46  ;;  %v1513_v43 = vpop.trf.xlu1  ;;  %6527 = vmatpush3.bf16.msra.mxu1 %v7663_v3 }
  0xb8   :  { %10129 = vst [vmem:[#allocation73_spill] sm:$0xff] %v8052_v55  ;;  %v147_v26 = vpop.trf.xlu0  ;;  %v9862_v29 = vand.u32 4294901760, %v8052_v55  ;;  %v8065_v17 = vand.u32 4294901760, %v1513_v43  ;;  %6335 = vmatpush3.bf16.msra.mxu0 %v7651_v56  ;;  %v1630_v33 = vand.u32 4294901760, %v1629_v27  ;;  %6529 = vmatprep.subr.bf16.mxu1 %v7731_v22 }
  0xb9   :  { %10130 = vst [vmem:[#allocation74_spill] sm:$0xff] %v8055_v16  ;;  %v9859_v1 = vand.u32 4294901760, %v8055_v16  ;;  %v8067_v39 = vand.u32 4294901760, %v147_v26  ;;  %v264_v37 = vand.u32 4294901760, %v263_v30  ;;  %6337 = vmatprep.subr.bf16.mxu0 %v7704_v9 }
  0xba   :  { %v8074_v46 = vsub.f32 %v1513_v43, %v8065_v17  ;;  %v1639_v56 = vsub.f32 %v8052_v55, %v9862_v29  ;;  %5579 = vmatprep.mubr.f32.mxu1 %v1630_v33 }
  0xbb   :  { %v8077_v36 = vsub.f32 %v147_v26, %v8067_v39  ;;  %v273_v63 = vsub.f32 %v8055_v16, %v9859_v1  ;;  %5243 = vmatprep.mubr.f32.mxu0 %v264_v37  ;;  %v1514_v3 = vpop.trf.xlu1  ;;  %6531 = vmatpush3.bf16.msra.mxu1 %v7731_v22 }
  0xbc   :  { %10131 = vst [vmem:[#allocation75_spill] sm:$0xff] %v8074_v46  ;;  %v148_v30 = vpop.trf.xlu0  ;;  %v9868_v27 = vand.u32 4294901760, %v8074_v46  ;;  %v8087_v34 = vand.u32 4294901760, %v1514_v3  ;;  %6339 = vmatpush3.bf16.msra.mxu0 %v7704_v9  ;;  %v1640_v16 = vand.u32 4294901760, %v1639_v56  ;;  %6533 = vmatprep.subr.bf16.mxu1 %v7768_v7 }
  0xbd   :  { %10132 = vst [vmem:[#allocation76_spill] sm:$0xff] %v8077_v36  ;;  %v9865_v43 = vand.u32 4294901760, %v8077_v36  ;;  %v8089_v26 = vand.u32 4294901760, %v148_v30  ;;  %v274_v1 = vand.u32 4294901760, %v273_v63  ;;  %6341 = vmatprep.subr.bf16.mxu0 %v7758_v4 }
  0xbe   :  { %10133 = vst [vmem:[#allocation77_spill] sm:$0xff] %v8087_v34  ;;  %v8096_v33 = vsub.f32 %v1514_v3, %v8087_v34  ;;  %v1649_v9 = vsub.f32 %v8074_v46, %v9868_v27  ;;  %5580 = vmatmul.mubr.f32.gmra.mrb[2].mxu1 %v1640_v16 }
  0xbf   :  { %v8099_v37 = vsub.f32 %v148_v30, %v8089_v26  ;;  %v283_v29 = vsub.f32 %v8077_v36, %v9865_v43  ;;  %5244 = vmatmul.mubr.f32.gmra.mrb[2].mxu0 %v274_v1  ;;  %v1515_v22 = vpop.trf.xlu1  ;;  %6535 = vmatpush3.bf16.msra.mxu1 %v7768_v7 }
  0xc0   :  { %10134 = vst [vmem:[#allocation78_spill] sm:$0xff] %v8096_v33  ;;  %v149_v63 = vpop.trf.xlu0  ;;  %v9874_v56 = vand.u32 4294901760, %v8096_v33  ;;  %v8109_v55 = vand.u32 4294901760, %v1515_v22  ;;  %6343 = vmatpush3.bf16.msra.mxu0 %v7758_v4  ;;  %v1650_v36 = vand.u32 4294901760, %v1649_v9  ;;  %6537 = vmatprep.subr.bf16.mxu1 %v7825_v49 }
  0xc1   :  { %10135 = vst [vmem:[#allocation79_spill] sm:$0xff] %v8099_v37  ;;  %v9871_v3 = vand.u32 4294901760, %v8099_v37  ;;  %v8111_v30 = vand.u32 4294901760, %v149_v63  ;;  %v284_v43 = vand.u32 4294901760, %v283_v29  ;;  %6345 = vmatprep.subr.bf16.mxu0 %v7799_v44 }
  0xc2   :  { %10136 = vst [vmem:[#allocation80_spill] sm:$0xff] %v8109_v55  ;;  %v8118_v16 = vsub.f32 %v1515_v22, %v8109_v55  ;;  %v1659_v7 = vsub.f32 %v8096_v33, %v9874_v56  ;;  %5582 = vmatprep.mubr.f32.mxu1 %v1650_v36 }
  0xc3   :  { %10137 = vst [vmem:[#allocation81_spill] sm:$0xff] %v8111_v30  ;;  %v8121_v1 = vsub.f32 %v149_v63, %v8111_v30  ;;  %v293_v27 = vsub.f32 %v8099_v37, %v9871_v3  ;;  %5246 = vmatprep.mubr.f32.mxu0 %v284_v43  ;;  %v1516_v4 = vpop.trf.xlu1  ;;  %6539 = vmatpush3.bf16.msra.mxu1 %v7825_v49 }
  0xc4   :  { %10138 = vst [vmem:[#allocation82_spill] sm:$0xff] %v8118_v16  ;;  %v150_v29 = vpop.trf.xlu0  ;;  %v9880_v9 = vand.u32 4294901760, %v8118_v16  ;;  %v8131_v46 = vand.u32 4294901760, %v1516_v4  ;;  %6347 = vmatpush3.bf16.msra.mxu0 %v7799_v44  ;;  %v1660_v37 = vand.u32 4294901760, %v1659_v7  ;;  %6541 = vmatprep.subr.bf16.mxu1 %v7848_v41 }
  0xc5   :  { %10139 = vst [vmem:[#allocation83_spill] sm:$0xff] %v8121_v1  ;;  %v9877_v22 = vand.u32 4294901760, %v8121_v1  ;;  %v8133_v63 = vand.u32 4294901760, %v150_v29  ;;  %v294_v3 = vand.u32 4294901760, %v293_v27  ;;  %6349 = vmatprep.subr.bf16.mxu0 %v7836_v2 }
  0xc6   :  { %10140 = vst [vmem:[#allocation84_spill] sm:$0xff] %v8131_v46  ;;  %v8140_v36 = vsub.f32 %v1516_v4, %v8131_v46  ;;  %v1669_v44 = vsub.f32 %v8118_v16, %v9880_v9  ;;  %5583 = vmatmul.mubr.f32.gmra.mrb[4].mxu1 %v1660_v37 }
  0xc7   :  { %10141 = vst [vmem:[#allocation85_spill] sm:$0xff] %v8133_v63  ;;  %v8143_v43 = vsub.f32 %v150_v29, %v8133_v63  ;;  %v303_v56 = vsub.f32 %v8121_v1, %v9877_v22  ;;  %5247 = vmatmul.mubr.f32.gmra.mrb[4].mxu0 %v294_v3  ;;  %v1517_v49 = vpop.trf.xlu1  ;;  %6543 = vmatpush3.bf16.msra.mxu1 %v7848_v41 }
  0xc8   :  { %10142 = vst [vmem:[#allocation86_spill] sm:$0xff] %v8140_v36  ;;  %v151_v27 = vpop.trf.xlu0  ;;  %v9886_v7 = vand.u32 4294901760, %v8140_v36  ;;  %v8153_v33 = vand.u32 4294901760, %v1517_v49  ;;  %6351 = vmatpush3.bf16.msra.mxu0 %v7836_v2  ;;  %v1670_v1 = vand.u32 4294901760, %v1669_v44  ;;  %6545 = vmatprep.subr.bf16.mxu1 %v7897_v60 }
  0xc9   :  { %10143 = vst [vmem:[#allocation87_spill] sm:$0xff] %v8143_v43  ;;  %v9883_v4 = vand.u32 4294901760, %v8143_v43  ;;  %v8155_v29 = vand.u32 4294901760, %v151_v27  ;;  %v304_v22 = vand.u32 4294901760, %v303_v56  ;;  %6353 = vmatprep.subr.bf16.mxu0 %v7879_v58 }
  0xca   :  { %10144 = vst [vmem:[#allocation88_spill] sm:$0xff] %v8153_v33  ;;  %v8162_v37 = vsub.f32 %v1517_v49, %v8153_v33  ;;  %v1679_v2 = vsub.f32 %v8140_v36, %v9886_v7  ;;  %5585 = vmatprep.mubr.f32.mxu1 %v1670_v1 }
  0xcb   :  { %10145 = vst [vmem:[#allocation89_spill] sm:$0xff] %v8155_v29  ;;  %v8165_v3 = vsub.f32 %v151_v27, %v8155_v29  ;;  %v313_v9 = vsub.f32 %v8143_v43, %v9883_v4  ;;  %5249 = vmatprep.mubr.f32.mxu0 %v304_v22  ;;  %v1518_v41 = vpop.trf.xlu1  ;;  %6547 = vmatpush3.bf16.msra.mxu1 %v7897_v60 }
  0xcc   :  { %10146 = vst [vmem:[#allocation90_spill] sm:$0xff] %v8162_v37  ;;  %v152_v56 = vpop.trf.xlu0  ;;  %v9892_v44 = vand.u32 4294901760, %v8162_v37  ;;  %v8175_v16 = vand.u32 4294901760, %v1518_v41  ;;  %6355 = vmatpush3.bf16.msra.mxu0 %v7879_v58  ;;  %v1680_v43 = vand.u32 4294901760, %v1679_v2  ;;  %6549 = vmatprep.subr.bf16.mxu1 %v7922_v18 }
  0xcd   :  { %10147 = vst [vmem:[#allocation91_spill] sm:$0xff] %v8165_v3  ;;  %v9889_v49 = vand.u32 4294901760, %v8165_v3  ;;  %v8177_v27 = vand.u32 4294901760, %v152_v56  ;;  %v314_v4 = vand.u32 4294901760, %v313_v9  ;;  %6357 = vmatprep.subr.bf16.mxu0 %v7917_v51 }
  0xce   :  { %10148 = vst [vmem:[#allocation92_spill] sm:$0xff] %v8175_v16  ;;  %v8184_v1 = vsub.f32 %v1518_v41, %v8175_v16  ;;  %v1689_v58 = vsub.f32 %v8162_v37, %v9892_v44  ;;  %5586 = vmatmul.mubr.f32.gmra.mrb[6].mxu1 %v1680_v43 }
  0xcf   :  { %10149 = vst [vmem:[#allocation93_spill] sm:$0xff] %v8177_v27  ;;  %v8187_v22 = vsub.f32 %v152_v56, %v8177_v27  ;;  %v323_v7 = vsub.f32 %v8165_v3, %v9889_v49  ;;  %5250 = vmatmul.mubr.f32.gmra.mrb[6].mxu0 %v314_v4  ;;  %v1519_v60 = vpop.trf.xlu1  ;;  %6551 = vmatpush3.bf16.msra.mxu1 %v7922_v18 }
  0xd0   :  { %10150 = vst [vmem:[#allocation94_spill] sm:$0xff] %v8184_v1  ;;  %v153_v9 = vpop.trf.xlu0  ;;  %v9898_v2 = vand.u32 4294901760, %v8184_v1  ;;  %v8197_v36 = vand.u32 4294901760, %v1519_v60  ;;  %6359 = vmatpush3.bf16.msra.mxu0 %v7917_v51  ;;  %v1690_v3 = vand.u32 4294901760, %v1689_v58  ;;  %6553 = vmatprep.subr.bf16.mxu1 %v7945_v52 }
  0xd1   :  { %10151 = vst [vmem:[#allocation95_spill] sm:$0xff] %v8187_v22  ;;  %v9895_v41 = vand.u32 4294901760, %v8187_v22  ;;  %v8199_v56 = vand.u32 4294901760, %v153_v9  ;;  %v324_v49 = vand.u32 4294901760, %v323_v7  ;;  %6361 = vmatprep.subr.bf16.mxu0 %v7939_v50 }
  0xd2   :  { %10152 = vst [vmem:[#allocation96_spill] sm:$0xff] %v8197_v36  ;;  %v8206_v43 = vsub.f32 %v1519_v60, %v8197_v36  ;;  %v1699_v51 = vsub.f32 %v8184_v1, %v9898_v2  ;;  %5588 = vmatprep.mubr.f32.mxu1 %v1690_v3 }
  0xd3   :  { %10153 = vst [vmem:[#allocation97_spill] sm:$0xff] %v8199_v56  ;;  %v8209_v4 = vsub.f32 %v153_v9, %v8199_v56  ;;  %v333_v44 = vsub.f32 %v8187_v22, %v9895_v41  ;;  %5252 = vmatprep.mubr.f32.mxu0 %v324_v49  ;;  %v1520_v18 = vpop.trf.xlu1  ;;  %6555 = vmatpush3.bf16.msra.mxu1 %v7945_v52 }
  0xd4   :  { %10154 = vst [vmem:[#allocation98_spill] sm:$0xff] %v8206_v43  ;;  %v154_v7 = vpop.trf.xlu0  ;;  %v9908_v58 = vand.u32 4294901760, %v8206_v43  ;;  %v8219_v37 = vand.u32 4294901760, %v1520_v18  ;;  %6363 = vmatpush3.bf16.msra.mxu0 %v7939_v50  ;;  %v1700_v22 = vand.u32 4294901760, %v1699_v51  ;;  %6557 = vmatprep.subr.bf16.mxu1 %v7937_v53 }
  0xd5   :  { %10155 = vst [vmem:[#allocation99_spill] sm:$0xff] %v8209_v4  ;;  %v9905_v60 = vand.u32 4294901760, %v8209_v4  ;;  %v8221_v9 = vand.u32 4294901760, %v154_v7  ;;  %v334_v41 = vand.u32 4294901760, %v333_v44  ;;  %6365 = vmatprep.subr.bf16.mxu0 %v7930_v32 }
  0xd6   :  { %10156 = vst [vmem:[#allocation100_spill] sm:$0xff] %v8219_v37  ;;  %v8228_v3 = vsub.f32 %v1520_v18, %v8219_v37  ;;  %v1709_v52 = vsub.f32 %v8206_v43, %v9908_v58  ;;  %5589 = vmatmul.mubr.f32.gmra.mrb[8].mxu1 %v1700_v22 }
  0xd7   :  { %10157 = vst [vmem:[#allocation101_spill] sm:$0xff] %v8221_v9  ;;  %v8231_v49 = vsub.f32 %v154_v7, %v8221_v9  ;;  %v343_v2 = vsub.f32 %v8209_v4, %v9905_v60  ;;  %5253 = vmatmul.mubr.f32.gmra.mrb[8].mxu0 %v334_v41  ;;  %v1521_v50 = vpop.trf.xlu1 }
  0xd8   :  { %10158 = vst [vmem:[#allocation102_spill] sm:$0xff] %v8228_v3  ;;  %v155_v44 = vpop.trf.xlu0  ;;  %v9918_v51 = vand.u32 4294901760, %v8228_v3  ;;  %v8241_v1 = vand.u32 4294901760, %v1521_v50  ;;  %v1710_v11 = vand.u32 4294901760, %v1709_v52 }
  0xd9   :  { %10159 = vst [vmem:[#allocation103_spill] sm:$0xff] %v8231_v49  ;;  %v9915_v18 = vand.u32 4294901760, %v8231_v49  ;;  %v8243_v7 = vand.u32 4294901760, %v155_v44  ;;  %v344_v8 = vand.u32 4294901760, %v343_v2 }
  0xda   :  { %10160 = vst [vmem:[#allocation104_spill] sm:$0xff] %v8241_v1  ;;  %v8246_v60 = vsub.f32 %v1521_v50, %v8241_v1  ;;  %v1719_v41 = vsub.f32 %v8228_v3, %v9918_v51  ;;  %5591 = vmatprep.mubr.f32.mxu1 %v1710_v11 }
  0xdb   :  { %10161 = vst [vmem:[#allocation105_spill] sm:$0xff] %v8243_v7  ;;  %v8249_v4 = vsub.f32 %v155_v44, %v8243_v7  ;;  %v353_v22 = vsub.f32 %v8231_v49, %v9915_v18  ;;  %5255 = vmatprep.mubr.f32.mxu0 %v344_v8  ;;  %v1522_v58 = vpop.trf.xlu1 }
  0xdc   :  { %10162 = vst [vmem:[#allocation106_spill] sm:$0xff] %v8246_v60  ;;  %v156_v43 = vpop.trf.xlu0  ;;  %v9928_v2 = vand.u32 4294901760, %v8246_v60  ;;  %v8259_v50 = vand.u32 4294901760, %v1522_v58  ;;  %v1720_v45 = vand.u32 4294901760, %v1719_v41 }
  0xdd   :  { %10163 = vst [vmem:[#allocation107_spill] sm:$0xff] %v8249_v4  ;;  %v9925_v52 = vand.u32 4294901760, %v8249_v4  ;;  %v8261_v44 = vand.u32 4294901760, %v156_v43  ;;  %v354_v38 = vand.u32 4294901760, %v353_v22 }
  0xde   :  { %10164 = vst [vmem:[#allocation108_spill] sm:$0xff] %v8259_v50  ;;  %v8264_v18 = vsub.f32 %v1522_v58, %v8259_v50  ;;  %v1729_v11 = vsub.f32 %v8246_v60, %v9928_v2  ;;  %5592 = vmatmul.mubr.f32.gmra.mrb[10].mxu1 %v1720_v45 }
  0xdf   :  { %10165 = vst [vmem:[#allocation109_spill] sm:$0xff] %v8261_v44  ;;  %v8267_v49 = vsub.f32 %v156_v43, %v8261_v44  ;;  %v363_v8 = vsub.f32 %v8249_v4, %v9925_v52  ;;  %5256 = vmatmul.mubr.f32.gmra.mrb[10].mxu0 %v354_v38  ;;  %v1523_v51 = vpop.trf.xlu1 }
  0xe0   :  { %v157_v3 = vpop.trf.xlu0  ;;  %v9938_v22 = vand.u32 4294901760, %v8264_v18  ;;  %v8277_v41 = vand.u32 4294901760, %v1523_v51  ;;  %v1730_v19 = vand.u32 4294901760, %v1729_v11 }
  0xe1   :  { %10166 = vst [vmem:[#allocation110_spill] sm:$0xff] %v8267_v49  ;;  %v9935_v58 = vand.u32 4294901760, %v8267_v49  ;;  %v8279_v43 = vand.u32 4294901760, %v157_v3  ;;  %v364_v15 = vand.u32 4294901760, %v363_v8 }
  0xe2   :  { %10167 = vst [vmem:[#allocation111_spill] sm:$0xff] %v8277_v41  ;;  %v8282_v52 = vsub.f32 %v1523_v51, %v8277_v41  ;;  %v1739_v38 = vsub.f32 %v8264_v18, %v9938_v22  ;;  %5594 = vmatprep.mubr.f32.mxu1 %v1730_v19 }
  0xe3   :  { %10168 = vst [vmem:[#allocation112_spill] sm:$0xff] %v8279_v43  ;;  %v8285_v4 = vsub.f32 %v157_v3, %v8279_v43  ;;  %v373_v45 = vsub.f32 %v8267_v49, %v9935_v58  ;;  %5258 = vmatprep.mubr.f32.mxu0 %v364_v15  ;;  %v1524_v2 = vpop.trf.xlu1 }
  0xe4   :  { %v158_v60 = vpop.trf.xlu0  ;;  %v9942_v8 = vand.u32 4294901760, %v8282_v52  ;;  %v8295_v11 = vand.u32 4294901760, %v1524_v2  ;;  %v1740_v14 = vand.u32 4294901760, %v1739_v38 }
  0xe5   :  { %10169 = vst [vmem:[#allocation113_spill] sm:$0xff] %v8285_v4  ;;  %v9939_v51 = vand.u32 4294901760, %v8285_v4  ;;  %v8297_v3 = vand.u32 4294901760, %v158_v60  ;;  %v374_v57 = vand.u32 4294901760, %v373_v45 }
  0xe6   :  { %10170 = vst [vmem:[#allocation114_spill] sm:$0xff] %v8295_v11  ;;  %v8300_v58 = vsub.f32 %v1524_v2, %v8295_v11  ;;  %v1749_v19 = vsub.f32 %v8282_v52, %v9942_v8  ;;  %5595 = vmatmul.mubr.f32.gmra.mrb[12].mxu1 %v1740_v14  ;;  %v10174_v14 = vld [vmem:[#allocation15_spill] sm:$0xff] }
  0xe7   :  { %10171 = vst [vmem:[#allocation115_spill] sm:$0xff] %v8297_v3  ;;  %v8303_v49 = vsub.f32 %v158_v60, %v8297_v3  ;;  %v383_v15 = vsub.f32 %v8285_v4, %v9939_v51  ;;  %5259 = vmatmul.mubr.f32.gmra.mrb[12].mxu0 %v374_v57  ;;  %v10172_v57 = vld [vmem:[#allocation68_spill] sm:$0xff] }
  0xe8   :  { %v9943_v22 = vand.u32 4294901760, %v8300_v58  ;;  %v1750_v2 = vand.u32 4294901760, %v1749_v19  ;;  %v10194_v19 = vld [vmem:[#allocation20_spill] sm:$0xff] }
  0xe9   :  { %v9944_v45 = vand.u32 4294901760, %v8303_v49  ;;  %v384_v38 = vand.u32 4294901760, %v383_v15  ;;  %v10193_v15 = vld [vmem:[#allocation87_spill] sm:$0xff] }
  0xea   :  { %5597 = vmatprep.mubr.f32.mxu1 %v1750_v2  ;;  %v1759_v51 = vsub.f32 %v8300_v58, %v9943_v22  ;;  %v10196_v2 = vld [vmem:[#allocation91_spill] sm:$0xff]  ;;  %v10198_v22 = vld [vmem:[#allocation24_spill] sm:$0xff] }
  0xeb   :  { %5261 = vmatprep.mubr.f32.mxu0 %v384_v38  ;;  %v393_v60 = vsub.f32 %v8303_v49, %v9944_v45  ;;  %v10195_v38 = vld [vmem:[#allocation86_spill] sm:$0xff]  ;;  %v10199_v45 = vld [vmem:[#allocation95_spill] sm:$0xff] }
  0xec   :  { %v1760_v8 = vand.u32 4294901760, %v1759_v51  ;;  %v10192_v51 = vld [vmem:[#allocation21_spill] sm:$0xff] }
  0xed   :  { %v394_v4 = vand.u32 4294901760, %v393_v60  ;;  %v10197_v60 = vld [vmem:[#allocation90_spill] sm:$0xff] }
  0xee   :  { %5598 = vmatmul.mubr.f32.gmra.mrb[14].mxu1 %v1760_v8  ;;  %v10191_v8 = vld [vmem:[#allocation82_spill] sm:$0xff] }
  0xef   :  { %5262 = vmatmul.mubr.f32.gmra.mrb[14].mxu0 %v394_v4  ;;  %5632 = vmatprep.mubr.f32.mxu1 %v7999_v47  ;;  %v10190_v4 = vld [vmem:[#allocation83_spill] sm:$0xff] }
  0xf0   :  { %5296 = vmatprep.mubr.f32.mxu0 %v8001_v0 }
  0xf2   :  { %5633 = vmatmul.mubr.f32.vlgmr.msra.gmra.mrb[0].mxu1 %v8009_v28 }
  0xf3   :  { %5297 = vmatmul.mubr.f32.vlgmr.msra.gmra.mrb[0].mxu0 %v8011_v35  ;;  %5635 = vmatprep.mubr.f32.mxu1 %v8029_v13 }
  0xf4   :  { %6367 = vmatpush3.bf16.msra.mxu0 %v7930_v32  ;;  %5299 = vmatprep.mubr.f32.mxu0 %v8031_v23  ;;  %v10175_v32 = vld [vmem:[#allocation14_spill] sm:$0xff] }
  0xf5   :  { %6559 = vmatpush3.bf16.msra.mxu1 %v7937_v53  ;;  %6369 = vmatprep.subr.bf16.mxu0 %v7943_v31  ;;  %v10179_v53 = vld [vmem:[#allocation71_spill] sm:$0xff] }
  0xf6   :  { %6561 = vmatprep.subr.bf16.mxu1 %v7949_v10  ;;  %5636 = vmatmul.mubr.f32.gmra.mrb[2].mxu1 %v8047_v62 }
  0xf7   :  { %5300 = vmatmul.mubr.f32.gmra.mrb[2].mxu0 %v8049_v12  ;;  %5638 = vmatprep.mubr.f32.mxu1 %v8065_v17 }
  0xf8   :  { %6371 = vmatpush3.bf16.msra.mxu0 %v7943_v31  ;;  %5302 = vmatprep.mubr.f32.mxu0 %v8067_v39  ;;  %v10182_v31 = vld [vmem:[#allocation16_spill] sm:$0xff] }
  0xf9   :  { %6563 = vmatpush3.bf16.msra.mxu1 %v7949_v10  ;;  %6373 = vmatprep.subr.bf16.mxu0 %v7953_v24  ;;  %v10183_v10 = vld [vmem:[#allocation73_spill] sm:$0xff] }
  0xfa   :  { %6565 = vmatprep.subr.bf16.mxu1 %v7957_v61  ;;  %5639 = vmatmul.mubr.f32.gmra.mrb[4].mxu1 %v8087_v34 }
  0xfb   :  { %5303 = vmatmul.mubr.f32.gmra.mrb[4].mxu0 %v8089_v26  ;;  %5641 = vmatprep.mubr.f32.mxu1 %v8109_v55 }
  0xfc   :  { %6375 = vmatpush3.bf16.msra.mxu0 %v7953_v24  ;;  %5305 = vmatprep.mubr.f32.mxu0 %v8111_v30  ;;  %v10184_v24 = vld [vmem:[#allocation76_spill] sm:$0xff] }
  0xfd   :  { %6567 = vmatpush3.bf16.msra.mxu1 %v7957_v61  ;;  %6377 = vmatprep.subr.bf16.mxu0 %v7961_v20  ;;  %v10178_v61 = vld [vmem:[#allocation72_spill] sm:$0xff] }
  0xfe   :  { %6569 = vmatprep.subr.bf16.mxu1 %v7965_v59  ;;  %5642 = vmatmul.mubr.f32.gmra.mrb[6].mxu1 %v8131_v46 }
  0xff   :  { %5306 = vmatmul.mubr.f32.gmra.mrb[6].mxu0 %v8133_v63  ;;  %5644 = vmatprep.mubr.f32.mxu1 %v8153_v33  ;;  %v10217_v33 = vld [vmem:[#allocation36_spill] sm:$0xff]  ;;  %v10222_v63 = vld [vmem:[#allocation38_spill] sm:$0xff] }
 0x100   :  { %6379 = vmatpush3.bf16.msra.mxu0 %v7961_v20  ;;  %5308 = vmatprep.mubr.f32.mxu0 %v8155_v29  ;;  %v10185_v20 = vld [vmem:[#allocation75_spill] sm:$0xff]  ;;  %v10219_v29 = vld [vmem:[#allocation34_spill] sm:$0xff]  ;;  %v10223_v55 = vand.u32 4294901760, %v10222_v63  ;;  %v10231_v63 = vld [vmem:[#allocation41_spill] sm:$0xff] }
 0x101   :  { %6571 = vmatpush3.bf16.msra.mxu1 %v7965_v59  ;;  %6381 = vmatprep.subr.bf16.mxu0 %v7969_v21  ;;  %v10186_v59 = vld [vmem:[#allocation19_spill] sm:$0xff] }
 0x102   :  { %6573 = vmatprep.subr.bf16.mxu1 %v7973_v54  ;;  %5645 = vmatmul.mubr.f32.gmra.mrb[8].mxu1 %v8175_v16  ;;  %v10211_v16 = vld [vmem:[#allocation110_spill] sm:$0xff] }
 0x103   :  { %5309 = vmatmul.mubr.f32.gmra.mrb[8].mxu0 %v8177_v27  ;;  %5647 = vmatprep.mubr.f32.mxu1 %v8197_v36  ;;  %v10210_v36 = vld [vmem:[#allocation31_spill] sm:$0xff] }
 0x104   :  { %6383 = vmatpush3.bf16.msra.mxu0 %v7969_v21  ;;  %5311 = vmatprep.mubr.f32.mxu0 %v8199_v56  ;;  %v10187_v21 = vld [vmem:[#allocation79_spill] sm:$0xff]  ;;  %v10212_v56 = vld [vmem:[#allocation32_spill] sm:$0xff] }
 0x105   :  { %6575 = vmatpush3.bf16.msra.mxu1 %v7973_v54  ;;  %6385 = vmatprep.subr.bf16.mxu0 %v7977_v42  ;;  %v10188_v54 = vld [vmem:[#allocation18_spill] sm:$0xff]  ;;  %v10215_v27 = vld [vmem:[#allocation35_spill] sm:$0xff] }
 0x106   :  { %6577 = vmatprep.subr.bf16.mxu1 %v7981_v40  ;;  %5648 = vmatmul.mubr.f32.gmra.mrb[10].mxu1 %v8219_v37  ;;  %v10207_v37 = vld [vmem:[#allocation102_spill] sm:$0xff] }
 0x107   :  { %5312 = vmatmul.mubr.f32.gmra.mrb[10].mxu0 %v8221_v9  ;;  %5650 = vmatprep.mubr.f32.mxu1 %v8241_v1  ;;  %v10206_v1 = vld [vmem:[#allocation29_spill] sm:$0xff]  ;;  %v10209_v9 = vld [vmem:[#allocation106_spill] sm:$0xff] }
 0x108   :  { %6387 = vmatpush3.bf16.msra.mxu0 %v7977_v42  ;;  %5314 = vmatprep.mubr.f32.mxu0 %v8243_v7  ;;  %v10189_v42 = vld [vmem:[#allocation78_spill] sm:$0xff]  ;;  %v10208_v7 = vld [vmem:[#allocation107_spill] sm:$0xff] }
 0x109   :  { %6579 = vmatpush3.bf16.msra.mxu1 %v7981_v40  ;;  %6389 = vmatprep.subr.bf16.mxu0 %v7985_v48  ;;  %v10177_v40 = vld [vmem:[#allocation69_spill] sm:$0xff] }
 0x10a   :  { %6581 = vmatprep.subr.bf16.mxu1 %v7989_v6  ;;  %5651 = vmatmul.mubr.f32.gmra.mrb[12].mxu1 %v8259_v50  ;;  %v10203_v50 = vld [vmem:[#allocation98_spill] sm:$0xff] }
 0x10b   :  { %5315 = vmatmul.mubr.f32.gmra.mrb[12].mxu0 %v8261_v44  ;;  %5653 = vmatprep.mubr.f32.mxu1 %v8277_v41  ;;  %v10202_v41 = vld [vmem:[#allocation99_spill] sm:$0xff] }
 0x10c   :  { %6391 = vmatpush3.bf16.msra.mxu0 %v7985_v48  ;;  %5317 = vmatprep.mubr.f32.mxu0 %v8279_v43  ;;  %v10173_v48 = vld [vmem:[#allocation67_spill] sm:$0xff]  ;;  %v10204_v43 = vld [vmem:[#allocation30_spill] sm:$0xff] }
 0x10d   :  { %6583 = vmatpush3.bf16.msra.mxu1 %v7989_v6  ;;  %6393 = vmatprep.subr.bf16.mxu0 %v7993_v25  ;;  %v10176_v6 = vld [vmem:[#allocation70_spill] sm:$0xff]  ;;  %v10205_v44 = vld [vmem:[#allocation103_spill] sm:$0xff] }
 0x10e   :  { %6585 = vmatprep.subr.bf16.mxu1 %v7997_v5  ;;  %5654 = vmatmul.mubr.f32.gmra.mrb[14].mxu1 %v8295_v11  ;;  %v10200_v11 = vld [vmem:[#allocation23_spill] sm:$0xff] }
 0x10f   :  { %5318 = vmatmul.mubr.f32.gmra.mrb[14].mxu0 %v8297_v3  ;;  %5688 = vmatprep.mubr.f32.mxu1 %v10173_v48  ;;  %v10201_v3 = vld [vmem:[#allocation94_spill] sm:$0xff] }
 0x110   :  { %6395 = vmatpush3.bf16.msra.mxu0 %v7993_v25  ;;  %5352 = vmatprep.mubr.f32.mxu0 %v10172_v57  ;;  %v10180_v25 = vld [vmem:[#allocation17_spill] sm:$0xff] }
 0x111   :  { %6587 = vmatpush3.bf16.msra.mxu1 %v7997_v5  ;;  %6397 = vmatprep.subr.bf16.mxu0 %v10174_v14  ;;  %v10181_v5 = vld [vmem:[#allocation74_spill] sm:$0xff] }
 0x112   :  { %6589 = vmatprep.subr.bf16.mxu1 %v10175_v32 }
 0x113   :  { %5353 = vmatmul.mubr.f32.vlgmr.msra.gmra.mrb[0].mxu0 %v10176_v6 }
 0x114   :  { %6399 = vmatpush3.bf16.msra.mxu0 %v10174_v14  ;;  %5689 = vmatmul.mubr.f32.vlgmr.msra.gmra.mrb[0].mxu1 %v10177_v40 }
 0x115   :  { %5355 = vmatprep.mubr.f32.mxu0 %v10178_v61  ;;  %5691 = vmatprep.mubr.f32.mxu1 %v10179_v53 }
 0x116   :  { %6591 = vmatpush3.bf16.msra.mxu1 %v10175_v32  ;;  %6401 = vmatprep.subr.bf16.mxu0 %v10180_v25 }
 0x117   :  { %5356 = vmatmul.mubr.f32.gmra.mrb[2].mxu0 %v10181_v5  ;;  %6593 = vmatprep.subr.bf16.mxu1 %v10182_v31 }
 0x118   :  { %6403 = vmatpush3.bf16.msra.mxu0 %v10180_v25  ;;  %5692 = vmatmul.mubr.f32.gmra.mrb[2].mxu1 %v10183_v10 }
 0x119   :  { %5358 = vmatprep.mubr.f32.mxu0 %v10184_v24  ;;  %5694 = vmatprep.mubr.f32.mxu1 %v10185_v20 }
 0x11a   :  { %6595 = vmatpush3.bf16.msra.mxu1 %v10182_v31  ;;  %6405 = vmatprep.subr.bf16.mxu0 %v10186_v59 }
 0x11b   :  { %5359 = vmatmul.mubr.f32.gmra.mrb[4].mxu0 %v10187_v21  ;;  %6597 = vmatprep.subr.bf16.mxu1 %v10188_v54 }
 0x11c   :  { %6407 = vmatpush3.bf16.msra.mxu0 %v10186_v59  ;;  %5695 = vmatmul.mubr.f32.gmra.mrb[4].mxu1 %v10189_v42 }
 0x11d   :  { %5361 = vmatprep.mubr.f32.mxu0 %v10190_v4  ;;  %5697 = vmatprep.mubr.f32.mxu1 %v10191_v8 }
 0x11e   :  { %6599 = vmatpush3.bf16.msra.mxu1 %v10188_v54  ;;  %6409 = vmatprep.subr.bf16.mxu0 %v10192_v51 }
 0x11f   :  { %5362 = vmatmul.mubr.f32.gmra.mrb[6].mxu0 %v10193_v15  ;;  %6601 = vmatprep.subr.bf16.mxu1 %v10194_v19 }
 0x120   :  { %6411 = vmatpush3.bf16.msra.mxu0 %v10192_v51  ;;  %5698 = vmatmul.mubr.f32.gmra.mrb[6].mxu1 %v10195_v38 }
 0x121   :  { %5364 = vmatprep.mubr.f32.mxu0 %v10196_v2  ;;  %5700 = vmatprep.mubr.f32.mxu1 %v10197_v60 }
 0x122   :  { %6603 = vmatpush3.bf16.msra.mxu1 %v10194_v19  ;;  %6413 = vmatprep.subr.bf16.mxu0 %v10198_v22 }
 0x123   :  { %5365 = vmatmul.mubr.f32.gmra.mrb[8].mxu0 %v10199_v45  ;;  %6605 = vmatprep.subr.bf16.mxu1 %v10200_v11 }
 0x124   :  { %6415 = vmatpush3.bf16.msra.mxu0 %v10198_v22  ;;  %5701 = vmatmul.mubr.f32.gmra.mrb[8].mxu1 %v10201_v3  ;;  %v10218_v22 = vand.u32 4294901760, %v10217_v33  ;;  %v10226_v33 = vld [vmem:[#allocation39_spill] sm:$0xff] }
 0x125   :  { %5367 = vmatprep.mubr.f32.mxu0 %v10202_v41  ;;  %5703 = vmatprep.mubr.f32.mxu1 %v10203_v50 }
 0x126   :  { %6607 = vmatpush3.bf16.msra.mxu1 %v10200_v11  ;;  %6417 = vmatprep.subr.bf16.mxu0 %v10204_v43  ;;  %v10213_v11 = vld [vmem:[#allocation113_spill] sm:$0xff] }
 0x127   :  { %5368 = vmatmul.mubr.f32.gmra.mrb[10].mxu0 %v10205_v44  ;;  %6609 = vmatprep.subr.bf16.mxu1 %v10206_v1 }
 0x128   :  { %6419 = vmatpush3.bf16.msra.mxu0 %v10204_v43  ;;  %5704 = vmatmul.mubr.f32.gmra.mrb[10].mxu1 %v10207_v37  ;;  %v10214_v43 = vld [vmem:[#allocation33_spill] sm:$0xff] }
 0x129   :  { %5370 = vmatprep.mubr.f32.mxu0 %v10208_v7  ;;  %5706 = vmatprep.mubr.f32.mxu1 %v10209_v9 }
 0x12a   :  { %6611 = vmatpush3.bf16.msra.mxu1 %v10206_v1  ;;  %6421 = vmatprep.subr.bf16.mxu0 %v10210_v36  ;;  %v10216_v1 = vand.u32 4294901760, %v10215_v27  ;;  %v10225_v27 = vand.u32 4294901760, %v10173_v48  ;;  %v10235_v48 = vand.u32 4294901760, %v10178_v61 }
 0x12b   :  { %5371 = vmatmul.mubr.f32.gmra.mrb[12].mxu0 %v10211_v16  ;;  %6613 = vmatprep.subr.bf16.mxu1 %v10212_v56 }
 0x12c   :  { %6423 = vmatpush3.bf16.msra.mxu0 %v10210_v36  ;;  %5707 = vmatmul.mubr.f32.gmra.mrb[12].mxu1 %v8264_v18  ;;  %v6428_v46 = vpack.c.bf16 %v10218_v22, %v10216_v1  ;;  %v10220_v36 = vld [vmem:[#allocation37_spill] sm:$0xff]  ;;  %v10227_v1 = vand.u32 4294901760, %v10226_v33  ;;  %v10228_v22 = vld [vmem:[#allocation40_spill] sm:$0xff] }
 0x12d   :  { %5373 = vmatprep.mubr.f32.mxu0 %v10213_v11  ;;  %5709 = vmatprep.mubr.f32.mxu1 %v8282_v52  ;;  %v10221_v19 = vand.u32 4294901760, %v10220_v36  ;;  %v10229_v34 = vand.u32 4294901760, %v10228_v22  ;;  %v10232_v36 = vand.u32 4294901760, %v10231_v63  ;;  %v10242_v63 = vand.u32 4294901760, %v10181_v5 }
 0x12e   :  { %6615 = vmatpush3.bf16.msra.mxu1 %v10212_v56  ;;  %6425 = vmatprep.subr.bf16.mxu0 %v10214_v43  ;;  %v10224_v56 = vand.u32 4294901760, %v10172_v57 }
 0x12f   :  { %5374 = vmatmul.mubr.f32.gmra.mrb[14].mxu0 %v8303_v49  ;;  %6617 = vmatprep.subr.bf16.mxu1 %v10219_v29  ;;  %v6620_v51 = vpack.c.bf16 %v10223_v55, %v10221_v19  ;;  %v6432_v30 = vpack.c.bf16 %v10229_v34, %v10227_v1  ;;  %v10230_v55 = vand.u32 4294901760, %v10176_v6  ;;  %v10233_v19 = vld [vmem:[#allocation42_spill] sm:$0xff]  ;;  %v10237_v34 = vld [vmem:[#allocation43_spill] sm:$0xff]  ;;  %v10239_v1 = vld [vmem:[#allocation44_spill] sm:$0xff] }
 0x130   :  { %6427 = vmatpush3.bf16.msra.mxu0 %v10214_v43  ;;  %5710 = vmatmul.mubr.f32.gmra.mrb[14].mxu1 %v8300_v58  ;;  %v10234_v57 = vand.u32 4294901760, %v10233_v19  ;;  %v10238_v33 = vand.u32 4294901760, %v10237_v34  ;;  %v10240_v22 = vand.u32 4294901760, %v10239_v1  ;;  %v10254_v1 = vand.u32 4294901760, %v10187_v21 }
 0x131   :  { %5408 = vmatprep.mubr.f32.mxu0 %v10224_v56  ;;  %5744 = vmatprep.mubr.f32.mxu1 %v10225_v27  ;;  %v10236_v27 = vand.u32 4294901760, %v10177_v40 }
 0x132   :  { %6619 = vmatpush3.bf16.msra.mxu1 %v10219_v29  ;;  %6429 = vmatprep.subr.bf16.mxu0 %v6428_v46  ;;  %v6624_v56 = vpack.c.bf16 %v10234_v57, %v10232_v36  ;;  %v6436_v6 = vpack.c.bf16 %v10240_v22, %v10238_v33  ;;  %v10245_v36 = vld [vmem:[#allocation46_spill] sm:$0xff]  ;;  %v10247_v57 = vand.u32 4294901760, %v10184_v24  ;;  %v10253_v33 = vand.u32 4294901760, %v10185_v20  ;;  %v10261_v20 = vld [vmem:[#allocation51_spill] sm:$0xff] }
 0x133   :  { %5409 = vmatmul.mubr.f32.vlgmr.msra.gmra.mrb[0].mxu0 %v10230_v55  ;;  %6621 = vmatprep.subr.bf16.mxu1 %v6620_v51  ;;  %v10241_v55 = vand.u32 4294901760, %v10179_v53  ;;  %v10246_v19 = vand.u32 4294901760, %v10245_v36  ;;  %v10249_v53 = vld [vmem:[#allocation47_spill] sm:$0xff]  ;;  %v10257_v22 = vld [vmem:[#allocation50_spill] sm:$0xff] }
 0x134   :  { %6431 = vmatpush3.bf16.msra.mxu0 %v6428_v46  ;;  %5411 = vmatprep.mubr.f32.mxu0 %v10235_v48  ;;  %v10243_v46 = vld [vmem:[#allocation45_spill] sm:$0xff]  ;;  %v10248_v48 = vand.u32 4294901760, %v10183_v10 }
 0x135   :  { %5745 = vmatmul.mubr.f32.vlgmr.msra.gmra.mrb[0].mxu1 %v10236_v27  ;;  %6433 = vmatprep.subr.bf16.mxu0 %v6432_v30  ;;  %v10244_v61 = vand.u32 4294901760, %v10243_v46  ;;  %v10250_v27 = vand.u32 4294901760, %v10249_v53  ;;  %v10260_v46 = vand.u32 4294901760, %v10189_v42 }
 0x136   :  { %5747 = vmatprep.mubr.f32.mxu1 %v10241_v55  ;;  %6623 = vmatpush3.bf16.msra.mxu1 %v6620_v51  ;;  %v10251_v51 = vld [vmem:[#allocation48_spill] sm:$0xff]  ;;  %v10258_v55 = vand.u32 4294901760, %v10257_v22 }
 0x137   :  { %5412 = vmatmul.mubr.f32.gmra.mrb[2].mxu0 %v10242_v63  ;;  %6625 = vmatprep.subr.bf16.mxu1 %v6624_v56  ;;  %v6628_v40 = vpack.c.bf16 %v10246_v19, %v10244_v61  ;;  %v10252_v34 = vand.u32 4294901760, %v10251_v51  ;;  %v10259_v63 = vand.u32 4294901760, %v10190_v4  ;;  %v10262_v61 = vand.u32 4294901760, %v10261_v20 }
 0x138   :  { %6435 = vmatpush3.bf16.msra.mxu0 %v6432_v30  ;;  %5414 = vmatprep.mubr.f32.mxu0 %v10247_v57  ;;  %v10255_v30 = vld [vmem:[#allocation49_spill] sm:$0xff]  ;;  %v10265_v19 = vand.u32 4294901760, %v10191_v8  ;;  %v10266_v57 = vand.u32 4294901760, %v10193_v15  ;;  %v10272_v51 = vand.u32 4294901760, %v10195_v38  ;;  %v10273_v8 = vld [vmem:[#allocation55_spill] sm:$0xff] }
 0x139   :  { %5748 = vmatmul.mubr.f32.gmra.mrb[2].mxu1 %v10248_v48  ;;  %6437 = vmatprep.subr.bf16.mxu0 %v6436_v6  ;;  %v6440_v5 = vpack.c.bf16 %v10252_v34, %v10250_v27  ;;  %v10256_v24 = vand.u32 4294901760, %v10255_v30  ;;  %v10269_v48 = vld [vmem:[#allocation54_spill] sm:$0xff]  ;;  %v10271_v27 = vand.u32 4294901760, %v10196_v2  ;;  %v10274_v34 = vand.u32 4294901760, %v10273_v8 }
 0x13a   :  { %5750 = vmatprep.mubr.f32.mxu1 %v10253_v33  ;;  %6627 = vmatpush3.bf16.msra.mxu1 %v6624_v56  ;;  %v10263_v56 = vld [vmem:[#allocation52_spill] sm:$0xff]  ;;  %v10270_v53 = vand.u32 4294901760, %v10269_v48  ;;  %v10278_v30 = vand.u32 4294901760, %v10199_v45  ;;  %v10305_v8 = vld [vmem:[#allocation66_spill] sm:$0xff] }
 0x13b   :  { %5415 = vmatmul.mubr.f32.gmra.mrb[4].mxu0 %v10254_v1  ;;  %6629 = vmatprep.subr.bf16.mxu1 %v6628_v40  ;;  %v6632_v10 = vpack.c.bf16 %v10258_v55, %v10256_v24  ;;  %v10264_v36 = vand.u32 4294901760, %v10263_v56  ;;  %v10277_v1 = vand.u32 4294901760, %v10197_v60  ;;  %v10281_v24 = vld [vmem:[#allocation58_spill] sm:$0xff]  ;;  %v10283_v55 = vand.u32 4294901760, %v10202_v41  ;;  %v10285_v60 = vld [vmem:[#allocation59_spill] sm:$0xff]  ;;  %v10299_v48 = vld [vmem:[#allocation64_spill] sm:$0xff] }
 0x13c   :  { %6439 = vmatpush3.bf16.msra.mxu0 %v6436_v6  ;;  %5417 = vmatprep.mubr.f32.mxu0 %v10259_v63  ;;  %v10267_v6 = vld [vmem:[#allocation53_spill] sm:$0xff]  ;;  %v10282_v22 = vand.u32 4294901760, %v10281_v24  ;;  %v10284_v63 = vand.u32 4294901760, %v10201_v3  ;;  %v10290_v56 = vand.u32 4294901760, %v10205_v44  ;;  %v10327_v24 = vld [vmem:[#allocation96_spill] sm:$0xff] }
 0x13d   :  { %5751 = vmatmul.mubr.f32.gmra.mrb[4].mxu1 %v10260_v46  ;;  %6441 = vmatprep.subr.bf16.mxu0 %v6440_v5  ;;  %v6444_v21 = vpack.c.bf16 %v10264_v36, %v10262_v61  ;;  %v10268_v4 = vand.u32 4294901760, %v10267_v6  ;;  %v10286_v46 = vand.u32 4294901760, %v10285_v60  ;;  %v10289_v61 = vand.u32 4294901760, %v10203_v50  ;;  %v10291_v36 = vld [vmem:[#allocation61_spill] sm:$0xff]  ;;  %v10297_v50 = vld [vmem:[#allocation63_spill] sm:$0xff] }
 0x13e   :  { %5753 = vmatprep.mubr.f32.mxu1 %v10265_v19  ;;  %6631 = vmatpush3.bf16.msra.mxu1 %v6628_v40  ;;  %v10275_v40 = vld [vmem:[#allocation56_spill] sm:$0xff]  ;;  %v10292_v41 = vand.u32 4294901760, %v10291_v36  ;;  %v10296_v6 = vand.u32 4294901760, %v10207_v37  ;;  %v10332_v60 = vld [vmem:[#allocation31_spill] sm:$0xff] }
 0x13f   :  { %5418 = vmatmul.mubr.f32.gmra.mrb[6].mxu0 %v10266_v57  ;;  %6633 = vmatprep.subr.bf16.mxu1 %v6632_v10  ;;  %v6636_v42 = vpack.c.bf16 %v10270_v53, %v10268_v4  ;;  %v10276_v33 = vand.u32 4294901760, %v10275_v40  ;;  %v10295_v57 = vand.u32 4294901760, %v10208_v7  ;;  %v10298_v4 = vand.u32 4294901760, %v10297_v50  ;;  %v10339_v36 = vld [vmem:[#allocation115_spill] sm:$0xff] }
 0x140   :  { %6443 = vmatpush3.bf16.msra.mxu0 %v6440_v5  ;;  %5420 = vmatprep.mubr.f32.mxu0 %v10271_v27  ;;  %v10279_v5 = vld [vmem:[#allocation57_spill] sm:$0xff]  ;;  %v10300_v53 = vand.u32 4294901760, %v10299_v48  ;;  %v10302_v27 = vand.u32 4294901760, %v10211_v16  ;;  %v10307_v40 = vand.u32 4294901760, %v10213_v11  ;;  %v10310_v16 = vand.u32 4294901760, %v8303_v49 }
 0x141   :  { %5754 = vmatmul.mubr.f32.gmra.mrb[6].mxu1 %v10272_v51  ;;  %6445 = vmatprep.subr.bf16.mxu0 %v6444_v21  ;;  %v6448_v15 = vpack.c.bf16 %v10276_v33, %v10274_v34  ;;  %v10280_v2 = vand.u32 4294901760, %v10279_v5  ;;  %v10303_v51 = vld [vmem:[#allocation65_spill] sm:$0xff]  ;;  %v10306_v34 = vand.u32 4294901760, %v10305_v8  ;;  %v10308_v33 = vand.u32 4294901760, %v8264_v18  ;;  %v10325_v5 = vld [vmem:[#allocation92_spill] sm:$0xff] }
 0x142   :  { %5756 = vmatprep.mubr.f32.mxu1 %v10277_v1  ;;  %6635 = vmatpush3.bf16.msra.mxu1 %v6632_v10  ;;  %v10287_v10 = vld [vmem:[#allocation60_spill] sm:$0xff]  ;;  %v6456_v44 = vpack.c.bf16 %v10300_v53, %v10298_v4  ;;  %v10304_v7 = vand.u32 4294901760, %v10303_v51  ;;  %v10312_v49 = vld [vmem:[#allocation81_spill] sm:$0xff] }
 0x143   :  { %5421 = vmatmul.mubr.f32.gmra.mrb[8].mxu0 %v10278_v30  ;;  %6637 = vmatprep.subr.bf16.mxu1 %v6636_v42  ;;  %v6640_v38 = vpack.c.bf16 %v10282_v22, %v10280_v2  ;;  %v10288_v20 = vand.u32 4294901760, %v10287_v10  ;;  %v10313_v18 = vld [vmem:[#allocation77_spill] sm:$0xff]  ;;  %v10323_v30 = vld [vmem:[#allocation23_spill] sm:$0xff]  ;;  %v10326_v2 = vld [vmem:[#allocation30_spill] sm:$0xff] }
 0x144   :  { %6447 = vmatpush3.bf16.msra.mxu0 %v6444_v21  ;;  %5423 = vmatprep.mubr.f32.mxu0 %v10283_v55  ;;  %v10293_v21 = vld [vmem:[#allocation62_spill] sm:$0xff]  ;;  %v6648_v37 = vpack.c.bf16 %v10306_v34, %v10304_v7  ;;  %v10316_v11 = vld [vmem:[#allocation85_spill] sm:$0xff] }
 0x145   :  { %5757 = vmatmul.mubr.f32.gmra.mrb[8].mxu1 %v10284_v63  ;;  %6449 = vmatprep.subr.bf16.mxu0 %v6448_v15  ;;  %v6452_v45 = vpack.c.bf16 %v10288_v20, %v10286_v46  ;;  %v10294_v19 = vand.u32 4294901760, %v10293_v21  ;;  %v10322_v1 = vld [vmem:[#allocation93_spill] sm:$0xff]  ;;  %v10331_v63 = vld [vmem:[#allocation100_spill] sm:$0xff]  ;;  %v7191_v21 = vld [vmem:[#allocation5 + $0x68] sm:$0xff] }
 0x146   :  { %5759 = vmatprep.mubr.f32.mxu1 %v10289_v61  ;;  %6639 = vmatpush3.bf16.msra.mxu1 %v6636_v42  ;;  %v10301_v42 = vand.u32 4294901760, %v10209_v9  ;;  %v10309_v9 = vand.u32 4294901760, %v8282_v52  ;;  %v10314_v52 = vld [vmem:[#allocation21_spill] sm:$0xff]  ;;  %v10333_v46 = vld [vmem:[#allocation104_spill] sm:$0xff]  ;;  %v10343_v34 = vld [vmem:[#allocation22_spill] sm:$0xff] }
 0x147   :  { %5424 = vmatmul.mubr.f32.gmra.mrb[10].mxu0 %v10290_v56  ;;  %6641 = vmatprep.subr.bf16.mxu1 %v6640_v38  ;;  %v6644_v3 = vpack.c.bf16 %v10294_v19, %v10292_v41  ;;  %v10328_v22 = vld [vmem:[#allocation101_spill] sm:$0xff]  ;;  %v10335_v20 = vld [vmem:[#allocation32_spill] sm:$0xff]  ;;  %v10338_v56 = vld [vmem:[#allocation111_spill] sm:$0xff] }
 0x148   :  { %6451 = vmatpush3.bf16.msra.mxu0 %v6448_v15  ;;  %5426 = vmatprep.mubr.f32.mxu0 %v10295_v57  ;;  %v10311_v15 = vand.u32 4294901760, %v8300_v58  ;;  %v10315_v58 = vld [vmem:[#allocation80_spill] sm:$0xff]  ;;  %v10330_v55 = vld [vmem:[#allocation105_spill] sm:$0xff]  ;;  %v10340_v41 = vld [vmem:[#allocation114_spill] sm:$0xff] }
 0x149   :  { %5760 = vmatmul.mubr.f32.gmra.mrb[10].mxu1 %v10296_v6  ;;  %6453 = vmatprep.subr.bf16.mxu0 %v6452_v45  ;;  %v10334_v10 = vld [vmem:[#allocation109_spill] sm:$0xff]  ;;  %v10337_v61 = vld [vmem:[#allocation108_spill] sm:$0xff] }
 0x14a   :  { %5762 = vmatprep.mubr.f32.mxu1 %v10301_v42  ;;  %6643 = vmatpush3.bf16.msra.mxu1 %v6640_v38  ;;  %v10329_v38 = vld [vmem:[#allocation29_spill] sm:$0xff]  ;;  %v7193_v6 = vld [vmem:[#allocation5 + $0x70] sm:$0xff] }
 0x14b   :  { %5427 = vmatmul.mubr.f32.gmra.mrb[12].mxu0 %v10302_v27  ;;  %6645 = vmatprep.subr.bf16.mxu1 %v6644_v3  ;;  %v7194_v4 = vld [vmem:[#allocation8 + $0x78] sm:$0xff] }
 0x14c   :  { %6455 = vmatpush3.bf16.msra.mxu0 %v6452_v45  ;;  %5429 = vmatprep.mubr.f32.mxu0 %v10307_v40  ;;  %v10336_v45 = vld [vmem:[#allocation112_spill] sm:$0xff]  ;;  %v7195_v53 = vld [vmem:[#allocation5 + $0x78] sm:$0xff] }
 0x14d   :  { %5763 = vmatmul.mubr.f32.gmra.mrb[12].mxu1 %v10308_v33  ;;  %6457 = vmatprep.subr.bf16.mxu0 %v6456_v44  ;;  %v10344_v33 = vld [vmem:[#allocation27_spill] sm:$0xff] }
 0x14e   :  { %5765 = vmatprep.mubr.f32.mxu1 %v10309_v9  ;;  %6647 = vmatpush3.bf16.msra.mxu1 %v6644_v3  ;;  %v7192_v3 = vld [vmem:[#allocation8 + $0x70] sm:$0xff]  ;;  %v2906_v9 = vmul.f32 %v10344_v33, %v10344_v33 }
 0x14f   :  { %5430 = vmatmul.mubr.f32.gmra.mrb[14].mxu0 %v10310_v16  ;;  %6649 = vmatprep.subr.bf16.mxu1 %v6648_v37 }
 0x150   :  { %6459 = vmatpush3.bf16.msra.mxu0 %v6456_v44  ;;  %5464 = vmatprep.mubr.f32.mxu0 %v8001_v0 }
 0x151   :  { %5766 = vmatmul.mubr.f32.gmra.mrb[14].mxu1 %v10311_v15  ;;  %6461 = vmatprep.subr.bf16.mxu0 %v10174_v14 }
 0x152   :  { %6651 = vmatpush3.bf16.msra.mxu1 %v6648_v37  ;;  %5800 = vmatprep.mubr.f32.mxu1 %v7999_v47  ;;  %v2905_v37 = vmul.f32 %v10343_v34, %v10343_v34 }
 0x153   :  { %5465 = vmatmul.mubr.f32.vlgmr.msra.gmra.mrb[0].mxu0 %v8011_v35  ;;  %6653 = vmatprep.subr.bf16.mxu1 %v10175_v32 }
 0x154   :  { %6463 = vmatpush3.bf16.msra.mxu0 %v10174_v14  ;;  %5467 = vmatprep.mubr.f32.mxu0 %v8031_v23  ;;  %v10317_v14 = vld [vmem:[#allocation20_spill] sm:$0xff] }
 0x155   :  { %5801 = vmatmul.mubr.f32.vlgmr.msra.gmra.mrb[0].mxu1 %v8009_v28  ;;  %6465 = vmatprep.subr.bf16.mxu0 %v10180_v25 }
 0x156   :  { %5803 = vmatprep.mubr.f32.mxu1 %v8029_v13  ;;  %6655 = vmatpush3.bf16.msra.mxu1 %v10175_v32  ;;  %v10318_v32 = vld [vmem:[#allocation89_spill] sm:$0xff] }
 0x157   :  { %5468 = vmatmul.mubr.f32.gmra.mrb[2].mxu0 %v8049_v12  ;;  %6657 = vmatprep.subr.bf16.mxu1 %v10182_v31 }
 0x158   :  { %6467 = vmatpush3.bf16.msra.mxu0 %v10180_v25  ;;  %5470 = vmatprep.mubr.f32.mxu0 %v8067_v39  ;;  %v10319_v25 = vld [vmem:[#allocation84_spill] sm:$0xff] }
 0x159   :  { %5804 = vmatmul.mubr.f32.gmra.mrb[2].mxu1 %v8047_v62  ;;  %6469 = vmatprep.subr.bf16.mxu0 %v10186_v59 }
 0x15a   :  { %5806 = vmatprep.mubr.f32.mxu1 %v8065_v17  ;;  %6659 = vmatpush3.bf16.msra.mxu1 %v10182_v31  ;;  %v10320_v31 = vld [vmem:[#allocation24_spill] sm:$0xff] }
 0x15b   :  { %5471 = vmatmul.mubr.f32.gmra.mrb[4].mxu0 %v8089_v26  ;;  %6661 = vmatprep.subr.bf16.mxu1 %v10188_v54 }
 0x15c   :  { %6471 = vmatpush3.bf16.msra.mxu0 %v10186_v59  ;;  %5473 = vmatprep.mubr.f32.mxu0 %v10312_v49  ;;  %v10321_v59 = vld [vmem:[#allocation88_spill] sm:$0xff] }
 0x15d   :  { %5807 = vmatmul.mubr.f32.gmra.mrb[4].mxu1 %v10313_v18  ;;  %6473 = vmatprep.subr.bf16.mxu0 %v10314_v52 }
 0x15e   :  { %5809 = vmatprep.mubr.f32.mxu1 %v10315_v58  ;;  %6663 = vmatpush3.bf16.msra.mxu1 %v10188_v54  ;;  %v10324_v54 = vld [vmem:[#allocation97_spill] sm:$0xff] }
 0x15f   :  { %5474 = vmatmul.mubr.f32.gmra.mrb[6].mxu0 %v10316_v11  ;;  %6665 = vmatprep.subr.bf16.mxu1 %v10317_v14 }
 0x160   :  { %6475 = vmatpush3.bf16.msra.mxu0 %v10314_v52  ;;  %5476 = vmatprep.mubr.f32.mxu0 %v10318_v32 }
 0x161   :  { %5810 = vmatmul.mubr.f32.gmra.mrb[6].mxu1 %v10319_v25  ;;  %6477 = vmatprep.subr.bf16.mxu0 %v10320_v31 }
 0x162   :  { %5812 = vmatprep.mubr.f32.mxu1 %v10321_v59  ;;  %6667 = vmatpush3.bf16.msra.mxu1 %v10317_v14 }
 0x163   :  { %5477 = vmatmul.mubr.f32.gmra.mrb[8].mxu0 %v10322_v1  ;;  %6669 = vmatprep.subr.bf16.mxu1 %v10323_v30 }
 0x164   :  { %6479 = vmatpush3.bf16.msra.mxu0 %v10320_v31  ;;  %5479 = vmatprep.mubr.f32.mxu0 %v10324_v54 }
 0x165   :  { %5813 = vmatmul.mubr.f32.gmra.mrb[8].mxu1 %v10325_v5  ;;  %6481 = vmatprep.subr.bf16.mxu0 %v10326_v2 }
 0x166   :  { %5815 = vmatprep.mubr.f32.mxu1 %v10327_v24  ;;  %6671 = vmatpush3.bf16.msra.mxu1 %v10323_v30  ;;  %v2857_v30 = vsub.f32 %v7193_v6, %v7192_v3 }
 0x167   :  { %5480 = vmatmul.mubr.f32.gmra.mrb[10].mxu0 %v10328_v22  ;;  %6673 = vmatprep.subr.bf16.mxu1 %v10329_v38 }
 0x168   :  { %6483 = vmatpush3.bf16.msra.mxu0 %v10326_v2  ;;  %5482 = vmatprep.mubr.f32.mxu0 %v10330_v55 }
 0x169   :  { %5816 = vmatmul.mubr.f32.gmra.mrb[10].mxu1 %v10331_v63  ;;  %6485 = vmatprep.subr.bf16.mxu0 %v10332_v60 }
 0x16a   :  { %5818 = vmatprep.mubr.f32.mxu1 %v10333_v46  ;;  %6675 = vmatpush3.bf16.msra.mxu1 %v10329_v38  ;;  %v2910_v38 = vmul.f32 %v2857_v30, %v2857_v30 }
 0x16b   :  { %5483 = vmatmul.mubr.f32.gmra.mrb[12].mxu0 %v10334_v10  ;;  %6677 = vmatprep.subr.bf16.mxu1 %v10335_v20 }
 0x16c   :  { %6487 = vmatpush3.bf16.msra.mxu0 %v10332_v60  ;;  %5485 = vmatprep.mubr.f32.mxu0 %v10336_v45 }
 0x16d   :  { %5819 = vmatmul.mubr.f32.gmra.mrb[12].mxu1 %v10337_v61  ;;  %6489 = vmatprep.subr.bf16.mxu0 %v10214_v43 }
 0x16e   :  { %5821 = vmatprep.mubr.f32.mxu1 %v10338_v56  ;;  %6679 = vmatpush3.bf16.msra.mxu1 %v10335_v20 }
 0x16f   :  { %5486 = vmatmul.mubr.f32.gmra.mrb[14].mxu0 %v10339_v36  ;;  %6681 = vmatprep.subr.bf16.mxu1 %v10219_v29 }
 0x170   :  { %6491 = vmatpush3.bf16.msra.mxu0 %v10214_v43  ;;  %5520 = vmatprep.mubr.f32.mxu0 %v8001_v0 }
 0x171   :  { %5822 = vmatmul.mubr.f32.gmra.mrb[14].mxu1 %v10340_v41 }
 0x172   :  { %6683 = vmatpush3.bf16.msra.mxu1 %v10219_v29  ;;  %5856 = vmatprep.mubr.f32.mxu1 %v7999_v47  ;;  %v10341_v47 = vld [vmem:[#allocation26_spill] sm:$0xff]  ;;  %v7190_v29 = vld [vmem:[#allocation8 + $0x68] sm:$0xff] }
 0x173   :  { %5521 = vmatmul.mubr.f32.vlgmr.msra.gmra.mrb[0].mxu0 %v8011_v35  ;;  %v7187_v35 = vld [vmem:[#allocation5 + $0x58] sm:$0xff]  ;;  %v2856_v31 = vsub.f32 %v7191_v21, %v7190_v29 }
 0x174   :  { %5523 = vmatprep.mubr.f32.mxu0 %v8031_v23 }
 0x175   :  { %5857 = vmatmul.mubr.f32.vlgmr.msra.gmra.mrb[0].mxu1 %v8009_v28  ;;  %v10342_v28 = vld [vmem:[#allocation28_spill] sm:$0xff] }
 0x176   :  { %5859 = vmatprep.mubr.f32.mxu1 %v8029_v13  ;;  %v7186_v13 = vld [vmem:[#allocation8 + $0x58] sm:$0xff]  ;;  %v2870_v23 = vadd.f32 %v7187_v35, %v10342_v28 }
 0x177   :  { %5524 = vmatmul.mubr.f32.gmra.mrb[2].mxu0 %v8049_v12  ;;  %v2888_v0 = vadd.f32 %v7186_v13, %v10341_v47 }
 0x178   :  { %5526 = vmatprep.mubr.f32.mxu0 %v8067_v39 }
 0x179   :  { %5860 = vmatmul.mubr.f32.gmra.mrb[2].mxu1 %v8047_v62  ;;  %v7188_v62 = vld [vmem:[#allocation8 + $0x60] sm:$0xff] }
 0x17a   :  { %5862 = vmatprep.mubr.f32.mxu1 %v8065_v17  ;;  %v2889_v12 = vadd.f32 %v7188_v62, %v2888_v0  ;;  %v7189_v17 = vld [vmem:[#allocation5 + $0x60] sm:$0xff] }
 0x17b   :  { %5527 = vmatmul.mubr.f32.gmra.mrb[4].mxu0 %v8089_v26  ;;  %v2871_v39 = vadd.f32 %v7189_v17, %v2870_v23  ;;  %v9999_v26 = vmov 0.0|0.0  }
 0x17c   :  { %5529 = vmatprep.mubr.f32.mxu0 %v10312_v49  ;;  %6684 = vmatprep.subr.bf16.mxu0 %v9999_v26  ;;  %v2890_v43 = vadd.f32 %v7190_v29, %v2889_v12  ;;  %v2854_v49 = vsub.f32 %v7187_v35, %v7186_v13  ;;  %v2959_v13 = vlaneseq }
 0x17d   :  { %5863 = vmatmul.mubr.f32.gmra.mrb[4].mxu1 %v10313_v18  ;;  %6828 = vmatprep.subr.bf16.mxu1 %v9999_v26  ;;  %v2872_v19 = vadd.f32 %v7191_v21, %v2871_v39  ;;  %v10345_v18 = vld [vmem:[#allocation25_spill] sm:$0xff] }
 0x17e   :  { %5865 = vmatprep.mubr.f32.mxu1 %v10315_v58  ;;  %v2891_v57 = vadd.f32 %v7192_v3, %v2890_v43  ;;  %v2920_v52 = vadd.f32 %v10345_v18, %v2905_v37  ;;  %v2855_v58 = vsub.f32 %v7189_v17, %v7188_v62  ;;  %v2960_v47 = vshrl.u32 %v2959_v13, 7 }
 0x17f   :  { %5530 = vmatmul.mubr.f32.gmra.mrb[6].mxu0 %v10316_v11  ;;  %v2873_v50 = vadd.f32 %v7193_v6, %v2872_v19  ;;  %v2907_v11 = vmul.f32 %v2854_v49, %v2854_v49  ;;  %v8692_v35 = vand.u32 127, %v2959_v13 }
 0x180   :  { %5532 = vmatprep.mubr.f32.mxu0 %v10318_v32  ;;  %v2892_v48 = vadd.f32 %v7194_v4, %v2891_v57  ;;  %v2921_v14 = vadd.f32 %v2920_v52, %v2906_v9  ;;  %v2961_v0 = vadd.s32 8, %v2960_v47  ;;  %v8700_v62 = vadd.s32 24, %v2960_v47 }
 0x181   :  { %5866 = vmatmul.mubr.f32.gmra.mrb[6].mxu1 %v10319_v25  ;;  %v2874_v44 = vadd.f32 %v7195_v53, %v2873_v50  ;;  %v2962_v12 = vadd.s32 16, %v2960_v47  ;;  %v8703_v17 = vadd.s32 40, %v2960_v47  ;;  %vm2978_vm3 = vcmp.eq.s32.totalorder %v2960_v47, %v8692_v35 }
 0x182   :  { %5868 = vmatprep.mubr.f32.mxu1 %v10321_v59  ;;  %v2941_v42 = vrot.slane %v2892_v48, 4  ;;  %v2908_v59 = vmul.f32 %v2855_v58, %v2855_v58  ;;  %vm2979_vm2 = vcmp.eq.s32.totalorder %v2961_v0, %v8692_v35  ;;  %vm2981_vm4 = vcmp.eq.s32.totalorder %v8700_v62, %v8692_v35 }
 0x183   :  { %5533 = vmatmul.mubr.f32.gmra.mrb[8].mxu0 %v10322_v1  ;;  %v2933_v27 = vrot.slane %v2874_v44, 4  ;;  %v2922_v1 = vadd.f32 %v2921_v14, %v2907_v11  ;;  %vm2980_vm5 = vcmp.eq.s32.totalorder %v2962_v12, %v8692_v35  ;;  %v8719_v21 = vadd.s32 32, %v2960_v47 }
 0x184   :  { %5535 = vmatprep.mubr.f32.mxu0 %v10324_v54  ;;  %v2942_v51 = vadd.f32 %v2941_v42, %v2892_v48  ;;  %v2909_v54 = vmul.f32 %v2856_v31, %v2856_v31  ;;  %v8721_v19 = vadd.s32 56, %v2960_v47  ;;  %v8728_v50 = vadd.s32 48, %v2960_v47 }
 0x185   :  { %5869 = vmatmul.mubr.f32.gmra.mrb[8].mxu1 %v10325_v5  ;;  %v2934_v7 = vadd.f32 %v2933_v27, %v2874_v44  ;;  %v2923_v5 = vadd.f32 %v2922_v1, %v2908_v59  ;;  %vm2983_vm6 = vcmp.eq.s32.totalorder %v8703_v17, %v8692_v35  ;;  %v8736_v42 = vadd.s32 64, %v2960_v47 }
 0x186   :  { %5871 = vmatprep.mubr.f32.mxu1 %v10327_v24  ;;  %v2943_v8 = vrot.slane %v2942_v51, 2  ;;  %v8738_v27 = vadd.s32 88, %v2960_v47  ;;  %vm2982_vm7 = vcmp.eq.s32.totalorder %v8719_v21, %v8692_v35  ;;  %v8753_v11 = vadd.s32 80, %v2960_v47 }
 0x187   :  { %5536 = vmatmul.mubr.f32.gmra.mrb[10].mxu0 %v10328_v22  ;;  %v2935_v40 = vrot.slane %v2934_v7, 2  ;;  %v2858_v22 = vsub.f32 %v7195_v53, %v7194_v4  ;;  %v8730_v4 = vadd.s32 72, %v2960_v47  ;;  %v8761_v31 = vadd.s32 104, %v2960_v47 }
 0x188   :  { %5538 = vmatprep.mubr.f32.mxu0 %v10330_v55  ;;  %v2944_v16 = vadd.f32 %v2943_v8, %v2942_v51  ;;  %v2924_v55 = vadd.f32 %v2923_v5, %v2909_v54  ;;  %v8763_v59 = vadd.s32 96, %v2960_v47  ;;  %v8767_v54 = vadd.s32 120, %v2960_v47 }
 0x189   :  { %5872 = vmatmul.mubr.f32.gmra.mrb[10].mxu1 %v10331_v63  ;;  %v2936_v15 = vadd.f32 %v2935_v40, %v2934_v7  ;;  %v2911_v63 = vmul.f32 %v2858_v22, %v2858_v22  ;;  %vm2985_vm8 = vcmp.eq.s32.totalorder %v8721_v19, %v8692_v35  ;;  %vm2984_vm9 = vcmp.eq.s32.totalorder %v8728_v50, %v8692_v35 }
 0x18a   :  { %5874 = vmatprep.mubr.f32.mxu1 %v10333_v46  ;;  %v2945_v32 = vrot.slane %v2944_v16, 1  ;;  %v2925_v60 = vadd.f32 %v2924_v55, %v2910_v38  ;;  %v8783_v55 = vadd.s32 112, %v2960_v47  ;;  %vm2987_vm10 = vcmp.eq.s32.totalorder %v8730_v4, %v8692_v35 }
 0x18b   :  { %5539 = vmatmul.mubr.f32.gmra.mrb[12].mxu0 %v10334_v10  ;;  %v2937_v25 = vrot.slane %v2936_v15, 1  ;;  %vm2986_vm11 = vcmp.eq.s32.totalorder %v8736_v42, %v8692_v35  ;;  %vm2989_vm12 = vcmp.eq.s32.totalorder %v8738_v27, %v8692_v35  ;;  %vm2988_vm13 = vcmp.eq.s32.totalorder %v8753_v11, %v8692_v35 }
 0x18c   :  { %5541 = vmatprep.mubr.f32.mxu0 %v10336_v45  ;;  %v2946_v2 = vadd.f32 %v2945_v32, %v2944_v16  ;;  %v2926_v20 = vadd.f32 %v2925_v60, %v2911_v63  ;;  %vm2991_vm14 = vcmp.eq.s32.totalorder %v8761_v31, %v8692_v35  ;;  %vm2990_vm15 = vcmp.eq.s32.totalorder %v8763_v59, %v8692_v35 }
 0x18d   :  { %5875 = vmatmul.mubr.f32.gmra.mrb[12].mxu1 %v10337_v61  ;;  %v2938_v24 = vadd.f32 %v2937_v25, %v2936_v15 }
 0x18e   :  { %5877 = vmatprep.mubr.f32.mxu1 %v10338_v56  ;;  %v8678_v46 = vmul.f32 0.03125, %v2946_v2  ;;  %2949 = vadd.xlane.f32.xlu0 %v2926_v20 }
 0x18f   :  { %5542 = vmatmul.mubr.f32.gmra.mrb[14].mxu0 %v10339_v36  ;;  %v8680_v10 = vmul.f32 0.03125, %v2938_v24 }
 0x190   :  { %10346 = vst [vmem:[#allocation68_spill] sm:$0xff] %v8678_v46  ;;  %v4510_v61 = vmul.f32 %v8678_v46, %v8678_v46  ;;  %v8698_v23 = vand.u32 4294901760, %v8678_v46  ;;  %v3814_v5 = vmul.f32 32.0, %v8678_v46 }
 0x191   :  { %5878 = vmatmul.mubr.f32.gmra.mrb[14].mxu1 %v10340_v41  ;;  %10347 = vst [vmem:[#allocation67_spill] sm:$0xff] %v8680_v10  ;;  %v3744_v45 = vmul.f32 %v8680_v10, %v8680_v10  ;;  %v9997_v41 = vmov 0.0   ;;  %v8695_v28 = vand.u32 4294901760, %v8680_v10 }
 0x192   :  { %v4511_v36 = vsel %vm3733_vm0, %v4510_v61, 0.0  ;;  %5912 = vmatprep.mubr.msk.f32.mxu0 %vm7261_vm1, %v9997_v41  ;;  %6122 = vmatprep.mubr.msk.f32.mxu1 %vm7261_vm1, %v9997_v41  ;;  %10349 = vst [vmem:[#allocation14_spill] sm:$0xff] %v8698_v23  ;;  %v8712_v29 = vsub.f32 %v8678_v46, %v8698_v23 }
 0x193   :  { %v3745_v56 = vsel %vm3733_vm0, %v3744_v45, 0.0  ;;  %4512 = vadd.xlane.f32.xlu0 %v4511_v36  ;;  %10348 = vst [vmem:[#allocation15_spill] sm:$0xff] %v8695_v28  ;;  %v8708_v39 = vsub.f32 %v8680_v10, %v8695_v28 }
 0x194   :  { %3746 = vadd.xlane.f32.xlu1 %v3745_v56  ;;  %10351 = vst [vmem:[#allocation69_spill] sm:$0xff] %v8712_v29  ;;  %v9995_v37 = vand.u32 4294901760, %v8712_v29 }
 0x195   :  { %10350 = vst [vmem:[#allocation70_spill] sm:$0xff] %v8708_v39  ;;  %v9996_v34 = vand.u32 4294901760, %v8708_v39 }
 0x196   :  { %v8788_v63 = vsub.f32 %v8712_v29, %v9995_v37 }
 0x197   :  { %v8773_v2 = vsub.f32 %v8708_v39, %v9996_v34 }
 0x246   :  { %v8714_v43 = vpop.f32.mrb[0].mxu0 }
 0x247   :  { %v3011_v3 = vsel %vm2979_vm2, %v8714_v43, 0.0  ;;  %v3052_v57 = vmul.f32 %v8714_v43, %v8714_v43  ;;  %v1351_v6 = vpop.f32.mrb[1].mxu0  ;;  %v3095_v40 = vand.u32 4294901760, %v8714_v43 }
 0x248   :  { %v5858_v48 = vpop.f32.mrb[0].mxu1  ;;  %v3010_v53 = vsel %vm2978_vm3, %v1351_v6, 0.0  ;;  %v3051_v44 = vmul.f32 %v1351_v6, %v1351_v6  ;;  %v3092_v49 = vand.u32 4294901760, %v1351_v6 }
 0x249   :  { %v3778_v51 = vsel %vm2979_vm2, %v5858_v48, 0.0  ;;  %v3819_v7 = vmul.f32 %v5858_v48, %v5858_v48  ;;  %v2717_v8 = vpop.f32.mrb[1].mxu1  ;;  %v3026_v33 = vadd.f32 %v3011_v3, %v3010_v53  ;;  %v3862_v14 = vand.u32 4294901760, %v5858_v48 }
 0x24a   :  { %v3067_v9 = vadd.f32 %v3052_v57, %v3051_v44  ;;  %v3777_v16 = vsel %vm2978_vm3, %v2717_v8, 0.0  ;;  %v8747_v15 = vpop.f32.mrb[2].mxu0  ;;  %v3818_v52 = vmul.f32 %v2717_v8, %v2717_v8  ;;  %v8776_v24 = vsub.f32 %v8714_v43, %v3095_v40 }
 0x24b   :  { %v3793_v18 = vadd.f32 %v3778_v51, %v3777_v16  ;;  %v8751_v58 = vpop.f32.mrb[3].mxu0  ;;  %v3013_v32 = vsel %vm2981_vm4, %v8747_v15, 0.0  ;;  %v8790_v60 = vsub.f32 %v1351_v6, %v3092_v49  ;;  %v3859_v20 = vand.u32 4294901760, %v2717_v8 }
 0x24c   :  { %v8759_v25 = vpop.f32.mrb[2].mxu1  ;;  %v3834_v1 = vadd.f32 %v3819_v7, %v3818_v52  ;;  %v3012_v22 = vsel %vm2980_vm5, %v8751_v58, 0.0  ;;  %v3053_v61 = vmul.f32 %v8751_v58, %v8751_v58  ;;  %v8798_v36 = vsub.f32 %v5858_v48, %v3862_v14 }
 0x24d   :  { %v8765_v30 = vpop.f32.mrb[3].mxu1  ;;  %v3027_v45 = vadd.f32 %v3026_v33, %v3012_v22  ;;  %v3101_v13 = vand.u32 4294901760, %v8747_v15  ;;  %v8813_v48 = vmul.f32 %v3814_v5, %v8678_v46  ;;  %v8817_v51 = vpack.c.bf16 %v3095_v40, %v3092_v49 }
 0x24e   :  { %v8781_v38 = vpop.f32.mrb[4].mxu0  ;;  %v3779_v47 = vsel %vm2980_vm5, %v8765_v30, 0.0  ;;  %v3820_v0 = vmul.f32 %v8765_v30, %v8765_v30  ;;  %v3068_v3 = vadd.f32 %v3067_v9, %v3053_v61  ;;  %v3868_v16 = vand.u32 4294901760, %v8759_v25 }
 0x24f   :  { %v8794_v56 = vpop.f32.mrb[5].mxu0  ;;  %v3794_v57 = vadd.f32 %v3793_v18, %v3779_v47  ;;  %10352 = vst [vmem:[#allocation72_spill] sm:$0xff] %v8813_v48  ;;  %10353 = vst [vmem:[#allocation71_spill] sm:$0xff] %v8817_v51  ;;  %v8824_v18 = vpack.c.bf16 %v3862_v14, %v3859_v20  ;;  %v3015_v52 = vsel %vm2983_vm6, %v8781_v38, 0.0  ;;  %v8833_v49 = vsub.f32 %v2717_v8, %v3859_v20 }
 0x250   :  { %v8806_v43 = vpop.f32.mrb[4].mxu1  ;;  %v3835_v44 = vadd.f32 %v3834_v1, %v3820_v0  ;;  %v3054_v1 = vmul.f32 %v8747_v15, %v8747_v15  ;;  %v8838_v22 = vsub.f32 %v8747_v15, %v3101_v13  ;;  %6686 = vmatpush3.bf16.msra.mxu0 %v8817_v51  ;;  %v3780_v61 = vsel %vm2981_vm4, %v8759_v25, 0.0 }
 0x251   :  { %v8808_v6 = vpop.f32.mrb[5].mxu1  ;;  %10354 = vst [vmem:[#allocation17_spill] sm:$0xff] %v8824_v18  ;;  %6830 = vmatpush3.bf16.msra.mxu1 %v8824_v18  ;;  %v3014_v8 = vsel %vm2982_vm7, %v8794_v56, 0.0  ;;  %v3028_v20 = vadd.f32 %v3027_v45, %v3013_v32  ;;  %v3055_v15 = vmul.f32 %v8794_v56, %v8794_v56  ;;  %6687 = vmatprep.subr.bf16.mxu0 %v9999_v26  ;;  %v3098_v62 = vand.u32 4294901760, %v8751_v58 }
 0x252   :  { %v8819_v7 = vpop.f32.mrb[6].mxu0  ;;  %v3821_v0 = vmul.f32 %v8759_v25, %v8759_v25  ;;  %v3865_v37 = vand.u32 4294901760, %v8765_v30  ;;  %v3069_v34 = vadd.f32 %v3068_v3, %v3054_v1  ;;  %6831 = vmatprep.subr.bf16.mxu1 %v9999_v26  ;;  %v8865_v32 = vsub.f32 %v8759_v25, %v3868_v16 }
 0x253   :  { %v8830_v5 = vpop.f32.mrb[7].mxu0  ;;  %v3029_v45 = vadd.f32 %v3028_v20, %v3014_v8  ;;  %v3781_v33 = vsel %vm2982_vm7, %v8808_v6, 0.0  ;;  %v3795_v53 = vadd.f32 %v3794_v57, %v3780_v61  ;;  %v3822_v25 = vmul.f32 %v8808_v6, %v8808_v6 }
 0x254   :  { %v8841_v14 = vpop.f32.mrb[6].mxu1  ;;  %v3070_v12 = vadd.f32 %v3069_v34, %v3055_v15  ;;  %v3107_v20 = vand.u32 4294901760, %v8781_v38  ;;  %v3874_v21 = vand.u32 4294901760, %v8806_v43  ;;  %v3836_v61 = vadd.f32 %v3835_v44, %v3821_v0 }
 0x255   :  { %v8855_v47 = vpop.f32.mrb[7].mxu1  ;;  %v3796_v57 = vadd.f32 %v3795_v53, %v3781_v33  ;;  %v3104_v3 = vand.u32 4294901760, %v8794_v56  ;;  %v8888_v1 = vpack.c.bf16 %v3101_v13, %v3098_v62  ;;  %v8890_v34 = vpack.c.bf16 %v3868_v16, %v3865_v37 }
 0x256   :  { %v8862_v41 = vpop.f32.mrb[8].mxu0  ;;  %v3017_v15 = vsel %vm2985_vm8, %v8819_v7, 0.0  ;;  %v8900_v44 = vsub.f32 %v8751_v58, %v3098_v62  ;;  %v3056_v33 = vmul.f32 %v8781_v38, %v8781_v38  ;;  %v3837_v0 = vadd.f32 %v3836_v61, %v3822_v25 }
 0x257   :  { %v8873_v40 = vpop.f32.mrb[9].mxu0  ;;  %10355 = vst [vmem:[#allocation74_spill] sm:$0xff] %v8888_v1  ;;  %10356 = vst [vmem:[#allocation16_spill] sm:$0xff] %v8890_v34  ;;  %v8907_v16 = vsub.f32 %v8765_v30, %v3865_v37  ;;  %v3782_v46 = vsel %vm2983_vm6, %v8806_v43, 0.0  ;;  %v3823_v53 = vmul.f32 %v8806_v43, %v8806_v43  ;;  %6689 = vmatpush3.bf16.msra.mxu0 %v8888_v1  ;;  %6833 = vmatpush3.bf16.msra.mxu1 %v8890_v34  ;;  %v10358_v61 = vmov 0.0|0.0  }
 0x258   :  { %v8879_v8 = vpop.f32.mrb[8].mxu1  ;;  %v3016_v58 = vsel %vm2984_vm9, %v8830_v5, 0.0  ;;  %v8924_v37 = vsub.f32 %v8781_v38, %v3107_v20  ;;  %v3871_v17 = vand.u32 4294901760, %v8808_v6  ;;  %v3030_v30 = vadd.f32 %v3029_v45, %v3015_v52  ;;  %6690 = vmatprep.subr.bf16.mxu0 %v10358_v61  ;;  %6834 = vmatprep.subr.bf16.mxu1 %v10358_v61 }
 0x259   :  { %v8885_v9 = vpop.f32.mrb[9].mxu1  ;;  %v3057_v25 = vmul.f32 %v8830_v5, %v8830_v5  ;;  %v8934_v34 = vsub.f32 %v8806_v43, %v3874_v21  ;;  %v8937_v1 = vsub.f32 %v8794_v56, %v3104_v3  ;;  %v3071_v38 = vadd.f32 %v3070_v12, %v3056_v33 }
 0x25a   :  { %v8896_v26 = vpop.f32.mrb[10].mxu0  ;;  %10357 = vst [vmem:[#allocation73_spill] sm:$0xff] %v8924_v37  ;;  %v3783_v52 = vsel %vm2984_vm9, %v8855_v47, 0.0  ;;  %v3113_v18 = vand.u32 4294901760, %v8819_v7  ;;  %v3031_v29 = vadd.f32 %v3030_v30, %v3016_v58  ;;  %v3797_v51 = vadd.f32 %v3796_v57, %v3782_v46 }
 0x25b   :  { %v8904_v13 = vpop.f32.mrb[11].mxu0  ;;  %10359 = vst [vmem:[#allocation76_spill] sm:$0xff] %v8934_v34  ;;  %v3824_v43 = vmul.f32 %v8855_v47, %v8855_v47  ;;  %v3880_v33 = vand.u32 4294901760, %v8841_v14  ;;  %v3072_v50 = vadd.f32 %v3071_v38, %v3057_v25  ;;  %v3838_v39 = vadd.f32 %v3837_v0, %v3823_v53 }
 0x25c   :  { %v8921_v62 = vpop.f32.mrb[10].mxu1  ;;  %v3798_v58 = vadd.f32 %v3797_v51, %v3783_v52  ;;  %v8959_v46 = vpack.c.bf16 %v3107_v20, %v3104_v3  ;;  %v8961_v57 = vpack.c.bf16 %v3874_v21, %v3871_v17  ;;  %v3019_v53 = vsel %vm2987_vm10, %v8862_v41, 0.0 }
 0x25d   :  { %v8931_v10 = vpop.f32.mrb[11].mxu1  ;;  %v3839_v25 = vadd.f32 %v3838_v39, %v3824_v43  ;;  %v8975_v3 = vsub.f32 %v8808_v6, %v3871_v17  ;;  %v3058_v20 = vmul.f32 %v8819_v7, %v8819_v7  ;;  %v8980_v21 = vsub.f32 %v8819_v7, %v3113_v18 }
 0x25e   :  { %v8945_v45 = vpop.f32.mrb[12].mxu0  ;;  %10360 = vst [vmem:[#allocation75_spill] sm:$0xff] %v8959_v46  ;;  %10361 = vst [vmem:[#allocation19_spill] sm:$0xff] %v8961_v57  ;;  %6692 = vmatpush3.bf16.msra.mxu0 %v8959_v46  ;;  %6836 = vmatpush3.bf16.msra.mxu1 %v8961_v57  ;;  %v8987_v38 = vsub.f32 %v8841_v14, %v3880_v33  ;;  %v3018_v6 = vsel %vm2986_vm11, %v8873_v40, 0.0  ;;  %v3032_v17 = vadd.f32 %v3031_v29, %v3017_v15 }
 0x25f   :  { %v8950_v56 = vpop.f32.mrb[13].mxu0  ;;  %v3059_v52 = vmul.f32 %v8873_v40, %v8873_v40  ;;  %6693 = vmatprep.subr.bf16.mxu0 %v10358_v61  ;;  %6837 = vmatprep.subr.bf16.mxu1 %v10358_v61  ;;  %v3784_v43 = vsel %vm2985_vm8, %v8841_v14, 0.0  ;;  %v3110_v48 = vand.u32 4294901760, %v8830_v5  ;;  %v3877_v12 = vand.u32 4294901760, %v8855_v47 }
 0x260   :  { %v8956_v23 = vpop.f32.mrb[12].mxu1  ;;  %10362 = vst [vmem:[#allocation79_spill] sm:$0xff] %v8987_v38  ;;  %v3073_v51 = vadd.f32 %v3072_v50, %v3058_v20  ;;  %v3825_v15 = vmul.f32 %v8841_v14, %v8841_v14  ;;  %v3033_v28 = vadd.f32 %v3032_v17, %v3018_v6  ;;  %v3785_v57 = vsel %vm2986_vm11, %v8885_v9, 0.0 }
 0x261   :  { %v8963_v30 = vpop.f32.mrb[13].mxu1  ;;  %v3799_v46 = vadd.f32 %v3798_v58, %v3784_v43  ;;  %v3826_v20 = vmul.f32 %v8885_v9, %v8885_v9  ;;  %v3119_v6 = vand.u32 4294901760, %v8862_v41  ;;  %v3886_v42 = vand.u32 4294901760, %v8879_v8 }
 0x262   :  { %v8971_v0 = vpop.f32.mrb[14].mxu0  ;;  %v3074_v50 = vadd.f32 %v3073_v51, %v3059_v52  ;;  %v3840_v37 = vadd.f32 %v3839_v25, %v3825_v15  ;;  %v9024_v58 = vpack.c.bf16 %v3113_v18, %v3110_v48  ;;  %v9026_v43 = vpack.c.bf16 %v3880_v33, %v3877_v12 }
 0x263   :  { %v8984_v39 = vpop.f32.mrb[15].mxu0  ;;  %v3800_v17 = vadd.f32 %v3799_v46, %v3785_v57  ;;  %v3021_v51 = vsel %vm2989_vm12, %v8896_v26, 0.0  ;;  %v9033_v52 = vsub.f32 %v8830_v5, %v3110_v48  ;;  %v9036_v46 = vsub.f32 %v8855_v47, %v3877_v12 }
 0x264   :  { %v8997_v7 = vpop.f32.mrb[14].mxu1  ;;  %10363 = vst [vmem:[#allocation18_spill] sm:$0xff] %v9024_v58  ;;  %10364 = vst [vmem:[#allocation78_spill] sm:$0xff] %v9026_v43  ;;  %v3060_v57 = vmul.f32 %v8862_v41, %v8862_v41  ;;  %v3841_v25 = vadd.f32 %v3840_v37, %v3826_v20  ;;  %v3786_v18 = vsel %vm2987_vm10, %v8879_v8, 0.0  ;;  %v3827_v33 = vmul.f32 %v8879_v8, %v8879_v8 }
 0x265   :  { %v9005_v29 = vpop.f32.mrb[15].mxu1  ;;  %v3116_v15 = vand.u32 4294901760, %v8873_v40  ;;  %6695 = vmatpush3.bf16.msra.mxu0 %v9024_v58  ;;  %6839 = vmatpush3.bf16.msra.mxu1 %v9026_v43  ;;  %v3020_v48 = vsel %vm2988_vm13, %v8904_v13, 0.0  ;;  %v9054_v5 = vsub.f32 %v8862_v41, %v3119_v6  ;;  %v3883_v4 = vand.u32 4294901760, %v8885_v9 }
 0x266   :  { %v3034_v47 = vadd.f32 %v3033_v28, %v3019_v53  ;;  %v3061_v37 = vmul.f32 %v8904_v13, %v8904_v13  ;;  %6696 = vmatprep.subr.bf16.mxu0 %v10358_v61  ;;  %6840 = vmatprep.subr.bf16.mxu1 %v10358_v61  ;;  %v9062_v12 = vsub.f32 %v8879_v8, %v3886_v42  ;;  %v3125_v20 = vand.u32 4294901760, %v8896_v26 }
 0x267   :  { %v3075_v14 = vadd.f32 %v3074_v50, %v3060_v57  ;;  %v3787_v41 = vsel %vm2988_vm13, %v8931_v10, 0.0  ;;  %vm2993_vm2 = vcmp.eq.s32.totalorder %v8767_v54, %v8692_v35  ;;  %v3892_v28 = vand.u32 4294901760, %v8921_v62 }
 0x268   :  { %v3035_v53 = vadd.f32 %v3034_v47, %v3020_v48  ;;  %v3801_v34 = vadd.f32 %v3800_v17, %v3786_v18  ;;  %v3828_v19 = vmul.f32 %v8931_v10, %v8931_v10  ;;  %vm2992_vm3 = vcmp.eq.s32.totalorder %v8783_v55, %v8692_v35 }
 0x269   :  { %v9078_v50 = vsub.f32 %v8873_v40, %v3116_v15  ;;  %v9080_v11 = vadd.f32 %v3075_v14, %v3061_v37  ;;  %v3842_v57 = vadd.f32 %v3841_v25, %v3827_v33  ;;  %v9083_v38 = vpack.c.bf16 %v3119_v6, %v3116_v15 }
 0x26a   :  { %v3802_v58 = vadd.f32 %v3801_v34, %v3787_v41  ;;  %v9085_v17 = vpack.c.bf16 %v3886_v42, %v3883_v4  ;;  %v9088_v18 = vsub.f32 %v8885_v9, %v3883_v4  ;;  %v9091_v48 = vsub.f32 %v8896_v26, %v3125_v20 }
 0x26b   :  { %v9093_v47 = vadd.f32 %v3842_v57, %v3828_v19  ;;  %v3023_v40 = vsel %vm2991_vm14, %v8945_v45, 0.0  ;;  %v9102_v6 = vsub.f32 %v8921_v62, %v3892_v28  ;;  %v3122_v9 = vand.u32 4294901760, %v8904_v13  ;;  %6698 = vmatpush3.bf16.msra.mxu0 %v9083_v38 }
 0x26c   :  { %6842 = vmatpush3.bf16.msra.mxu1 %v9085_v17  ;;  %v3889_v42 = vand.u32 4294901760, %v8931_v10  ;;  %v3022_v25 = vsel %vm2990_vm15, %v8950_v56, 0.0  ;;  %v3036_v33 = vadd.f32 %v3035_v53, %v3021_v51  ;;  %6699 = vmatprep.subr.bf16.mxu0 %v10358_v61  ;;  %v3062_v15 = vmul.f32 %v8896_v26, %v8896_v26 }
 0x26d   :  { %6843 = vmatprep.subr.bf16.mxu1 %v10358_v61  ;;  %v3788_v4 = vsel %vm2989_vm12, %v8921_v62, 0.0  ;;  %v3829_v37 = vmul.f32 %v8921_v62, %v8921_v62  ;;  %v3789_v51 = vsel %vm2990_vm15, %v8963_v30, 0.0  ;;  %v9131_v14 = vsub.f32 %v8904_v13, %v3122_v9 }
 0x26e   :  { %v3037_v57 = vadd.f32 %v3036_v33, %v3022_v25  ;;  %v3803_v34 = vadd.f32 %v3802_v58, %v3788_v4  ;;  %v9135_v27 = vmul.f32 %v8945_v45, %v8945_v45  ;;  %v9137_v62 = vpack.c.bf16 %v3125_v20, %v3122_v9 }
 0x26f   :  { %v3131_v59 = vand.u32 4294901760, %v8945_v45  ;;  %v3898_v19 = vand.u32 4294901760, %v8956_v23  ;;  %v9141_v43 = vpack.c.bf16 %v3892_v28, %v3889_v42  ;;  %v9144_v58 = vsub.f32 %v8931_v10, %v3889_v42 }
 0x270   :  { %v3804_v41 = vadd.f32 %v3803_v34, %v3789_v51  ;;  %v3128_v25 = vand.u32 4294901760, %v8950_v56  ;;  %v3895_v13 = vand.u32 4294901760, %v8963_v30  ;;  %6701 = vmatpush3.bf16.msra.mxu0 %v9137_v62  ;;  %v3025_v20 = vsel %vm2993_vm2, %v8971_v0, 0.0 }
 0x271   :  { %v3790_v28 = vsel %vm2991_vm14, %v8956_v23, 0.0  ;;  %6845 = vmatpush3.bf16.msra.mxu1 %v9141_v43  ;;  %v3904_v10 = vand.u32 4294901760, %v8997_v7  ;;  %v3024_v34 = vsel %vm2992_vm3, %v8984_v39, 0.0  ;;  %v3038_v9 = vadd.f32 %v3037_v57, %v3023_v40  ;;  %6702 = vmatprep.subr.bf16.mxu0 %v10358_v61 }
 0x272   :  { %v10035_v33 = vand.u32 4294901760, %v8984_v39  ;;  %v3791_v31 = vsel %vm2992_vm3, %v9005_v29, 0.0  ;;  %v3805_v4 = vadd.f32 %v3804_v41, %v3790_v28  ;;  %6846 = vmatprep.subr.bf16.mxu1 %v10358_v61  ;;  %v9172_v51 = vsub.f32 %v8945_v45, %v3131_v59 }
 0x273   :  { %v9175_v26 = vsub.f32 %v8956_v23, %v3898_v19  ;;  %v3039_v40 = vadd.f32 %v3038_v9, %v3024_v34  ;;  %v10034_v57 = vand.u32 4294901760, %v9005_v29  ;;  %v3831_v53 = vmul.f32 %v8956_v23, %v8956_v23 }
 0x274   :  { %v3806_v8 = vadd.f32 %v3805_v4, %v3791_v31  ;;  %v9180_v42 = vpack.c.bf16 %v3131_v59, %v3128_v25  ;;  %v9182_v55 = vpack.c.bf16 %v3898_v19, %v3895_v13  ;;  %v9185_v41 = vsub.f32 %v8950_v56, %v3128_v25 }
 0x275   :  { %v3830_v45 = vmul.f32 %v8963_v30, %v8963_v30  ;;  %v3792_v28 = vsel %vm2993_vm2, %v8997_v7, 0.0  ;;  %v9193_v34 = vadd.f32 %v3039_v40, %v3025_v20  ;;  %v10366_v19 = vand.u32 4294901760, %v8971_v0 }
 0x276   :  { %v3807_v9 = vadd.f32 %v3806_v8, %v3792_v28  ;;  %6704 = vmatpush3.bf16.msra.mxu0 %v9180_v42  ;;  %6848 = vmatpush3.bf16.msra.mxu1 %v9182_v55  ;;  %v9206_v25 = vpack.c.bf16 %v3904_v10, %v10034_v57  ;;  %v3063_v20 = vmul.f32 %v8950_v56, %v8950_v56  ;;  %v10369_v56 = vand.u32 4294901760, %v8790_v60 }
 0x277   :  { %10365 = vst [vmem:[#allocation83_spill] sm:$0xff] %v9193_v34  ;;  %v9202_v59 = vpack.c.bf16 %v10366_v19, %v10035_v33  ;;  %6705 = vmatprep.subr.bf16.mxu0 %v10358_v61  ;;  %6849 = vmatprep.subr.bf16.mxu1 %v10358_v61  ;;  %v9216_v31 = vsub.f32 %v8963_v30, %v3895_v13  ;;  %v10370_v35 = vand.u32 4294901760, %v8776_v24  ;;  %v10372_v57 = vand.u32 4294901760, %v8798_v36 }
 0x278   :  { %10368 = vst [vmem:[#allocation87_spill] sm:$0xff] %v9206_v25  ;;  %v9219_v4 = vsub.f32 %v8997_v7, %v3904_v10  ;;  %v3808_v40 = vrot.slane %v3807_v9, 4  ;;  %v3844_v28 = vadd.f32 %v9093_v47, %v3829_v37  ;;  %v3832_v19 = vmul.f32 %v9005_v29, %v9005_v29 }
 0x279   :  { %10367 = vst [vmem:[#allocation82_spill] sm:$0xff] %v9202_v59  ;;  %v3077_v8 = vadd.f32 %v9080_v11, %v3062_v15  ;;  %v3186_v54 = vsub.f32 %v8790_v60, %v10369_v56  ;;  %v3193_v30 = vsub.f32 %v8776_v24, %v10370_v35  ;;  %v10371_v37 = vand.u32 4294901760, %v8833_v49 }
 0x27a   :  { %v3809_v10 = vadd.f32 %v3808_v40, %v3807_v9  ;;  %6707 = vmatpush3.bf16.msra.mxu0 %v9202_v59  ;;  %6851 = vmatpush3.bf16.msra.mxu1 %v9206_v25  ;;  %v3845_v47 = vadd.f32 %v3844_v28, %v3830_v45  ;;  %v3065_v15 = vmul.f32 %v8984_v39, %v8984_v39  ;;  %v10376_v28 = vmov 0.0  }
 0x27b   :  { %v3953_v11 = vsub.f32 %v8833_v49, %v10371_v37  ;;  %v3078_v56 = vadd.f32 %v3077_v8, %v3063_v20  ;;  %6708 = vmatprep.subr.bf16.mxu0 %v10358_v61  ;;  %6852 = vmatprep.subr.bf16.mxu1 %v10358_v61  ;;  %v3187_v35 = vand.u32 4294901760, %v3186_v54  ;;  %v3194_v13 = vand.u32 4294901760, %v3193_v30 }
 0x27c   :  { %v3810_v9 = vrot.slane %v3809_v10, 2  ;;  %v3846_v40 = vadd.f32 %v3845_v47, %v3831_v53  ;;  %v3960_v45 = vsub.f32 %v8798_v36, %v10372_v57  ;;  %v3833_v37 = vmul.f32 %v8997_v7, %v8997_v7 }
 0x27d   :  { %v3954_v23 = vand.u32 4294901760, %v3953_v11  ;;  %v3079_v8 = vadd.f32 %v3078_v56, %v9135_v27  ;;  %v10373_v20 = vand.u32 4294901760, %v8773_v2  ;;  %v6709_v33 = vpack.c.bf16 %v3194_v13, %v3187_v35 }
 0x27e   :  { %v10374_v54 = vand.u32 4294901760, %v8788_v63  ;;  %v3811_v53 = vadd.f32 %v3810_v9, %v3809_v10  ;;  %v3847_v30 = vadd.f32 %v3846_v40, %v3832_v19  ;;  %v3961_v47 = vand.u32 4294901760, %v3960_v45 }
 0x27f   :  { %5913 = vmatmul.mubr.f32.vlgmr.msra.gmra.mrb[16].mxu0 %v10373_v20  ;;  %v10375_v11 = vand.u32 4294901760, %v8900_v44  ;;  %v3066_v2 = vmul.f32 %v8971_v0, %v8971_v0  ;;  %v3080_v7 = vadd.f32 %v3079_v8, %v3065_v15  ;;  %v10377_v63 = vand.u32 4294901760, %v8838_v22 }
 0x280   :  { %6123 = vmatmul.mubr.f32.vlgmr.msra.gmra.mrb[16].mxu1 %v10374_v54  ;;  %5947 = vmatprep.mubr.msk.f32.mxu0 %vm7261_vm1, %v10376_v28  ;;  %v10378_v19 = vand.u32 4294901760, %v8907_v16  ;;  %v3812_v10 = vrot.slane %v3811_v53, 1  ;;  %v3848_v56 = vadd.f32 %v3847_v30, %v3833_v37  ;;  %v6853_v35 = vpack.c.bf16 %v3961_v47, %v3954_v23 }
 0x281   :  { %v3200_v57 = vsub.f32 %v8900_v44, %v10375_v11  ;;  %6157 = vmatprep.mubr.msk.f32.mxu1 %vm7261_vm1, %v10376_v28  ;;  %6710 = vmatpush3.bf16.msra.mxu0 %v6709_v33  ;;  %v3207_v27 = vsub.f32 %v8838_v22, %v10377_v63  ;;  %v10379_v40 = vand.u32 4294901760, %v8971_v0  ;;  %v10380_v33 = vand.u32 4294901760, %v8984_v39 }
 0x282   :  { %v3967_v13 = vsub.f32 %v8907_v16, %v10378_v19  ;;  %6711 = vmatprep.subr.bf16.mxu0 %v10358_v61  ;;  %v3081_v8 = vadd.f32 %v3080_v7, %v3066_v2  ;;  %v3813_v54 = vadd.f32 %v3812_v10, %v3811_v53  ;;  %3849 = vadd.xlane.f32.xlu0 %v3848_v56  ;;  %v10381_v23 = vand.u32 4294901760, %v8865_v32  ;;  %v10384_v2 = vld [vmem:[#allocation73_spill] sm:$0xff] }
 0x283   :  { %v3201_v9 = vand.u32 4294901760, %v3200_v57  ;;  %v9271_v45 = vsub.f32 %v8971_v0, %v10379_v40  ;;  %v9276_v15 = vsub.f32 %v8984_v39, %v10380_v33  ;;  %v3208_v20 = vand.u32 4294901760, %v3207_v27  ;;  %6854 = vmatpush3.bf16.msra.mxu1 %v6853_v35  ;;  %v10386_v27 = vld [vmem:[#allocation72_spill] sm:$0xff] }
 0x284   :  { %v3968_v37 = vand.u32 4294901760, %v3967_v13  ;;  %v3974_v30 = vsub.f32 %v8865_v32, %v10381_v23  ;;  %v10382_v47 = vand.u32 4294901760, %v8937_v1  ;;  %v10383_v57 = vand.u32 4294901760, %v9005_v29  ;;  %3082 = vadd.xlane.f32.xlu1 %v3081_v8  ;;  %6855 = vmatprep.subr.bf16.mxu1 %v10358_v61  ;;  %v10388_v33 = vld [vmem:[#allocation76_spill] sm:$0xff] }
 0x285   :  { %v6712_v53 = vpack.c.bf16 %v3208_v20, %v3201_v9  ;;  %v10385_v7 = vand.u32 4294901760, %v10384_v2  ;;  %v3816_v19 = vsub.f32 %v3813_v54, %v10386_v27  ;;  %v10387_v56 = vand.u32 4294901760, %v8975_v3 }
 0x286   :  { %v3214_v0 = vsub.f32 %v8937_v1, %v10382_v47  ;;  %v9288_v39 = vsub.f32 %v9005_v29, %v10383_v57  ;;  %v3975_v13 = vand.u32 4294901760, %v3974_v30  ;;  %v10389_v8 = vand.u32 4294901760, %v10388_v33 }
 0x287   :  { %v3221_v63 = vsub.f32 %v10384_v2, %v10385_v7  ;;  %v3981_v35 = vsub.f32 %v8975_v3, %v10387_v56  ;;  %6713 = vmatpush3.bf16.msra.mxu0 %v6712_v53  ;;  %v10390_v20 = vand.u32 4294901760, %v9033_v52  ;;  %v9305_v47 = vmul.f32 0.032258064, %v3816_v19 }
 0x288   :  { %v3215_v10 = vand.u32 4294901760, %v3214_v0  ;;  %v3988_v9 = vsub.f32 %v10388_v33, %v10389_v8  ;;  %v6856_v54 = vpack.c.bf16 %v3975_v13, %v3968_v37  ;;  %6714 = vmatprep.subr.bf16.mxu0 %v10358_v61  ;;  %v10391_v0 = vand.u32 4294901760, %v8980_v21  ;;  %v10393_v13 = vld [vmem:[#allocation79_spill] sm:$0xff] }
 0x289   :  { %v3222_v29 = vand.u32 4294901760, %v3221_v63  ;;  %v3228_v23 = vsub.f32 %v9033_v52, %v10390_v20  ;;  %v3982_v30 = vand.u32 4294901760, %v3981_v35  ;;  %v10392_v19 = vand.u32 4294901760, %v9036_v46 }
 0x28a   :  { %v3235_v57 = vsub.f32 %v8980_v21, %v10391_v0  ;;  %v3989_v63 = vand.u32 4294901760, %v3988_v9  ;;  %6857 = vmatpush3.bf16.msra.mxu1 %v6856_v54  ;;  %v10394_v20 = vand.u32 4294901760, %v10393_v13  ;;  %v9320_v11 = vadd.f32 0.0001, %v9305_v47 }
 0x28b   :  { %v6715_v7 = vpack.c.bf16 %v3222_v29, %v3215_v10  ;;  %v3229_v27 = vand.u32 4294901760, %v3228_v23  ;;  %v3995_v37 = vsub.f32 %v9036_v46, %v10392_v19  ;;  %6858 = vmatprep.subr.bf16.mxu1 %v10358_v61  ;;  %v10395_v29 = vand.u32 4294901760, %v9078_v50 }
 0x28c   :  { %v3236_v8 = vand.u32 4294901760, %v3235_v57  ;;  %v4002_v35 = vsub.f32 %v10393_v13, %v10394_v20  ;;  %v6859_v10 = vpack.c.bf16 %v3989_v63, %v3982_v30  ;;  %v10396_v23 = vand.u32 4294901760, %v9054_v5 }
 0x28d   :  { %6716 = vmatpush3.bf16.msra.mxu0 %v6715_v7  ;;  %v3242_v9 = vsub.f32 %v9078_v50, %v10395_v29  ;;  %v3996_v57 = vand.u32 4294901760, %v3995_v37  ;;  %v10397_v20 = vand.u32 4294901760, %v9088_v18  ;;  %v10398_v30 = vand.u32 4294901760, %v9062_v12 }
 0x28e   :  { %v3249_v54 = vsub.f32 %v9054_v5, %v10396_v23  ;;  %6717 = vmatprep.subr.bf16.mxu0 %v10358_v61  ;;  %v6718_v0 = vpack.c.bf16 %v3236_v8, %v3229_v27  ;;  %v4003_v19 = vand.u32 4294901760, %v4002_v35  ;;  %v10399_v29 = vand.u32 4294901760, %v9131_v14  ;;  %6860 = vmatpush3.bf16.msra.mxu1 %v6859_v10 }
 0x28f   :  { %v4009_v56 = vsub.f32 %v9088_v18, %v10397_v20  ;;  %v3243_v40 = vand.u32 4294901760, %v3242_v9  ;;  %v4016_v63 = vsub.f32 %v9062_v12, %v10398_v30  ;;  %v10400_v27 = vand.u32 4294901760, %v9091_v48  ;;  %6861 = vmatprep.subr.bf16.mxu1 %v10358_v61 }
 0x290   :  { %v3250_v7 = vand.u32 4294901760, %v3249_v54  ;;  %v3256_v53 = vsub.f32 %v9131_v14, %v10399_v29  ;;  %v6862_v23 = vpack.c.bf16 %v4003_v19, %v3996_v57  ;;  %v10401_v37 = vand.u32 4294901760, %v9144_v58 }
 0x291   :  { %v4010_v34 = vand.u32 4294901760, %v4009_v56  ;;  %v3263_v8 = vsub.f32 %v9091_v48, %v10400_v27  ;;  %6719 = vmatpush3.bf16.msra.mxu0 %v6718_v0  ;;  %v4017_v54 = vand.u32 4294901760, %v4016_v63  ;;  %v10402_v30 = vand.u32 4294901760, %v9102_v6 }
 0x292   :  { %v4023_v35 = vsub.f32 %v9144_v58, %v10401_v37  ;;  %v6721_v9 = vpack.c.bf16 %v3250_v7, %v3243_v40  ;;  %v3257_v20 = vand.u32 4294901760, %v3256_v53  ;;  %6720 = vmatprep.subr.bf16.mxu0 %v10358_v61  ;;  %v10403_v19 = vand.u32 4294901760, %v9185_v41  ;;  %6863 = vmatpush3.bf16.msra.mxu1 %v6862_v23 }
 0x293   :  { %v4030_v10 = vsub.f32 %v9102_v6, %v10402_v30  ;;  %v3264_v56 = vand.u32 4294901760, %v3263_v8  ;;  %v10404_v27 = vand.u32 4294901760, %v9172_v51  ;;  %v6865_v0 = vpack.c.bf16 %v4017_v54, %v4010_v34  ;;  %6864 = vmatprep.subr.bf16.mxu1 %v10358_v61 }
 0x294   :  { %v4024_v57 = vand.u32 4294901760, %v4023_v35  ;;  %v3270_v29 = vsub.f32 %v9185_v41, %v10403_v19  ;;  %v10405_v53 = vand.u32 4294901760, %v9216_v31  ;;  %v10406_v63 = vand.u32 4294901760, %v9175_v26 }
 0x295   :  { %v3277_v37 = vsub.f32 %v9172_v51, %v10404_v27  ;;  %v4031_v40 = vand.u32 4294901760, %v4030_v10  ;;  %v6724_v8 = vpack.c.bf16 %v3264_v56, %v3257_v20  ;;  %v10407_v19 = vand.u32 4294901760, %v9276_v15  ;;  %6722 = vmatpush3.bf16.msra.mxu0 %v6721_v9 }
 0x296   :  { %v4037_v7 = vsub.f32 %v9216_v31, %v10405_v53  ;;  %v4044_v30 = vsub.f32 %v9175_v26, %v10406_v63  ;;  %v3271_v35 = vand.u32 4294901760, %v3270_v29  ;;  %v10408_v27 = vand.u32 4294901760, %v9271_v45  ;;  %6723 = vmatprep.subr.bf16.mxu0 %v10358_v61  ;;  %6866 = vmatpush3.bf16.msra.mxu1 %v6865_v0 }
 0x297   :  { %v3278_v25 = vand.u32 4294901760, %v3277_v37  ;;  %v3284_v59 = vsub.f32 %v9276_v15, %v10407_v19  ;;  %v6868_v34 = vpack.c.bf16 %v4031_v40, %v4024_v57  ;;  %v10409_v56 = vand.u32 4294901760, %v9288_v39  ;;  %6867 = vmatprep.subr.bf16.mxu1 %v10358_v61 }
 0x298   :  { %v4038_v54 = vand.u32 4294901760, %v4037_v7  ;;  %v4045_v10 = vand.u32 4294901760, %v4044_v30  ;;  %v3291_v53 = vsub.f32 %v9271_v45, %v10408_v27  ;;  %v10410_v37 = vand.u32 4294901760, %v9219_v4 }
 0x299   :  { %v6727_v23 = vpack.c.bf16 %v3278_v25, %v3271_v35  ;;  %v3285_v20 = vand.u32 4294901760, %v3284_v59  ;;  %v4051_v29 = vsub.f32 %v9288_v39, %v10409_v56  ;;  %v6733_v40 = vpack.c.bf16 %v8776_v24, %v8790_v60  ;;  %6725 = vmatpush3.bf16.msra.mxu0 %v6724_v8 }
 0x29a   :  { %v4058_v63 = vsub.f32 %v9219_v4, %v10410_v37  ;;  %v6871_v9 = vpack.c.bf16 %v4045_v10, %v4038_v54  ;;  %v3292_v57 = vand.u32 4294901760, %v3291_v53  ;;  %7182 = vrsqrt.f32 %v9320_v11  ;;  %6726 = vmatprep.subr.bf16.mxu0 %v10358_v61  ;;  %6869 = vmatpush3.bf16.msra.mxu1 %v6868_v34  ;;  %v2950_v37 = vpop.xlane.xlu0 %2949 }
 0x29b   :  { %v4052_v30 = vand.u32 4294901760, %v4051_v29  ;;  %6870 = vmatprep.subr.bf16.mxu1 %v10358_v61  ;;  %v10411_v29 = vand.u32 4294901760, %v8790_v60  ;;  %v10412_v56 = vand.u32 4294901760, %v8776_v24  ;;  %v10415_v34 = vand.u32 4294901760, %v8900_v44 }
 0x29c   :  { %v4059_v25 = vand.u32 4294901760, %v4058_v63  ;;  %v6730_v59 = vpack.c.bf16 %v3292_v57, %v3285_v20  ;;  %v10413_v63 = vand.u32 4294901760, %v8833_v49  ;;  %v10414_v20 = vand.u32 4294901760, %v8798_v36 }
 0x29d   :  { %6728 = vmatpush3.bf16.msra.mxu0 %v6727_v23  ;;  %v9417_v23 = vpack.c.bf16 %v10412_v56, %v10411_v29  ;;  %v10416_v53 = vand.u32 4294901760, %v8838_v22  ;;  %v10418_v60 = vand.u32 4294901760, %v8865_v32  ;;  %v10419_v24 = vand.u32 4294901760, %v8937_v1 }
 0x29e   :  { %v6874_v19 = vpack.c.bf16 %v4059_v25, %v4052_v30  ;;  %v2951_v30 = vrot.slane %v2950_v37, 4  ;;  %6729 = vmatprep.subr.bf16.mxu0 %v10358_v61  ;;  %v9423_v57 = vpack.c.bf16 %v10414_v20, %v10413_v63  ;;  %v10417_v25 = vand.u32 4294901760, %v8907_v16  ;;  %6872 = vmatpush3.bf16.msra.mxu1 %v6871_v9 }
 0x29f   :  { %v9429_v8 = vpack.c.bf16 %v10416_v53, %v10415_v34  ;;  %v10420_v56 = vand.u32 4294901760, %v10384_v2  ;;  %v10421_v20 = vand.u32 4294901760, %v8975_v3  ;;  %v10422_v63 = vand.u32 4294901760, %v10388_v33  ;;  %6873 = vmatprep.subr.bf16.mxu1 %v10358_v61 }
 0x2a0   :  { %v9435_v27 = vpack.c.bf16 %v10418_v60, %v10417_v25  ;;  %v10423_v53 = vand.u32 4294901760, %v9033_v52  ;;  %v10424_v34 = vand.u32 4294901760, %v8980_v21  ;;  %v10425_v25 = vand.u32 4294901760, %v9036_v46 }
 0x2a1   :  { %v9441_v29 = vpack.c.bf16 %v10420_v56, %v10419_v24  ;;  %v9447_v10 = vpack.c.bf16 %v10422_v63, %v10421_v20  ;;  %v10426_v60 = vand.u32 4294901760, %v10393_v13  ;;  %v10427_v24 = vand.u32 4294901760, %v9078_v50  ;;  %6731 = vmatpush3.bf16.msra.mxu0 %v6730_v59 }
 0x2a2   :  { %v9453_v0 = vpack.c.bf16 %v10424_v34, %v10423_v53  ;;  %v10428_v56 = vand.u32 4294901760, %v9054_v5  ;;  %v10430_v20 = vand.u32 4294901760, %v9088_v18  ;;  %v10431_v63 = vand.u32 4294901760, %v9062_v12  ;;  %6732 = vmatprep.subr.bf16.mxu0 %v10358_v61  ;;  %6875 = vmatpush3.bf16.msra.mxu1 %v6874_v19 }
 0x2a3   :  { %v9459_v54 = vpack.c.bf16 %v10426_v60, %v10425_v25  ;;  %v10433_v9 = vand.u32 4294901760, %v9131_v14  ;;  %v10434_v53 = vand.u32 4294901760, %v9091_v48  ;;  %v10436_v25 = vand.u32 4294901760, %v9144_v58  ;;  %6876 = vmatprep.subr.bf16.mxu1 %v10358_v61 }
 0x2a4   :  { %v9465_v35 = vpack.c.bf16 %v10428_v56, %v10427_v24  ;;  %v9471_v7 = vpack.c.bf16 %v10431_v63, %v10430_v20  ;;  %v10437_v60 = vand.u32 4294901760, %v9102_v6  ;;  %v10439_v56 = vand.u32 4294901760, %v9185_v41 }
 0x2a5   :  { %v9477_v34 = vpack.c.bf16 %v10434_v53, %v10433_v9  ;;  %v10440_v20 = vand.u32 4294901760, %v9172_v51  ;;  %v10443_v9 = vand.u32 4294901760, %v9175_v26  ;;  %v10445_v59 = vand.u32 4294901760, %v9276_v15 }
 0x2a6   :  { %10429 = vst [vmem:[#allocation86_spill] sm:$0xff] %v9465_v35  ;;  %10432 = vst [vmem:[#allocation91_spill] sm:$0xff] %v9471_v7  ;;  %v9484_v24 = vpack.c.bf16 %v10437_v60, %v10436_v25  ;;  %v10442_v7 = vand.u32 4294901760, %v9216_v31  ;;  %v10446_v25 = vand.u32 4294901760, %v9271_v45  ;;  %vm4538_vm4 = vcmp.eq.f32.partialorder %v9320_v11, inf }
 0x2a7   :  { %10435 = vst [vmem:[#allocation90_spill] sm:$0xff] %v9477_v34  ;;  %v9490_v63 = vpack.c.bf16 %v10440_v20, %v10439_v56  ;;  %v7183_v34 = vpop.eup %7182  ;;  %v10448_v56 = vand.u32 4294901760, %v9219_v4  ;;  %vm4540_vm5 = vcmp.eq.f32.partialorder %v9320_v11, 0.0 }
 0x2a8   :  { %10438 = vst [vmem:[#allocation95_spill] sm:$0xff] %v9484_v24  ;;  %v9496_v53 = vpack.c.bf16 %v10443_v9, %v10442_v7  ;;  %v9503_v60 = vpack.c.bf16 %v10446_v25, %v10445_v59  ;;  %v10447_v24 = vand.u32 4294901760, %v9288_v39  ;;  %v4537_v35 = vmul.f32 %v7183_v34, %v9320_v11  ;;  %v10449_v7 = vld [vmem:[#allocation15_spill] sm:$0xff] }
 0x2a9   :  { %10441 = vst [vmem:[#allocation94_spill] sm:$0xff] %v9490_v63  ;;  %v2952_v63 = vadd.f32 %v2951_v30, %v2950_v37  ;;  %5948 = vmatmul.mubr.f32.vlgmr.msra.gmra.mrb[16].mxu0 %v10449_v7  ;;  %v4541_v9 = vand.u32 2147483648, %v9320_v11  ;;  %v10450_v37 = vld [vmem:[#allocation14_spill] sm:$0xff]  ;;  %v10451_v34 = vpack.c.bf16 %v8798_v36, %v8833_v49  ;;  %v4583_v36 = vmul.f32 %v9305_v47, %v9305_v47 }
 0x2aa   :  { %10444 = vst [vmem:[#allocation99_spill] sm:$0xff] %v9496_v53  ;;  %v9509_v20 = vpack.c.bf16 %v10448_v56, %v10447_v24  ;;  %6734 = vmatpush3.bf16.msra.mxu0 %v6733_v40  ;;  %v4539_v59 = vsel %vm4538_vm4, %v9320_v11, %v4537_v35  ;;  %5982 = vmatprep.mubr.msk.f32.mxu0 %vm7261_vm1, %v10376_v28 }
 0x2ab   :  { %v2953_v53 = vrot.slane %v2952_v63, 2  ;;  %v4542_v24 = vsel %vm4540_vm5, %v4541_v9, %v4539_v59  ;;  %6735 = vmatprep.subr.bf16.mxu0 %v10358_v61  ;;  %6158 = vmatmul.mubr.f32.vlgmr.msra.gmra.mrb[16].mxu1 %v10450_v37  ;;  %v10452_v35 = vpack.c.bf16 %v8838_v22, %v8900_v44  ;;  %v10453_v49 = vpack.c.bf16 %v8865_v32, %v8907_v16  ;;  %v10487_v9 = vld [vmem:[#allocation67_spill] sm:$0xff] }
 0x2ac   :  { %v4555_v30 = vsub.f32 1.0, %v4542_v24  ;;  %6878 = vmatpush3.bf16.msra.mxu1 %v10451_v34  ;;  %6192 = vmatprep.mubr.msk.f32.mxu1 %vm7261_vm1, %v10376_v28  ;;  %v10454_v22 = vpack.c.bf16 %v10384_v2, %v8937_v1  ;;  %v4584_v44 = vsel %vm3733_vm0, %v4583_v36, 0.0  ;;  %v10455_v47 = vpack.c.bf16 %v10388_v33, %v8975_v3 }
 0x2ad   :  { %v2954_v19 = vadd.f32 %v2953_v53, %v2952_v63  ;;  %6879 = vmatprep.subr.bf16.mxu1 %v10358_v61  ;;  %v10456_v32 = vpack.c.bf16 %v8980_v21, %v9033_v52  ;;  %v10457_v1 = vpack.c.bf16 %v10393_v13, %v9036_v46  ;;  %v10458_v16 = vpack.c.bf16 %v9054_v5, %v9078_v50  ;;  %v10480_v33 = vld [vmem:[#allocation86_spill] sm:$0xff]  ;;  %v10481_v13 = vld [vmem:[#allocation91_spill] sm:$0xff] }
 0x2ae   :  { %v4556_v11 = vmax.f32 %v4555_v30, 0.0  ;;  %6737 = vmatpush3.bf16.msra.mxu0 %v10452_v35  ;;  %v10459_v3 = vpack.c.bf16 %v9062_v12, %v9088_v18  ;;  %v10460_v21 = vpack.c.bf16 %v9091_v48, %v9131_v14  ;;  %v10461_v52 = vpack.c.bf16 %v9102_v6, %v9144_v58  ;;  %v10466_v18 = vld [vmem:[#allocation70_spill] sm:$0xff]  ;;  %v10467_v48 = vld [vmem:[#allocation71_spill] sm:$0xff]  ;;  %v10468_v14 = vld [vmem:[#allocation69_spill] sm:$0xff] }
 0x2af   :  { %v2955_v40 = vrot.slane %v2954_v19, 1  ;;  %6738 = vmatprep.subr.bf16.mxu0 %v10358_v61  ;;  %v10462_v46 = vpack.c.bf16 %v9172_v51, %v9185_v41  ;;  %v10463_v5 = vpack.c.bf16 %v9175_v26, %v9216_v31  ;;  %v10464_v12 = vpack.c.bf16 %v9271_v45, %v9276_v15  ;;  %v10469_v6 = vld [vmem:[#allocation17_spill] sm:$0xff]  ;;  %v10470_v26 = vld [vmem:[#allocation74_spill] sm:$0xff]  ;;  %v10471_v58 = vld [vmem:[#allocation16_spill] sm:$0xff] }
 0x2b0   :  { %v4557_v53 = vsel %vm3733_vm0, %v4556_v11, 0.0  ;;  %6881 = vmatpush3.bf16.msra.mxu1 %v10453_v49  ;;  %v10465_v50 = vpack.c.bf16 %v9219_v4, %v9288_v39  ;;  %v10472_v51 = vld [vmem:[#allocation75_spill] sm:$0xff]  ;;  %v10474_v31 = vld [vmem:[#allocation18_spill] sm:$0xff]  ;;  %v10478_v39 = vand.u32 4294901760, %v10466_v18  ;;  %v10479_v2 = vand.u32 4294901760, %v10468_v14 }
 0x2b1   :  { %v2956_v63 = vadd.f32 %v2955_v40, %v2954_v19  ;;  %4558 = vadd.xlane.f32.xlu0 %v4557_v53  ;;  %6882 = vmatprep.subr.bf16.mxu1 %v10358_v61  ;;  %v10473_v41 = vld [vmem:[#allocation19_spill] sm:$0xff]  ;;  %v10475_v4 = vld [vmem:[#allocation78_spill] sm:$0xff] }
 0x2b2   :  { %6740 = vmatpush3.bf16.msra.mxu0 %v10454_v22  ;;  %v10476_v45 = vld [vmem:[#allocation82_spill] sm:$0xff]  ;;  %v10477_v15 = vld [vmem:[#allocation87_spill] sm:$0xff] }
 0x2b3   :  { %7152 = vpush %v2956_v63  ;;  %6741 = vmatprep.subr.bf16.mxu0 %v10358_v61 }
 0x2b4   :  { %6884 = vmatpush3.bf16.msra.mxu1 %v10455_v47 }
 0x2b5   :  { %4585 = vadd.xlane.f32.xlu0 %v4584_v44  ;;  %6885 = vmatprep.subr.bf16.mxu1 %v10358_v61  ;;  %v10488_v44 = vld [vmem:[#allocation68_spill] sm:$0xff] }
 0x2b6   :  { %6743 = vmatpush3.bf16.msra.mxu0 %v10456_v32 }
 0x2b7   :  { %6744 = vmatprep.subr.bf16.mxu0 %v10358_v61 }
 0x2b8   :  { %6887 = vmatpush3.bf16.msra.mxu1 %v10457_v1 }
 0x2b9   :  { %6888 = vmatprep.subr.bf16.mxu1 %v10358_v61 }
 0x2ba   :  { %6746 = vmatpush3.bf16.msra.mxu0 %v10458_v16 }
 0x2bb   :  { %6747 = vmatprep.subr.bf16.mxu0 %v10358_v61 }
 0x2bc   :  { %6890 = vmatpush3.bf16.msra.mxu1 %v10459_v3 }
 0x2bd   :  { %6891 = vmatprep.subr.bf16.mxu1 %v10358_v61 }
 0x2be   :  { %6749 = vmatpush3.bf16.msra.mxu0 %v10460_v21 }
 0x2bf   :  { %6750 = vmatprep.subr.bf16.mxu0 %v10358_v61 }
 0x2c0   :  { %6893 = vmatpush3.bf16.msra.mxu1 %v10461_v52 }
 0x2c1   :  { %6894 = vmatprep.subr.bf16.mxu1 %v10358_v61 }
 0x2c2   :  { %6752 = vmatpush3.bf16.msra.mxu0 %v10462_v46  ;;  %v4513_v46 = vpop.xlane.xlu0 %4512 }
 0x2c3   :  { %6753 = vmatprep.subr.bf16.mxu0 %v10358_v61 }
 0x2c4   :  { %6896 = vmatpush3.bf16.msra.mxu1 %v10463_v5 }
 0x2c5   :  { %6897 = vmatprep.subr.bf16.mxu1 %v10358_v61 }
 0x2c6   :  { %6755 = vmatpush3.bf16.msra.mxu0 %v10464_v12 }
 0x2c7   :  { %6756 = vmatprep.subr.bf16.mxu0 %v10358_v61 }
 0x2c8   :  { %6899 = vmatpush3.bf16.msra.mxu1 %v10465_v50 }
 0x2c9   :  { %5983 = vmatmul.mubr.f32.vlgmr.msra.gmra.mrb[16].mxu0 %v10466_v18  ;;  %6900 = vmatprep.subr.bf16.mxu1 %v10358_v61 }
 0x2ca   :  { %6758 = vmatpush3.bf16.msra.mxu0 %v10467_v48  ;;  %6017 = vmatprep.mubr.msk.f32.mxu0 %vm7261_vm1, %v10376_v28 }
 0x2cb   :  { %6759 = vmatprep.subr.bf16.mxu0 %v10358_v61  ;;  %6193 = vmatmul.mubr.f32.vlgmr.msra.gmra.mrb[16].mxu1 %v10468_v14  ;;  %v4514_v14 = vrot.slane %v4513_v46, 4 }
 0x2cc   :  { %6902 = vmatpush3.bf16.msra.mxu1 %v10469_v6  ;;  %6227 = vmatprep.mubr.msk.f32.mxu1 %vm7261_vm1, %v10376_v28 }
 0x2cd   :  { %6903 = vmatprep.subr.bf16.mxu1 %v10358_v61 }
 0x2ce   :  { %6761 = vmatpush3.bf16.msra.mxu0 %v10470_v26 }
 0x2cf   :  { %6762 = vmatprep.subr.bf16.mxu0 %v10358_v61 }
 0x2d0   :  { %6905 = vmatpush3.bf16.msra.mxu1 %v10471_v58 }
 0x2d1   :  { %6906 = vmatprep.subr.bf16.mxu1 %v10358_v61 }
 0x2d2   :  { %6764 = vmatpush3.bf16.msra.mxu0 %v10472_v51 }
 0x2d3   :  { %6765 = vmatprep.subr.bf16.mxu0 %v10358_v61 }
 0x2d4   :  { %6908 = vmatpush3.bf16.msra.mxu1 %v10473_v41 }
 0x2d5   :  { %6909 = vmatprep.subr.bf16.mxu1 %v10358_v61 }
 0x2d6   :  { %6767 = vmatpush3.bf16.msra.mxu0 %v10474_v31 }
 0x2d7   :  { %6768 = vmatprep.subr.bf16.mxu0 %v10358_v61 }
 0x2d8   :  { %6911 = vmatpush3.bf16.msra.mxu1 %v10475_v4 }
 0x2d9   :  { %6912 = vmatprep.subr.bf16.mxu1 %v10358_v61 }
 0x2da   :  { %6770 = vmatpush3.bf16.msra.mxu0 %v9083_v38 }
 0x2db   :  { %6771 = vmatprep.subr.bf16.mxu0 %v10358_v61 }
 0x2dc   :  { %6914 = vmatpush3.bf16.msra.mxu1 %v9085_v17 }
 0x2dd   :  { %6915 = vmatprep.subr.bf16.mxu1 %v10358_v61 }
 0x2de   :  { %6773 = vmatpush3.bf16.msra.mxu0 %v9137_v62 }
 0x2df   :  { %6774 = vmatprep.subr.bf16.mxu0 %v10358_v61 }
 0x2e0   :  { %6917 = vmatpush3.bf16.msra.mxu1 %v9141_v43 }
 0x2e1   :  { %6918 = vmatprep.subr.bf16.mxu1 %v10358_v61 }
 0x2e2   :  { %6776 = vmatpush3.bf16.msra.mxu0 %v9180_v42 }
 0x2e3   :  { %6777 = vmatprep.subr.bf16.mxu0 %v10358_v61 }
 0x2e4   :  { %6920 = vmatpush3.bf16.msra.mxu1 %v9182_v55  ;;  %s9718_s1 = spop %7152 }
 0x2e5   :  { %6921 = vmatprep.subr.bf16.mxu1 %v10358_v61  ;;  %s2958_s23 = smul.f32 0.00024414063, %s9718_s1  ;;  %s7240_s1 = scalar_lea.hbm %s9735_s2, 16 }
 0x2e6   :  { %6779 = vmatpush3.bf16.msra.mxu0 %v10476_v45  ;;  %p7241_p2 = scmp.ne.s32.totalorder %s9735_s2, %s7240_s1  ;;  %p7244_p3 = scmp.lt.u32.totalorder %s7240_s1, %s9735_s2 }
 0x2e7   :  { %6780 = vmatprep.subr.bf16.mxu0 %v10358_v61  ;;  %s4599_s5 = smul.f32 25.0, %s2958_s23 }
 0x2e8   :  { %6923 = vmatpush3.bf16.msra.mxu1 %v10477_v15  ;;  %p7246_p4 = pnand %p7244_p3, %p7241_p2 }
 0x2e9   :  { %6018 = vmatmul.mubr.f32.vlgmr.msra.gmra.mrb[16].mxu0 %v10478_v39  ;;  %6924 = vmatprep.subr.bf16.mxu1 %v10358_v61 }
 0x2ea   :  { %6782 = vmatpush3.bf16.msra.mxu0 %v9417_v23  ;;  %6052 = vmatprep.mubr.msk.f32.mxu0 %vm7261_vm1, %v10376_v28 }
 0x2eb   :  { %6783 = vmatprep.subr.bf16.mxu0 %v10358_v61  ;;  %6228 = vmatmul.mubr.f32.vlgmr.msra.gmra.mrb[16].mxu1 %v10479_v2 }
 0x2ec   :  { %6926 = vmatpush3.bf16.msra.mxu1 %v9423_v57  ;;  %6262 = vmatprep.mubr.msk.f32.mxu1 %vm7261_vm1, %v10376_v28 }
 0x2ed   :  { %6927 = vmatprep.subr.bf16.mxu1 %v10358_v61 }
 0x2ee   :  { %6785 = vmatpush3.bf16.msra.mxu0 %v9429_v8  ;;  %v9681_v8 = vpop.xlane.xlu1 %3746 }
 0x2ef   :  { %6786 = vmatprep.subr.bf16.mxu0 %v10358_v61  ;;  %v3748_v12 = vrot.slane %v9681_v8, 4 }
 0x2f0   :  { %6929 = vmatpush3.bf16.msra.mxu1 %v9435_v27  ;;  %v10482_v27 = vld [vmem:[#allocation90_spill] sm:$0xff] }
 0x2f1   :  { %6930 = vmatprep.subr.bf16.mxu1 %v10358_v61 }
 0x2f2   :  { %6788 = vmatpush3.bf16.msra.mxu0 %v9441_v29 }
 0x2f3   :  { %6789 = vmatprep.subr.bf16.mxu0 %v10358_v61 }
 0x2f4   :  { %6932 = vmatpush3.bf16.msra.mxu1 %v9447_v10  ;;  %v10483_v10 = vld [vmem:[#allocation95_spill] sm:$0xff] }
 0x2f5   :  { %6933 = vmatprep.subr.bf16.mxu1 %v10358_v61 }
 0x2f6   :  { %6791 = vmatpush3.bf16.msra.mxu0 %v9453_v0  ;;  %v10484_v0 = vld [vmem:[#allocation94_spill] sm:$0xff] }
 0x2f7   :  { %6792 = vmatprep.subr.bf16.mxu0 %v10358_v61 }
 0x2f8   :  { %6935 = vmatpush3.bf16.msra.mxu1 %v9459_v54  ;;  %v10485_v54 = vld [vmem:[#allocation99_spill] sm:$0xff] }
 0x2f9   :  { %6936 = vmatprep.subr.bf16.mxu1 %v10358_v61 }
 0x2fa   :  { %6794 = vmatpush3.bf16.msra.mxu0 %v10480_v33 }
 0x2fb   :  { %6795 = vmatprep.subr.bf16.mxu0 %v10358_v61 }
 0x2fc   :  { %6938 = vmatpush3.bf16.msra.mxu1 %v10481_v13 }
 0x2fd   :  { %6939 = vmatprep.subr.bf16.mxu1 %v10358_v61 }
 0x2fe   :  { %6797 = vmatpush3.bf16.msra.mxu0 %v10482_v27 }
 0x2ff   :  { %6798 = vmatprep.subr.bf16.mxu0 %v10358_v61 }
 0x300   :  { %6941 = vmatpush3.bf16.msra.mxu1 %v10483_v10 }
 0x301   :  { %6942 = vmatprep.subr.bf16.mxu1 %v10358_v61 }
 0x302   :  { %6800 = vmatpush3.bf16.msra.mxu0 %v10484_v0 }
 0x303   :  { %6801 = vmatprep.subr.bf16.mxu0 %v10358_v61 }
 0x304   :  { %6944 = vmatpush3.bf16.msra.mxu1 %v10485_v54 }
 0x305   :  { %6945 = vmatprep.subr.bf16.mxu1 %v10358_v61 }
 0x306   :  { %6803 = vmatpush3.bf16.msra.mxu0 %v9503_v60 }
 0x307   :  { %6804 = vmatprep.subr.bf16.mxu0 %v10358_v61 }
 0x308   :  { %6947 = vmatpush3.bf16.msra.mxu1 %v9509_v20 }
 0x309   :  { %6053 = vmatmul.mubr.f32.vlgmr.msra.gmra.mrb[16].mxu0 %v10449_v7  ;;  %6948 = vmatprep.subr.bf16.mxu1 %v10358_v61 }
 0x30a   :  { %6806 = vmatpush3.bf16.msra.mxu0 %v10467_v48  ;;  %6087 = vmatprep.mubr.msk.f32.mxu0 %vm7261_vm1, %v10376_v28  ;;  %v3749_v48 = vadd.f32 %v3748_v12, %v9681_v8 }
 0x30b   :  { %6807 = vmatprep.subr.bf16.mxu0 %v10358_v61  ;;  %6263 = vmatmul.mubr.f32.vlgmr.msra.gmra.mrb[16].mxu1 %v10450_v37 }
 0x30c   :  { %6950 = vmatpush3.bf16.msra.mxu1 %v10469_v6  ;;  %6297 = vmatprep.mubr.msk.f32.mxu1 %vm7261_vm1, %v10376_v28 }
 0x30d   :  { %6951 = vmatprep.subr.bf16.mxu1 %v10358_v61 }
 0x30e   :  { %6809 = vmatpush3.bf16.msra.mxu0 %v10470_v26  ;;  %v3750_v26 = vrot.slane %v3749_v48, 2 }
 0x30f   :  { %6810 = vmatprep.subr.bf16.mxu0 %v10358_v61  ;;  %v3850_v5 = vpop.xlane.xlu0 %3849 }
 0x310   :  { %6953 = vmatpush3.bf16.msra.mxu1 %v10471_v58  ;;  %v3851_v50 = vrot.slane %v3850_v5, 4  ;;  %v4515_v58 = vadd.f32 %v4514_v14, %v4513_v46  ;;  %v3751_v27 = vadd.f32 %v3750_v26, %v3749_v48 }
 0x311   :  { %6954 = vmatprep.subr.bf16.mxu1 %v10358_v61  ;;  %v3083_v28 = vpop.xlane.xlu1 %3082 }
 0x312   :  { %6812 = vmatpush3.bf16.msra.mxu0 %v10472_v51  ;;  %v3084_v57 = vrot.slane %v3083_v28, 4  ;;  %v3852_v6 = vadd.f32 %v3851_v50, %v3850_v5  ;;  %v4516_v39 = vrot.slane %v4515_v58, 2 }
 0x313   :  { %6813 = vmatprep.subr.bf16.mxu0 %v10358_v61 }
 0x314   :  { %6956 = vmatpush3.bf16.msra.mxu1 %v10473_v41  ;;  %v3085_v23 = vadd.f32 %v3084_v57, %v3083_v28 }
 0x315   :  { %6957 = vmatprep.subr.bf16.mxu1 %v10358_v61 }
 0x316   :  { %6815 = vmatpush3.bf16.msra.mxu0 %v10474_v31  ;;  %v3086_v29 = vrot.slane %v3085_v23, 2  ;;  %v3853_v31 = vrot.slane %v3852_v6, 2 }
 0x317   :  { %6816 = vmatprep.subr.bf16.mxu0 %v10358_v61 }
 0x318   :  { %6959 = vmatpush3.bf16.msra.mxu1 %v10475_v4  ;;  %v3087_v25 = vadd.f32 %v3086_v29, %v3085_v23  ;;  %v3854_v54 = vadd.f32 %v3853_v31, %v3852_v6 }
 0x319   :  { %6960 = vmatprep.subr.bf16.mxu1 %v10358_v61 }
 0x31a   :  { %6818 = vmatpush3.bf16.msra.mxu0 %v9083_v38  ;;  %v3088_v60 = vrot.slane %v3087_v25, 1 }
 0x31b   :  { %6819 = vmatprep.subr.bf16.mxu0 %v10358_v61 }
 0x31c   :  { %6962 = vmatpush3.bf16.msra.mxu1 %v9085_v17  ;;  %v3089_v38 = vadd.f32 %v3088_v60, %v3087_v25  ;;  %v3752_v25 = vrot.slane %v3751_v27, 1  ;;  %v4517_v60 = vadd.f32 %v4516_v39, %v4515_v58 }
 0x31d   :  { %6963 = vmatprep.subr.bf16.mxu1 %v10358_v61 }
 0x31e   :  { %6821 = vmatpush3.bf16.msra.mxu0 %v9137_v62  ;;  %7154 = vpush %v3089_v38 }
 0x31f   :  { %6822 = vmatprep.subr.bf16.mxu0 %v10358_v61 }
 0x320   :  { %6965 = vmatpush3.bf16.msra.mxu1 %v9141_v43  ;;  %v10486_v43 = vld [vmem:[#allocation83_spill] sm:$0xff] }
 0x321   :  { %6966 = vmatprep.subr.bf16.mxu1 %v10358_v61  ;;  %v3041_v17 = vrot.slane %v10486_v43, 4 }
 0x322   :  { %6824 = vmatpush3.bf16.msra.mxu0 %v9180_v42 }
 0x323   :  { %6825 = vmatprep.subr.bf16.mxu0 %v10358_v61  ;;  %v3042_v62 = vadd.f32 %v3041_v17, %v10486_v43 }
 0x324   :  { %6968 = vmatpush3.bf16.msra.mxu1 %v9182_v55  ;;  %v3047_v55 = vmul.f32 32.0, %v10487_v9 }
 0x325   :  { %6969 = vmatprep.subr.bf16.mxu1 %v10358_v61  ;;  %v3043_v42 = vrot.slane %v3042_v62, 2 }
 0x326   :  { %6827 = vmatpush3.bf16.msra.mxu0 %v10476_v45  ;;  %v3048_v61 = vmul.f32 %v3047_v55, %v10487_v9 }
 0x327   :  { %v3044_v56 = vadd.f32 %v3043_v42, %v3042_v62  ;;  %v3855_v62 = vrot.slane %v3854_v54, 1 }
 0x328   :  { %6971 = vmatpush3.bf16.msra.mxu1 %v10477_v15 }
 0x329   :  { %6088 = vmatmul.mubr.f32.vlgmr.msra.gmra.mrb[16].mxu0 %v10449_v7  ;;  %v3045_v20 = vrot.slane %v3044_v56, 1 }
 0x32b   :  { %6298 = vmatmul.mubr.f32.vlgmr.msra.gmra.mrb[16].mxu1 %v10450_v37  ;;  %v3046_v59 = vadd.f32 %v3045_v20, %v3044_v56 }
 0x32d   :  { %v3049_v24 = vsub.f32 %v3046_v59, %v3048_v61  ;;  %v3753_v59 = vadd.f32 %v3752_v25, %v3751_v27  ;;  %v4518_v61 = vrot.slane %v4517_v60, 1 }
 0x32f   :  { %v3050_v19 = vmul.f32 0.032258064, %v3049_v24 }
 0x331   :  { %v4527_v30 = vadd.f32 0.0001, %v3050_v19  ;;  %v4571_v21 = vmul.f32 %v3050_v19, %v3050_v19 }
 0x333   :  { %7184 = vrsqrt.f32 %v4527_v30  ;;  %vm4530_vm1 = vcmp.eq.f32.partialorder %v4527_v30, inf  ;;  %v4533_v40 = vand.u32 2147483648, %v4527_v30  ;;  %vm4532_vm6 = vcmp.eq.f32.partialorder %v4527_v30, 0.0 }
 0x334   :  { %v4572_v52 = vsel %vm3733_vm0, %v4571_v21, 0.0 }
 0x33d   :  { %v7185_v34 = vpop.eup %7184 }
 0x33e   :  { %v4529_v7 = vmul.f32 %v7185_v34, %v4527_v30  ;;  %v4559_v18 = vpop.xlane.xlu0 %4558  ;;  %v3856_v34 = vadd.f32 %v3855_v62, %v3854_v54 }
 0x33f   :  { %v4560_v51 = vrot.slane %v4559_v18, 4 }
 0x340   :  { %v4531_v37 = vsel %vm4530_vm1, %v4527_v30, %v4529_v7 }
 0x341   :  { %v4534_v35 = vsel %vm4532_vm6, %v4533_v40, %v4531_v37  ;;  %v4561_v2 = vadd.f32 %v4560_v51, %v4559_v18 }
 0x342   :  { %v4543_v22 = vsub.f32 1.0, %v4534_v35  ;;  %v4586_v4 = vpop.xlane.xlu0 %4585 }
 0x343   :  { %v4587_v33 = vrot.slane %v4586_v4, 4  ;;  %v4562_v57 = vrot.slane %v4561_v2, 2 }
 0x344   :  { %v4544_v16 = vmax.f32 %v4543_v22, 0.0 }
 0x345   :  { %v4588_v23 = vadd.f32 %v4587_v33, %v4586_v4  ;;  %v4563_v24 = vadd.f32 %v4562_v57, %v4561_v2 }
 0x346   :  { %v4545_v3 = vsel %vm3733_vm0, %v4544_v16, 0.0 }
 0x34f   :  { %s7155_s6 = spop %7154 }
 0x3fc   :  { %v3728_v11 = vpop.f32.mrb[16].mxu0 }
 0x3fd   :  { %v3732_v63 = vmul.f32 %v3728_v11, %v10487_v9  ;;  %v6089_v53 = vpop.f32.mrb[17].mxu0  ;;  %v4589_v9 = vrot.slane %v4588_v23, 2 }
 0x3fe   :  { %v4495_v36 = vpop.f32.mrb[16].mxu1  ;;  %v4564_v53 = vrot.slane %v4563_v24, 1 }
 0x3ff   :  { %v3734_v49 = vsel %vm3733_vm0, %v3732_v63, 0.0  ;;  %v4499_v47 = vmul.f32 %v4495_v36, %v10488_v44  ;;  %v6299_v32 = vpop.f32.mrb[17].mxu1  ;;  %v4590_v35 = vadd.f32 %v4589_v9, %v4588_v23  ;;  %v4519_v63 = vadd.f32 %v4518_v61, %v4517_v60 }
 0x400   :  { %3735 = vadd.xlane.f32.xlu1 %v3734_v49 }
 0x401   :  { %v4500_v1 = vsel %vm3733_vm0, %v4499_v47, 0.0  ;;  %v4565_v47 = vadd.f32 %v4564_v53, %v4563_v24  ;;  %v4591_v32 = vrot.slane %v4590_v35, 1 }
 0x404   :  { %4501 = vadd.xlane.f32.xlu1 %v4500_v1 }
 0x408   :  { %4546 = vadd.xlane.f32.xlu1 %v4545_v3  ;;  %v4592_v3 = vadd.f32 %v4591_v32, %v4590_v35 }
 0x40c   :  { %4573 = vadd.xlane.f32.xlu1 %v4572_v52 }
 0x48d   :  { %v3736_v41 = vpop.xlane.xlu1 %3735 }
 0x48e   :  { %v3737_v45 = vrot.slane %v3736_v41, 4 }
 0x490   :  { %v3738_v15 = vadd.f32 %v3737_v45, %v3736_v41 }
 0x491   :  { %v4502_v13 = vpop.xlane.xlu1 %4501 }
 0x492   :  { %v3739_v10 = vrot.slane %v3738_v15, 2  ;;  %v4503_v0 = vrot.slane %v4502_v13, 4 }
 0x494   :  { %v4504_v28 = vadd.f32 %v4503_v0, %v4502_v13  ;;  %v3740_v8 = vadd.f32 %v3739_v10, %v3738_v15 }
 0x495   :  { %v4547_v29 = vpop.xlane.xlu1 %4546 }
 0x496   :  { %v4505_v38 = vrot.slane %v4504_v28, 2  ;;  %v4548_v43 = vrot.slane %v4547_v29, 4  ;;  %v3741_v17 = vrot.slane %v3740_v8, 1 }
 0x498   :  { %v4549_v42 = vadd.f32 %v4548_v43, %v4547_v29  ;;  %v3742_v56 = vadd.f32 %v3741_v17, %v3740_v8  ;;  %v4506_v20 = vadd.f32 %v4505_v38, %v4504_v28 }
 0x499   :  { %v4574_v55 = vpop.xlane.xlu1 %4573 }
 0x49a   :  { %v4550_v19 = vrot.slane %v4549_v42, 2  ;;  %v4575_v30 = vrot.slane %v4574_v55, 4  ;;  %7156 = vpush %v3742_v56  ;;  %v4507_v7 = vrot.slane %v4506_v20, 1 }
 0x49b   :  { %7158 = vpush %v3753_v59 }
 0x49c   :  { %v4576_v37 = vadd.f32 %v4575_v30, %v4574_v55  ;;  %7160 = vpush %v3856_v34  ;;  %v4508_v40 = vadd.f32 %v4507_v7, %v4506_v20  ;;  %v4551_v11 = vadd.f32 %v4550_v19, %v4549_v42 }
 0x49e   :  { %v4577_v36 = vrot.slane %v4576_v37, 2  ;;  %7162 = vpush %v4508_v40  ;;  %v4552_v49 = vrot.slane %v4551_v11, 1 }
 0x49f   :  { %7164 = vpush %v4519_v63 }
 0x4a0   :  { %v4578_v22 = vadd.f32 %v4577_v36, %v4576_v37  ;;  %v4553_v44 = vadd.f32 %v4552_v49, %v4551_v11 }
 0x4a2   :  { %7166 = vpush %v4553_v44  ;;  %v4579_v1 = vrot.slane %v4578_v22, 1 }
 0x4a3   :  { %7168 = vpush %v4565_v47 }
 0x4a4   :  { %v4580_v16 = vadd.f32 %v4579_v1, %v4578_v22 }
 0x4a6   :  { %7170 = vpush %v4580_v16 }
 0x4a7   :  { %7172 = vpush %v4592_v3 }
 0x4cb   :  { %s7157_s7 = spop %7156 }
 0x4cc   :  { %s3755_s8 = smul.f32 64.0, %s7157_s7  ;;  %s7159_s9 = spop %7158 }
 0x4cd   :  { %s3757_s10 = smul.f32 1024.0, %s7159_s9  ;;  %s7161_s12 = spop %7160 }
 0x4ce   :  { %s3756_s11 = ssub.f32 %s7155_s6, %s3755_s8 }
 0x4cf   :  { %s3758_s13 = smul.f32 %s7159_s9, %s3757_s10  ;;  %s7163_s14 = spop %7162 }
 0x4d0   :  { %s4521_s15 = smul.f32 64.0, %s7163_s14  ;;  %s7165_s16 = spop %7164 }
 0x4d1   :  { %s4523_s17 = smul.f32 1024.0, %s7165_s16  ;;  %s3759_s18 = sadd.f32 %s3758_s13, %s3756_s11 }
 0x4d2   :  { %s4522_s19 = ssub.f32 %s7161_s12, %s4521_s15 }
 0x4d3   :  { %s4524_s20 = smul.f32 %s7165_s16, %s4523_s17  ;;  %s7167_s21 = spop %7166 }
 0x4d4   :  { %s7169_s22 = spop %7168  ;;  %s3760_s25 = smul.f32 0.0010405828, %s3759_s18 }
 0x4d5   :  { %s4567_s24 = sadd.f32 %s7169_s22, %s7167_s21 }
 0x4d6   :  { %s4525_s26 = sadd.f32 %s4524_s20, %s4522_s19 }
 0x4d7   :  { %s4570_s27 = smul.f32 0.0078125, %s4567_s24  ;;  %s7171_s28 = spop %7170 }
 0x4d8   :  { %s4582_s29 = ssub.f32 %s3760_s25, %s7171_s28  ;;  %s4526_s30 = smul.f32 0.0010405828, %s4525_s26 }
 0x4d9   :  { %s7173_s3 = spop %7172  ;;  %s4600_s4 = smul.f32 25.0, %s4570_s27 }
 0x4da   :  { %s4594_s0 = ssub.f32 %s4526_s30, %s7173_s3 }
 0x4db   :  { %s4601_s7 = sadd.f32 %s4600_s4, %s4599_s5 }
 0x4dc   :  { %s4595_s6 = sadd.f32 %s4594_s0, %s4582_s29 }
 0x4de   :  { %s4598_s8 = smul.f32 0.0078125, %s4595_s6 }
 0x4e0   :  { %s4602_s9 = sadd.f32 %s4601_s7, %s4598_s8 }
 0x4e2   :  { %4604 = sst [smem:[#allocation10]] %s4602_s9 }
 0x4e3   :  { %7249 = shalt.err (!%p7246_p4)
}
 0x4e4   :  { %s7263_s16 = smov [#allocation10]  }
 0x4e5   :  { %4612 = dma.smem_to_hbm %s7263_s16, 16, %s9735_s2, [#allocation7]  }
 0x4e6   :  { %7254 = dma.done.wait [#allocation7], 16  }
 0x4e7   :  { %7255 = vsyncadd [#allocation7], 4294967280 }
 0x4e8   :  { %4616 = sfence }
 0x4e9   :  { %4617 = vsyncpa [#allocation6], 1 }
 0x4ea   :  { %4618 = vsyncpa [#allocation9], 1 }
 0x4eb   :  { %4619 = vsyncpa [#allocation7], 1 }

</bundles_post_ra>
